<compile_context>
chip_gen: v6e
topology: v6e:2x2x1
jax: 0.10.0
libtpu: 0.0.40
codegen_flags: <defaults>
</compile_context>

<pallas_src>
import functools

import jax
import jax.numpy as jnp
from jax.experimental import pallas as pl
from jax.experimental.pallas import tpu as pltpu


def _round_up(x, m):
    return ((x + m - 1) // m) * m


def _decoder_kernel(hid0_ref, fw_ref, wih_ref, whh_ref,
                    b_r_ref, b_z_ref, b_in_ref, b_hn_ref,
                    wl_ref, bl_ref, alpha_ref, out_ref, *, voca_size):
    T, _, Vp = out_ref.shape
    Hp = hid0_ref.shape[1]
    a = alpha_ref[0, 0]                       # PReLU slope (single parameter)

    def prelu(x):
        return jnp.maximum(x, 0.0) + a * jnp.minimum(x, 0.0)

    # Weights are stored bf16; upcast once (math stays f32 on all generations).
    wih = wih_ref[...].astype(jnp.float32)    # (Vp, 3*Hp)
    whh = whh_ref[...].astype(jnp.float32)    # (Hp, 3*Hp)
    wl = wl_ref[...].astype(jnp.float32)      # (Hp, Vp)
    b_r = b_r_ref[...]                        # (1, Hp)  folded b_ih_r + b_hh_r
    b_z = b_z_ref[...]                        # (1, Hp)  folded b_ih_z + b_hh_z
    b_in = b_in_ref[...]                      # (1, Hp)  b_ih_n
    b_hn = b_hn_ref[...]                      # (1, Hp)  b_hh_n (inside r*(...))
    bl = bl_ref[...]                          # (1, Vp)

    # Mask selecting the real vocab lanes (padding excluded from the softmax sum).
    col = jax.lax.broadcasted_iota(jnp.int32, (1, Vp), 1)
    vmask = (col < voca_size).astype(jnp.float32)

    fw = fw_ref[...]                          # (N, Vp), padded lanes are zero
    out_ref[0] = fw                           # t = 0 output is the raw first word

    x0 = prelu(fw)                            # PReLU applied once to the seed word
    h0 = hid0_ref[...]                        # (N, Hp), padded lanes are zero

    def step(t, carry):
        x, h = carry
        gi = jnp.dot(x, wih, preferred_element_type=jnp.float32)   # (N, 3*Hp)
        gh = jnp.dot(h, whh, preferred_element_type=jnp.float32)   # (N, 3*Hp)
        # PyTorch gate order r, z, n; slices are 128-lane-tile aligned free views.
        r = jax.nn.sigmoid(gi[:, 0:Hp] + gh[:, 0:Hp] + b_r)
        z = jax.nn.sigmoid(gi[:, Hp:2 * Hp] + gh[:, Hp:2 * Hp] + b_z)
        n = jnp.tanh(gi[:, 2 * Hp:3 * Hp] + b_in + r * (gh[:, 2 * Hp:3 * Hp] + b_hn))
        h_new = (1.0 - z) * n + z * h

        # Output head: PReLU(Linear(h)) then softmax over the real vocab lanes.
        o = prelu(jnp.dot(h_new, wl, preferred_element_type=jnp.float32) + bl)
        m = jnp.max(o, axis=-1, keepdims=True)
        e = jnp.exp(o - m) * vmask
        sm = e * pl.reciprocal(jnp.sum(e, axis=-1, keepdims=True), approx=True)

        out_ref[t] = sm
        return (sm, h_new)                    # softmaxed word feeds the next step

    # T is small & static -> fully unrolled (LLO scheduler visibility).
    jax.lax.fori_loop(1, T, step, (x0, h0), unroll=True)


def decoder_forward(hidden, topic_score, first_word, params, max_ans_length):
    """Inference path of Decoder.forward (training=False)."""
    hidden_var = jnp.concatenate((hidden, topic_score), axis=1)   # (N, H)
    N, H = hidden_var.shape
    V = first_word.shape[1]
    T = max_ans_length

    Hp = _round_up(H, 128)   # one 128-lane tile per gate
    Vp = _round_up(V, 128)   # lane-dense vocab axis

    w_ih, w_hh = params["w_ih"], params["w_hh"]       # (3H, V), (3H, H)
    b_ih, b_hh = params["b_ih"], params["b_hh"]       # (3H,), (3H,)
    w_l, b_l = params["w_l"], params["b_l"]           # (V, H), (V,)

    def split_gates(w):   # (3H, ...) -> r, z, n blocks of (H, ...)
        return w[:H], w[H:2 * H], w[2 * H:]

    def pad2(x, rows, cols):
        return jnp.pad(x, ((0, rows - x.shape[0]), (0, cols - x.shape[1])))

    # W_ih^T / W_hh^T with each gate's H output columns zero-padded to Hp.
    wih_p = jnp.concatenate([pad2(g.T, Vp, Hp) for g in split_gates(w_ih)],
                            axis=1).astype(jnp.bfloat16)            # (Vp, 3*Hp)
    whh_p = jnp.concatenate([pad2(g.T, Hp, Hp) for g in split_gates(w_hh)],
                            axis=1).astype(jnp.bfloat16)            # (Hp, 3*Hp)

    bih_r, bih_z, bih_n = split_gates(b_ih)
    bhh_r, bhh_z, bhh_n = split_gates(b_hh)
    pad_b = lambda b: jnp.pad(b.reshape(1, -1).astype(jnp.float32),
                              ((0, 0), (0, Hp - H)))
    b_r = pad_b(bih_r + bhh_r)      # folded r-gate bias
    b_z = pad_b(bih_z + bhh_z)      # folded z-gate bias
    b_in = pad_b(bih_n)             # n-gate input bias   (outside r*(...))
    b_hn = pad_b(bhh_n)             # n-gate hidden bias  (inside  r*(...))

    wl_p = pad2(w_l.T, Hp, Vp).astype(jnp.bfloat16)                  # (Hp, Vp)
    bl_p = jnp.pad(b_l.reshape(1, -1).astype(jnp.float32), ((0, 0), (0, Vp - V)))

    hid0_p = pad2(hidden_var.astype(jnp.float32), N, Hp)             # (N, Hp)
    fw_p = pad2(first_word.astype(jnp.float32), N, Vp)               # (N, Vp)
    alpha = params["alpha"].reshape(1, 1).astype(jnp.float32)

    vmem = pltpu.MemorySpace.VMEM
    out = pl.pallas_call(
        functools.partial(_decoder_kernel, voca_size=V),
        out_shape=jax.ShapeDtypeStruct((T, N, Vp), jnp.float32),
        in_specs=[pl.BlockSpec(memory_space=vmem)] * 10
                 + [pl.BlockSpec(memory_space=pltpu.MemorySpace.SMEM)],  # alpha
        out_specs=pl.BlockSpec(memory_space=vmem),
        compiler_params=pltpu.CompilerParams(vmem_limit_bytes=32 * 1024 * 1024),
        # TODO(synk): for large batch N on v7x, add a leading "parallel" batch
        # grid axis (both TensorCores); at toy N it would only add overhead.
    )(hid0_p, fw_p, wih_p, whh_p, b_r, b_z, b_in, b_hn, wl_p, bl_p, alpha)

    # (T, N, Vp) -> (N, T, V): restore batch-major layout, drop lane padding.
    return jnp.transpose(out, (1, 0, 2))[:, :, :V]


def decoder_reference(hidden, topic_score, first_word, params, max_ans_length):
    """Pure-JAX (f32) reference of the PyTorch forward (inference path)."""
    alpha = params["alpha"][0]

    def prelu(x):
        return jnp.maximum(x, 0.0) + alpha * jnp.minimum(x, 0.0)

    h = jnp.concatenate((hidden, topic_score), axis=1)
    H = h.shape[1]
    word = first_word
    outs = [first_word]
    for _ in range(1, max_ans_length):
        x = prelu(word)
        gi = x @ params["w_ih"].T + params["b_ih"]
        gh = h @ params["w_hh"].T + params["b_hh"]
        r = jax.nn.sigmoid(gi[:, :H] + gh[:, :H])
        z = jax.nn.sigmoid(gi[:, H:2 * H] + gh[:, H:2 * H])
        n = jnp.tanh(gi[:, 2 * H:] + r * gh[:, 2 * H:])
        h = (1.0 - z) * n + z * h
        o = prelu(h @ params["w_l"].T + params["b_l"])
        word = jax.nn.softmax(o, axis=-1)
        outs.append(word)
    return jnp.stack(outs, axis=1)


if __name__ == "__main__":
    # Small shapes consistent with the module's __init__ / forward.
    batch_sz = 4
    hidden_size = 12
    topic_size = 8
    voca_size = 64
    max_ans_length = 8
    H = 2 * hidden_size + topic_size          # hidden_var_size = 32

    key = jax.random.PRNGKey(0)
    ks = jax.random.split(key, 10)

    # Deterministic synthetic parameters (shapes from nn.GRU / nn.Linear / nn.PReLU).
    params = {
        "w_ih": 0.1 * jax.random.normal(ks[0], (3 * H, voca_size), jnp.float32),
        "w_hh": 0.1 * jax.random.normal(ks[1], (3 * H, H), jnp.float32),
        "b_ih": 0.1 * jax.random.normal(ks[2], (3 * H,), jnp.float32),
        "b_hh": 0.1 * jax.random.normal(ks[3], (3 * H,), jnp.float32),
        "w_l": 0.1 * jax.random.normal(ks[4], (voca_size, H), jnp.float32),
        "b_l": 0.1 * jax.random.normal(ks[5], (voca_size,), jnp.float32),
        "alpha": jnp.full((1,), 0.25, jnp.float32),   # PReLU default init
    }

    hidden = jax.random.normal(ks[6], (batch_sz, 2 * hidden_size), jnp.float32)
    topic_score = jax.random.normal(ks[7], (batch_sz, topic_size), jnp.float32)
    first_word = jax.nn.softmax(
        jax.random.normal(ks[8], (batch_sz, voca_size), jnp.float32), axis=-1)

    out = decoder_forward(hidden, topic_score, first_word, params, max_ans_length)
    out = jax.block_until_ready(out)

    # Tight check: reference fed with the exact bf16-rounded weights the kernel uses.
    params_q = dict(params)
    for k in ("w_ih", "w_hh", "w_l"):
        params_q[k] = params[k].astype(jnp.bfloat16).astype(jnp.float32)
    ref_q = decoder_reference(hidden, topic_score, first_word, params_q, max_ans_length)
    # Loose check: full-f32 reference (difference = bf16 weight quantization only).
    ref_f = decoder_reference(hidden, topic_score, first_word, params, max_ans_length)

    assert out.shape == (batch_sz, max_ans_length, voca_size)
    assert jnp.allclose(out[:, 0, :], first_word, atol=1e-6)
    assert jnp.allclose(out, ref_q, atol=5e-4, rtol=5e-4), float(jnp.abs(out - ref_q).max())
    assert jnp.allclose(out, ref_f, atol=3e-3, rtol=3e-3), float(jnp.abs(out - ref_f).max())

    print("KERNEL_OK")
</pallas_src>

<mosaic_0001>
module attributes {stable_mosaic.version = 11 : i64} {
  func.func @_decoder_kernel(%arg0: memref<4x128xf32, #tpu.memory_space<vmem>>, %arg1: memref<4x128xf32, #tpu.memory_space<vmem>>, %arg2: memref<128x384xbf16, #tpu.memory_space<vmem>>, %arg3: memref<128x384xbf16, #tpu.memory_space<vmem>>, %arg4: memref<1x128xf32, #tpu.memory_space<vmem>>, %arg5: memref<1x128xf32, #tpu.memory_space<vmem>>, %arg6: memref<1x128xf32, #tpu.memory_space<vmem>>, %arg7: memref<1x128xf32, #tpu.memory_space<vmem>>, %arg8: memref<128x128xbf16, #tpu.memory_space<vmem>>, %arg9: memref<1x128xf32, #tpu.memory_space<vmem>>, %arg10: memref<1x1xf32, #tpu.memory_space<smem>>, %arg11: memref<8x4x128xf32, #tpu.memory_space<vmem>>) attributes {dimension_semantics = [], scalar_prefetch = 0 : i64, scratch_operands = 0 : i64, tpu.core_type = #tpu.core_type<tc>} {
    %c0 = arith.constant 0 : index
    %c0_0 = arith.constant 0 : index
    %0 = memref.load %arg10[%c0, %c0_0] : memref<1x1xf32, #tpu.memory_space<smem>>
    %c0_1 = arith.constant 0 : index
    %c0_2 = arith.constant 0 : index
    %1 = vector.load %arg2[%c0_1, %c0_2] : memref<128x384xbf16, #tpu.memory_space<vmem>>, vector<128x384xbf16>
    %2 = arith.extf %1 : vector<128x384xbf16> to vector<128x384xf32>
    %c0_3 = arith.constant 0 : index
    %c0_4 = arith.constant 0 : index
    %3 = vector.load %arg3[%c0_3, %c0_4] : memref<128x384xbf16, #tpu.memory_space<vmem>>, vector<128x384xbf16>
    %4 = arith.extf %3 : vector<128x384xbf16> to vector<128x384xf32>
    %c0_5 = arith.constant 0 : index
    %c0_6 = arith.constant 0 : index
    %5 = vector.load %arg8[%c0_5, %c0_6] : memref<128x128xbf16, #tpu.memory_space<vmem>>, vector<128x128xbf16>
    %6 = arith.extf %5 : vector<128x128xbf16> to vector<128x128xf32>
    %c0_7 = arith.constant 0 : index
    %c0_8 = arith.constant 0 : index
    %7 = vector.load %arg4[%c0_7, %c0_8] : memref<1x128xf32, #tpu.memory_space<vmem>>, vector<1x128xf32>
    %c0_9 = arith.constant 0 : index
    %c0_10 = arith.constant 0 : index
    %8 = vector.load %arg5[%c0_9, %c0_10] : memref<1x128xf32, #tpu.memory_space<vmem>>, vector<1x128xf32>
    %c0_11 = arith.constant 0 : index
    %c0_12 = arith.constant 0 : index
    %9 = vector.load %arg6[%c0_11, %c0_12] : memref<1x128xf32, #tpu.memory_space<vmem>>, vector<1x128xf32>
    %c0_13 = arith.constant 0 : index
    %c0_14 = arith.constant 0 : index
    %10 = vector.load %arg7[%c0_13, %c0_14] : memref<1x128xf32, #tpu.memory_space<vmem>>, vector<1x128xf32>
    %c0_15 = arith.constant 0 : index
    %c0_16 = arith.constant 0 : index
    %11 = vector.load %arg9[%c0_15, %c0_16] : memref<1x128xf32, #tpu.memory_space<vmem>>, vector<1x128xf32>
    %12 = tpu.iota {dimensions = array<i32: 1>} : vector<1x128xi32>
    %c64_i32 = arith.constant 64 : i32
    %13 = vector.broadcast %c64_i32 : i32 to vector<1x128xi32>
    %14 = arith.cmpi slt, %12, %13 : vector<1x128xi32>
    %15 = arith.extui %14 : vector<1x128xi1> to vector<1x128xi32>
    %16 = arith.sitofp %15 : vector<1x128xi32> to vector<1x128xf32>
    %c0_17 = arith.constant 0 : index
    %c0_18 = arith.constant 0 : index
    %17 = vector.load %arg1[%c0_17, %c0_18] : memref<4x128xf32, #tpu.memory_space<vmem>>, vector<4x128xf32>
    %c0_19 = arith.constant 0 : index
    %c0_20 = arith.constant 0 : index
    %c0_21 = arith.constant 0 : index
    %18 = vector.load %arg11[%c0_19, %c0_20, %c0_21] : memref<8x4x128xf32, #tpu.memory_space<vmem>>, vector<1x4x128xf32>
    %19 = vector.shape_cast %18 : vector<1x4x128xf32> to vector<4x128xf32>
    %20 = vector.shape_cast %17 : vector<4x128xf32> to vector<1x4x128xf32>
    tpu.vector_store %arg11[%c0_19, %c0_20, %c0_21], %20 {strides = array<i32>} : memref<8x4x128xf32, #tpu.memory_space<vmem>>, vector<1x4x128xf32>,
    %cst = arith.constant 0.000000e+00 : f32
    %21 = vector.broadcast %cst : f32 to vector<4x128xf32>
    %22 = arith.maximumf %17, %21 : vector<4x128xf32>
    %cst_22 = arith.constant 0.000000e+00 : f32
    %23 = vector.broadcast %cst_22 : f32 to vector<4x128xf32>
    %24 = arith.minimumf %17, %23 : vector<4x128xf32>
    %25 = vector.broadcast %0 : f32 to vector<4x128xf32>
    %26 = arith.mulf %25, %24 : vector<4x128xf32>
    %27 = arith.addf %22, %26 : vector<4x128xf32>
    %c0_23 = arith.constant 0 : index
    %c0_24 = arith.constant 0 : index
    %28 = vector.load %arg0[%c0_23, %c0_24] : memref<4x128xf32, #tpu.memory_space<vmem>>, vector<4x128xf32>
    %c1_i32 = arith.constant 1 : i32
    %cst_25 = arith.constant dense<0.000000e+00> : vector<4x384xf32>
    %29 = tpu.matmul %27, %2, %cst_25 {dimension_numbers = #tpu.dot_dimension_numbers<[1], [0], [0], [1], [0, 0, 1, 1], [], []>} : vector<4x128xf32>, vector<128x384xf32>, vector<4x384xf32> -> vector<4x384xf32>
    %cst_26 = arith.constant dense<0.000000e+00> : vector<4x384xf32>
    %30 = tpu.matmul %28, %4, %cst_26 {dimension_numbers = #tpu.dot_dimension_numbers<[1], [0], [0], [1], [0, 0, 1, 1], [], []>} : vector<4x128xf32>, vector<128x384xf32>, vector<4x384xf32> -> vector<4x384xf32>
    %31 = vector.extract_strided_slice %29 {offsets = [0, 0], sizes = [4, 128], strides = [1, 1]} : vector<4x384xf32> to vector<4x128xf32>
    %32 = vector.extract_strided_slice %30 {offsets = [0, 0], sizes = [4, 128], strides = [1, 1]} : vector<4x384xf32> to vector<4x128xf32>
    %33 = arith.addf %31, %32 : vector<4x128xf32>
    %34 = vector.broadcast %7 : vector<1x128xf32> to vector<4x128xf32>
    %35 = arith.addf %33, %34 : vector<4x128xf32>
    %36 = arith.negf %35 : vector<4x128xf32>
    %37 = math.exp %36 : vector<4x128xf32>
    %cst_27 = arith.constant 1.000000e+00 : f32
    %38 = vector.broadcast %cst_27 : f32 to vector<4x128xf32>
    %39 = arith.addf %38, %37 : vector<4x128xf32>
    %40 = arith.divf %38, %39 : vector<4x128xf32>
    %41 = vector.extract_strided_slice %29 {offsets = [0, 128], sizes = [4, 128], strides = [1, 1]} : vector<4x384xf32> to vector<4x128xf32>
    %42 = vector.extract_strided_slice %30 {offsets = [0, 128], sizes = [4, 128], strides = [1, 1]} : vector<4x384xf32> to vector<4x128xf32>
    %43 = arith.addf %41, %42 : vector<4x128xf32>
    %44 = vector.broadcast %8 : vector<1x128xf32> to vector<4x128xf32>
    %45 = arith.addf %43, %44 : vector<4x128xf32>
    %46 = arith.negf %45 : vector<4x128xf32>
    %47 = math.exp %46 : vector<4x128xf32>
    %cst_28 = arith.constant 1.000000e+00 : f32
    %48 = vector.broadcast %cst_28 : f32 to vector<4x128xf32>
    %49 = arith.addf %48, %47 : vector<4x128xf32>
    %50 = arith.divf %48, %49 : vector<4x128xf32>
    %51 = vector.extract_strided_slice %29 {offsets = [0, 256], sizes = [4, 128], strides = [1, 1]} : vector<4x384xf32> to vector<4x128xf32>
    %52 = vector.broadcast %9 : vector<1x128xf32> to vector<4x128xf32>
    %53 = arith.addf %51, %52 : vector<4x128xf32>
    %54 = vector.extract_strided_slice %30 {offsets = [0, 256], sizes = [4, 128], strides = [1, 1]} : vector<4x384xf32> to vector<4x128xf32>
    %55 = vector.broadcast %10 : vector<1x128xf32> to vector<4x128xf32>
    %56 = arith.addf %54, %55 : vector<4x128xf32>
    %57 = arith.mulf %40, %56 : vector<4x128xf32>
    %58 = arith.addf %53, %57 : vector<4x128xf32>
    %59 = math.tanh %58 : vector<4x128xf32>
    %cst_29 = arith.constant 1.000000e+00 : f32
    %60 = vector.broadcast %cst_29 : f32 to vector<4x128xf32>
    %61 = arith.subf %60, %50 : vector<4x128xf32>
    %62 = arith.mulf %61, %59 : vector<4x128xf32>
    %63 = arith.mulf %50, %28 : vector<4x128xf32>
    %64 = arith.addf %62, %63 : vector<4x128xf32>
    %cst_30 = arith.constant dense<0.000000e+00> : vector<4x128xf32>
    %65 = tpu.matmul %64, %6, %cst_30 {dimension_numbers = #tpu.dot_dimension_numbers<[1], [0], [0], [1], [0, 0, 1, 1], [], []>} : vector<4x128xf32>, vector<128x128xf32>, vector<4x128xf32> -> vector<4x128xf32>
    %66 = vector.broadcast %11 : vector<1x128xf32> to vector<4x128xf32>
    %67 = arith.addf %65, %66 : vector<4x128xf32>
    %cst_31 = arith.constant 0.000000e+00 : f32
    %68 = vector.broadcast %cst_31 : f32 to vector<4x128xf32>
    %69 = arith.maximumf %67, %68 : vector<4x128xf32>
    %cst_32 = arith.constant 0.000000e+00 : f32
    %70 = vector.broadcast %cst_32 : f32 to vector<4x128xf32>
    %71 = arith.minimumf %67, %70 : vector<4x128xf32>
    %72 = vector.broadcast %0 : f32 to vector<4x128xf32>
    %73 = arith.mulf %72, %71 : vector<4x128xf32>
    %74 = arith.addf %69, %73 : vector<4x128xf32>
    %cst_33 = arith.constant dense<0xFF800000> : vector<4xf32>
    %75 = vector.multi_reduction <maximumf>, %74, %cst_33 [1] : vector<4x128xf32> to vector<4xf32>
    %76 = vector.shape_cast %75 : vector<4xf32> to vector<4x1xf32>
    %77 = vector.broadcast %76 : vector<4x1xf32> to vector<4x128xf32>
    %78 = arith.subf %74, %77 : vector<4x128xf32>
    %79 = math.exp %78 : vector<4x128xf32>
    %80 = vector.broadcast %16 : vector<1x128xf32> to vector<4x128xf32>
    %81 = arith.mulf %79, %80 : vector<4x128xf32>
    %cst_34 = arith.constant dense<0.000000e+00> : vector<4xf32>
    %82 = vector.multi_reduction <add>, %81, %cst_34 [1] : vector<4x128xf32> to vector<4xf32>
    %83 = vector.shape_cast %82 : vector<4xf32> to vector<4x1xf32>
    %84 = tpu.reciprocal %83 {approx = true} : vector<4x1xf32> -> vector<4x1xf32>
    %85 = vector.broadcast %84 : vector<4x1xf32> to vector<4x128xf32>
    %86 = arith.mulf %81, %85 : vector<4x128xf32>
    %87 = arith.index_cast %c1_i32 : i32 to index
    %c0_35 = arith.constant 0 : index
    %c0_36 = arith.constant 0 : index
    %88 = vector.load %arg11[%87, %c0_35, %c0_36] : memref<8x4x128xf32, #tpu.memory_space<vmem>>, vector<1x4x128xf32>
    %89 = vector.shape_cast %88 : vector<1x4x128xf32> to vector<4x128xf32>
    %90 = vector.shape_cast %86 : vector<4x128xf32> to vector<1x4x128xf32>
    tpu.vector_store %arg11[%87, %c0_35, %c0_36], %90 {strides = array<i32>} : memref<8x4x128xf32, #tpu.memory_space<vmem>>, vector<1x4x128xf32>,
    %c2_i32 = arith.constant 2 : i32
    %cst_37 = arith.constant dense<0.000000e+00> : vector<4x384xf32>
    %91 = tpu.matmul %86, %2, %cst_37 {dimension_numbers = #tpu.dot_dimension_numbers<[1], [0], [0], [1], [0, 0, 1, 1], [], []>} : vector<4x128xf32>, vector<128x384xf32>, vector<4x384xf32> -> vector<4x384xf32>
    %cst_38 = arith.constant dense<0.000000e+00> : vector<4x384xf32>
    %92 = tpu.matmul %64, %4, %cst_38 {dimension_numbers = #tpu.dot_dimension_numbers<[1], [0], [0], [1], [0, 0, 1, 1], [], []>} : vector<4x128xf32>, vector<128x384xf32>, vector<4x384xf32> -> vector<4x384xf32>
    %93 = vector.extract_strided_slice %91 {offsets = [0, 0], sizes = [4, 128], strides = [1, 1]} : vector<4x384xf32> to vector<4x128xf32>
    %94 = vector.extract_strided_slice %92 {offsets = [0, 0], sizes = [4, 128], strides = [1, 1]} : vector<4x384xf32> to vector<4x128xf32>
    %95 = arith.addf %93, %94 : vector<4x128xf32>
    %96 = vector.broadcast %7 : vector<1x128xf32> to vector<4x128xf32>
    %97 = arith.addf %95, %96 : vector<4x128xf32>
    %98 = arith.negf %97 : vector<4x128xf32>
    %99 = math.exp %98 : vector<4x128xf32>
    %cst_39 = arith.constant 1.000000e+00 : f32
    %100 = vector.broadcast %cst_39 : f32 to vector<4x128xf32>
    %101 = arith.addf %100, %99 : vector<4x128xf32>
    %102 = arith.divf %100, %101 : vector<4x128xf32>
    %103 = vector.extract_strided_slice %91 {offsets = [0, 128], sizes = [4, 128], strides = [1, 1]} : vector<4x384xf32> to vector<4x128xf32>
    %104 = vector.extract_strided_slice %92 {offsets = [0, 128], sizes = [4, 128], strides = [1, 1]} : vector<4x384xf32> to vector<4x128xf32>
    %105 = arith.addf %103, %104 : vector<4x128xf32>
    %106 = vector.broadcast %8 : vector<1x128xf32> to vector<4x128xf32>
    %107 = arith.addf %105, %106 : vector<4x128xf32>
    %108 = arith.negf %107 : vector<4x128xf32>
    %109 = math.exp %108 : vector<4x128xf32>
    %cst_40 = arith.constant 1.000000e+00 : f32
    %110 = vector.broadcast %cst_40 : f32 to vector<4x128xf32>
    %111 = arith.addf %110, %109 : vector<4x128xf32>
    %112 = arith.divf %110, %111 : vector<4x128xf32>
    %113 = vector.extract_strided_slice %91 {offsets = [0, 256], sizes = [4, 128], strides = [1, 1]} : vector<4x384xf32> to vector<4x128xf32>
    %114 = vector.broadcast %9 : vector<1x128xf32> to vector<4x128xf32>
    %115 = arith.addf %113, %114 : vector<4x128xf32>
    %116 = vector.extract_strided_slice %92 {offsets = [0, 256], sizes = [4, 128], strides = [1, 1]} : vector<4x384xf32> to vector<4x128xf32>
    %117 = vector.broadcast %10 : vector<1x128xf32> to vector<4x128xf32>
    %118 = arith.addf %116, %117 : vector<4x128xf32>
    %119 = arith.mulf %102, %118 : vector<4x128xf32>
    %120 = arith.addf %115, %119 : vector<4x128xf32>
    %121 = math.tanh %120 : vector<4x128xf32>
    %cst_41 = arith.constant 1.000000e+00 : f32
    %122 = vector.broadcast %cst_41 : f32 to vector<4x128xf32>
    %123 = arith.subf %122, %112 : vector<4x128xf32>
    %124 = arith.mulf %123, %121 : vector<4x128xf32>
    %125 = arith.mulf %112, %64 : vector<4x128xf32>
    %126 = arith.addf %124, %125 : vector<4x128xf32>
    %cst_42 = arith.constant dense<0.000000e+00> : vector<4x128xf32>
    %127 = tpu.matmul %126, %6, %cst_42 {dimension_numbers = #tpu.dot_dimension_numbers<[1], [0], [0], [1], [0, 0, 1, 1], [], []>} : vector<4x128xf32>, vector<128x128xf32>, vector<4x128xf32> -> vector<4x128xf32>
    %128 = vector.broadcast %11 : vector<1x128xf32> to vector<4x128xf32>
    %129 = arith.addf %127, %128 : vector<4x128xf32>
    %cst_43 = arith.constant 0.000000e+00 : f32
    %130 = vector.broadcast %cst_43 : f32 to vector<4x128xf32>
    %131 = arith.maximumf %129, %130 : vector<4x128xf32>
    %cst_44 = arith.constant 0.000000e+00 : f32
    %132 = vector.broadcast %cst_44 : f32 to vector<4x128xf32>
    %133 = arith.minimumf %129, %132 : vector<4x128xf32>
    %134 = vector.broadcast %0 : f32 to vector<4x128xf32>
    %135 = arith.mulf %134, %133 : vector<4x128xf32>
    %136 = arith.addf %131, %135 : vector<4x128xf32>
    %cst_45 = arith.constant dense<0xFF800000> : vector<4xf32>
    %137 = vector.multi_reduction <maximumf>, %136, %cst_45 [1] : vector<4x128xf32> to vector<4xf32>
    %138 = vector.shape_cast %137 : vector<4xf32> to vector<4x1xf32>
    %139 = vector.broadcast %138 : vector<4x1xf32> to vector<4x128xf32>
    %140 = arith.subf %136, %139 : vector<4x128xf32>
    %141 = math.exp %140 : vector<4x128xf32>
    %142 = vector.broadcast %16 : vector<1x128xf32> to vector<4x128xf32>
    %143 = arith.mulf %141, %142 : vector<4x128xf32>
    %cst_46 = arith.constant dense<0.000000e+00> : vector<4xf32>
    %144 = vector.multi_reduction <add>, %143, %cst_46 [1] : vector<4x128xf32> to vector<4xf32>
    %145 = vector.shape_cast %144 : vector<4xf32> to vector<4x1xf32>
    %146 = tpu.reciprocal %145 {approx = true} : vector<4x1xf32> -> vector<4x1xf32>
    %147 = vector.broadcast %146 : vector<4x1xf32> to vector<4x128xf32>
    %148 = arith.mulf %143, %147 : vector<4x128xf32>
    %149 = arith.index_cast %c2_i32 : i32 to index
    %c0_47 = arith.constant 0 : index
    %c0_48 = arith.constant 0 : index
    %150 = vector.load %arg11[%149, %c0_47, %c0_48] : memref<8x4x128xf32, #tpu.memory_space<vmem>>, vector<1x4x128xf32>
    %151 = vector.shape_cast %150 : vector<1x4x128xf32> to vector<4x128xf32>
    %152 = vector.shape_cast %148 : vector<4x128xf32> to vector<1x4x128xf32>
    tpu.vector_store %arg11[%149, %c0_47, %c0_48], %152 {strides = array<i32>} : memref<8x4x128xf32, #tpu.memory_space<vmem>>, vector<1x4x128xf32>,
    %c3_i32 = arith.constant 3 : i32
    %cst_49 = arith.constant dense<0.000000e+00> : vector<4x384xf32>
    %153 = tpu.matmul %148, %2, %cst_49 {dimension_numbers = #tpu.dot_dimension_numbers<[1], [0], [0], [1], [0, 0, 1, 1], [], []>} : vector<4x128xf32>, vector<128x384xf32>, vector<4x384xf32> -> vector<4x384xf32>
    %cst_50 = arith.constant dense<0.000000e+00> : vector<4x384xf32>
    %154 = tpu.matmul %126, %4, %cst_50 {dimension_numbers = #tpu.dot_dimension_numbers<[1], [0], [0], [1], [0, 0, 1, 1], [], []>} : vector<4x128xf32>, vector<128x384xf32>, vector<4x384xf32> -> vector<4x384xf32>
    %155 = vector.extract_strided_slice %153 {offsets = [0, 0], sizes = [4, 128], strides = [1, 1]} : vector<4x384xf32> to vector<4x128xf32>
    %156 = vector.extract_strided_slice %154 {offsets = [0, 0], sizes = [4, 128], strides = [1, 1]} : vector<4x384xf32> to vector<4x128xf32>
    %157 = arith.addf %155, %156 : vector<4x128xf32>
    %158 = vector.broadcast %7 : vector<1x128xf32> to vector<4x128xf32>
    %159 = arith.addf %157, %158 : vector<4x128xf32>
    %160 = arith.negf %159 : vector<4x128xf32>
    %161 = math.exp %160 : vector<4x128xf32>
    %cst_51 = arith.constant 1.000000e+00 : f32
    %162 = vector.broadcast %cst_51 : f32 to vector<4x128xf32>
    %163 = arith.addf %162, %161 : vector<4x128xf32>
    %164 = arith.divf %162, %163 : vector<4x128xf32>
    %165 = vector.extract_strided_slice %153 {offsets = [0, 128], sizes = [4, 128], strides = [1, 1]} : vector<4x384xf32> to vector<4x128xf32>
    %166 = vector.extract_strided_slice %154 {offsets = [0, 128], sizes = [4, 128], strides = [1, 1]} : vector<4x384xf32> to vector<4x128xf32>
    %167 = arith.addf %165, %166 : vector<4x128xf32>
    %168 = vector.broadcast %8 : vector<1x128xf32> to vector<4x128xf32>
    %169 = arith.addf %167, %168 : vector<4x128xf32>
    %170 = arith.negf %169 : vector<4x128xf32>
    %171 = math.exp %170 : vector<4x128xf32>
    %cst_52 = arith.constant 1.000000e+00 : f32
    %172 = vector.broadcast %cst_52 : f32 to vector<4x128xf32>
    %173 = arith.addf %172, %171 : vector<4x128xf32>
    %174 = arith.divf %172, %173 : vector<4x128xf32>
    %175 = vector.extract_strided_slice %153 {offsets = [0, 256], sizes = [4, 128], strides = [1, 1]} : vector<4x384xf32> to vector<4x128xf32>
    %176 = vector.broadcast %9 : vector<1x128xf32> to vector<4x128xf32>
    %177 = arith.addf %175, %176 : vector<4x128xf32>
    %178 = vector.extract_strided_slice %154 {offsets = [0, 256], sizes = [4, 128], strides = [1, 1]} : vector<4x384xf32> to vector<4x128xf32>
    %179 = vector.broadcast %10 : vector<1x128xf32> to vector<4x128xf32>
    %180 = arith.addf %178, %179 : vector<4x128xf32>
    %181 = arith.mulf %164, %180 : vector<4x128xf32>
    %182 = arith.addf %177, %181 : vector<4x128xf32>
    %183 = math.tanh %182 : vector<4x128xf32>
    %cst_53 = arith.constant 1.000000e+00 : f32
    %184 = vector.broadcast %cst_53 : f32 to vector<4x128xf32>
    %185 = arith.subf %184, %174 : vector<4x128xf32>
    %186 = arith.mulf %185, %183 : vector<4x128xf32>
    %187 = arith.mulf %174, %126 : vector<4x128xf32>
    %188 = arith.addf %186, %187 : vector<4x128xf32>
    %cst_54 = arith.constant dense<0.000000e+00> : vector<4x128xf32>
    %189 = tpu.matmul %188, %6, %cst_54 {dimension_numbers = #tpu.dot_dimension_numbers<[1], [0], [0], [1], [0, 0, 1, 1], [], []>} : vector<4x128xf32>, vector<128x128xf32>, vector<4x128xf32> -> vector<4x128xf32>
    %190 = vector.broadcast %11 : vector<1x128xf32> to vector<4x128xf32>
    %191 = arith.addf %189, %190 : vector<4x128xf32>
    %cst_55 = arith.constant 0.000000e+00 : f32
    %192 = vector.broadcast %cst_55 : f32 to vector<4x128xf32>
    %193 = arith.maximumf %191, %192 : vector<4x128xf32>
    %cst_56 = arith.constant 0.000000e+00 : f32
    %194 = vector.broadcast %cst_56 : f32 to vector<4x128xf32>
    %195 = arith.minimumf %191, %194 : vector<4x128xf32>
    %196 = vector.broadcast %0 : f32 to vector<4x128xf32>
    %197 = arith.mulf %196, %195 : vector<4x128xf32>
    %198 = arith.addf %193, %197 : vector<4x128xf32>
    %cst_57 = arith.constant dense<0xFF800000> : vector<4xf32>
    %199 = vector.multi_reduction <maximumf>, %198, %cst_57 [1] : vector<4x128xf32> to vector<4xf32>
    %200 = vector.shape_cast %199 : vector<4xf32> to vector<4x1xf32>
    %201 = vector.broadcast %200 : vector<4x1xf32> to vector<4x128xf32>
    %202 = arith.subf %198, %201 : vector<4x128xf32>
    %203 = math.exp %202 : vector<4x128xf32>
    %204 = vector.broadcast %16 : vector<1x128xf32> to vector<4x128xf32>
    %205 = arith.mulf %203, %204 : vector<4x128xf32>
    %cst_58 = arith.constant dense<0.000000e+00> : vector<4xf32>
    %206 = vector.multi_reduction <add>, %205, %cst_58 [1] : vector<4x128xf32> to vector<4xf32>
    %207 = vector.shape_cast %206 : vector<4xf32> to vector<4x1xf32>
    %208 = tpu.reciprocal %207 {approx = true} : vector<4x1xf32> -> vector<4x1xf32>
    %209 = vector.broadcast %208 : vector<4x1xf32> to vector<4x128xf32>
    %210 = arith.mulf %205, %209 : vector<4x128xf32>
    %211 = arith.index_cast %c3_i32 : i32 to index
    %c0_59 = arith.constant 0 : index
    %c0_60 = arith.constant 0 : index
    %212 = vector.load %arg11[%211, %c0_59, %c0_60] : memref<8x4x128xf32, #tpu.memory_space<vmem>>, vector<1x4x128xf32>
    %213 = vector.shape_cast %212 : vector<1x4x128xf32> to vector<4x128xf32>
    %214 = vector.shape_cast %210 : vector<4x128xf32> to vector<1x4x128xf32>
    tpu.vector_store %arg11[%211, %c0_59, %c0_60], %214 {strides = array<i32>} : memref<8x4x128xf32, #tpu.memory_space<vmem>>, vector<1x4x128xf32>,
    %c4_i32 = arith.constant 4 : i32
    %cst_61 = arith.constant dense<0.000000e+00> : vector<4x384xf32>
    %215 = tpu.matmul %210, %2, %cst_61 {dimension_numbers = #tpu.dot_dimension_numbers<[1], [0], [0], [1], [0, 0, 1, 1], [], []>} : vector<4x128xf32>, vector<128x384xf32>, vector<4x384xf32> -> vector<4x384xf32>
    %cst_62 = arith.constant dense<0.000000e+00> : vector<4x384xf32>
    %216 = tpu.matmul %188, %4, %cst_62 {dimension_numbers = #tpu.dot_dimension_numbers<[1], [0], [0], [1], [0, 0, 1, 1], [], []>} : vector<4x128xf32>, vector<128x384xf32>, vector<4x384xf32> -> vector<4x384xf32>
    %217 = vector.extract_strided_slice %215 {offsets = [0, 0], sizes = [4, 128], strides = [1, 1]} : vector<4x384xf32> to vector<4x128xf32>
    %218 = vector.extract_strided_slice %216 {offsets = [0, 0], sizes = [4, 128], strides = [1, 1]} : vector<4x384xf32> to vector<4x128xf32>
    %219 = arith.addf %217, %218 : vector<4x128xf32>
    %220 = vector.broadcast %7 : vector<1x128xf32> to vector<4x128xf32>
    %221 = arith.addf %219, %220 : vector<4x128xf32>
    %222 = arith.negf %221 : vector<4x128xf32>
    %223 = math.exp %222 : vector<4x128xf32>
    %cst_63 = arith.constant 1.000000e+00 : f32
    %224 = vector.broadcast %cst_63 : f32 to vector<4x128xf32>
    %225 = arith.addf %224, %223 : vector<4x128xf32>
    %226 = arith.divf %224, %225 : vector<4x128xf32>
    %227 = vector.extract_strided_slice %215 {offsets = [0, 128], sizes = [4, 128], strides = [1, 1]} : vector<4x384xf32> to vector<4x128xf32>
    %228 = vector.extract_strided_slice %216 {offsets = [0, 128], sizes = [4, 128], strides = [1, 1]} : vector<4x384xf32> to vector<4x128xf32>
    %229 = arith.addf %227, %228 : vector<4x128xf32>
    %230 = vector.broadcast %8 : vector<1x128xf32> to vector<4x128xf32>
    %231 = arith.addf %229, %230 : vector<4x128xf32>
    %232 = arith.negf %231 : vector<4x128xf32>
    %233 = math.exp %232 : vector<4x128xf32>
    %cst_64 = arith.constant 1.000000e+00 : f32
    %234 = vector.broadcast %cst_64 : f32 to vector<4x128xf32>
    %235 = arith.addf %234, %233 : vector<4x128xf32>
    %236 = arith.divf %234, %235 : vector<4x128xf32>
    %237 = vector.extract_strided_slice %215 {offsets = [0, 256], sizes = [4, 128], strides = [1, 1]} : vector<4x384xf32> to vector<4x128xf32>
    %238 = vector.broadcast %9 : vector<1x128xf32> to vector<4x128xf32>
    %239 = arith.addf %237, %238 : vector<4x128xf32>
    %240 = vector.extract_strided_slice %216 {offsets = [0, 256], sizes = [4, 128], strides = [1, 1]} : vector<4x384xf32> to vector<4x128xf32>
    %241 = vector.broadcast %10 : vector<1x128xf32> to vector<4x128xf32>
    %242 = arith.addf %240, %241 : vector<4x128xf32>
    %243 = arith.mulf %226, %242 : vector<4x128xf32>
    %244 = arith.addf %239, %243 : vector<4x128xf32>
    %245 = math.tanh %244 : vector<4x128xf32>
    %cst_65 = arith.constant 1.000000e+00 : f32
    %246 = vector.broadcast %cst_65 : f32 to vector<4x128xf32>
    %247 = arith.subf %246, %236 : vector<4x128xf32>
    %248 = arith.mulf %247, %245 : vector<4x128xf32>
    %249 = arith.mulf %236, %188 : vector<4x128xf32>
    %250 = arith.addf %248, %249 : vector<4x128xf32>
    %cst_66 = arith.constant dense<0.000000e+00> : vector<4x128xf32>
    %251 = tpu.matmul %250, %6, %cst_66 {dimension_numbers = #tpu.dot_dimension_numbers<[1], [0], [0], [1], [0, 0, 1, 1], [], []>} : vector<4x128xf32>, vector<128x128xf32>, vector<4x128xf32> -> vector<4x128xf32>
    %252 = vector.broadcast %11 : vector<1x128xf32> to vector<4x128xf32>
    %253 = arith.addf %251, %252 : vector<4x128xf32>
    %cst_67 = arith.constant 0.000000e+00 : f32
    %254 = vector.broadcast %cst_67 : f32 to vector<4x128xf32>
    %255 = arith.maximumf %253, %254 : vector<4x128xf32>
    %cst_68 = arith.constant 0.000000e+00 : f32
    %256 = vector.broadcast %cst_68 : f32 to vector<4x128xf32>
    %257 = arith.minimumf %253, %256 : vector<4x128xf32>
    %258 = vector.broadcast %0 : f32 to vector<4x128xf32>
    %259 = arith.mulf %258, %257 : vector<4x128xf32>
    %260 = arith.addf %255, %259 : vector<4x128xf32>
    %cst_69 = arith.constant dense<0xFF800000> : vector<4xf32>
    %261 = vector.multi_reduction <maximumf>, %260, %cst_69 [1] : vector<4x128xf32> to vector<4xf32>
    %262 = vector.shape_cast %261 : vector<4xf32> to vector<4x1xf32>
    %263 = vector.broadcast %262 : vector<4x1xf32> to vector<4x128xf32>
    %264 = arith.subf %260, %263 : vector<4x128xf32>
    %265 = math.exp %264 : vector<4x128xf32>
    %266 = vector.broadcast %16 : vector<1x128xf32> to vector<4x128xf32>
    %267 = arith.mulf %265, %266 : vector<4x128xf32>
    %cst_70 = arith.constant dense<0.000000e+00> : vector<4xf32>
    %268 = vector.multi_reduction <add>, %267, %cst_70 [1] : vector<4x128xf32> to vector<4xf32>
    %269 = vector.shape_cast %268 : vector<4xf32> to vector<4x1xf32>
    %270 = tpu.reciprocal %269 {approx = true} : vector<4x1xf32> -> vector<4x1xf32>
    %271 = vector.broadcast %270 : vector<4x1xf32> to vector<4x128xf32>
    %272 = arith.mulf %267, %271 : vector<4x128xf32>
    %273 = arith.index_cast %c4_i32 : i32 to index
    %c0_71 = arith.constant 0 : index
    %c0_72 = arith.constant 0 : index
    %274 = vector.load %arg11[%273, %c0_71, %c0_72] : memref<8x4x128xf32, #tpu.memory_space<vmem>>, vector<1x4x128xf32>
    %275 = vector.shape_cast %274 : vector<1x4x128xf32> to vector<4x128xf32>
    %276 = vector.shape_cast %272 : vector<4x128xf32> to vector<1x4x128xf32>
    tpu.vector_store %arg11[%273, %c0_71, %c0_72], %276 {strides = array<i32>} : memref<8x4x128xf32, #tpu.memory_space<vmem>>, vector<1x4x128xf32>,
    %c5_i32 = arith.constant 5 : i32
    %cst_73 = arith.constant dense<0.000000e+00> : vector<4x384xf32>
    %277 = tpu.matmul %272, %2, %cst_73 {dimension_numbers = #tpu.dot_dimension_numbers<[1], [0], [0], [1], [0, 0, 1, 1], [], []>} : vector<4x128xf32>, vector<128x384xf32>, vector<4x384xf32> -> vector<4x384xf32>
    %cst_74 = arith.constant dense<0.000000e+00> : vector<4x384xf32>
    %278 = tpu.matmul %250, %4, %cst_74 {dimension_numbers = #tpu.dot_dimension_numbers<[1], [0], [0], [1], [0, 0, 1, 1], [], []>} : vector<4x128xf32>, vector<128x384xf32>, vector<4x384xf32> -> vector<4x384xf32>
    %279 = vector.extract_strided_slice %277 {offsets = [0, 0], sizes = [4, 128], strides = [1, 1]} : vector<4x384xf32> to vector<4x128xf32>
    %280 = vector.extract_strided_slice %278 {offsets = [0, 0], sizes = [4, 128], strides = [1, 1]} : vector<4x384xf32> to vector<4x128xf32>
    %281 = arith.addf %279, %280 : vector<4x128xf32>
    %282 = vector.broadcast %7 : vector<1x128xf32> to vector<4x128xf32>
    %283 = arith.addf %281, %282 : vector<4x128xf32>
    %284 = arith.negf %283 : vector<4x128xf32>
    %285 = math.exp %284 : vector<4x128xf32>
    %cst_75 = arith.constant 1.000000e+00 : f32
    %286 = vector.broadcast %cst_75 : f32 to vector<4x128xf32>
    %287 = arith.addf %286, %285 : vector<4x128xf32>
    %288 = arith.divf %286, %287 : vector<4x128xf32>
    %289 = vector.extract_strided_slice %277 {offsets = [0, 128], sizes = [4, 128], strides = [1, 1]} : vector<4x384xf32> to vector<4x128xf32>
    %290 = vector.extract_strided_slice %278 {offsets = [0, 128], sizes = [4, 128], strides = [1, 1]} : vector<4x384xf32> to vector<4x128xf32>
    %291 = arith.addf %289, %290 : vector<4x128xf32>
    %292 = vector.broadcast %8 : vector<1x128xf32> to vector<4x128xf32>
    %293 = arith.addf %291, %292 : vector<4x128xf32>
    %294 = arith.negf %293 : vector<4x128xf32>
    %295 = math.exp %294 : vector<4x128xf32>
    %cst_76 = arith.constant 1.000000e+00 : f32
    %296 = vector.broadcast %cst_76 : f32 to vector<4x128xf32>
    %297 = arith.addf %296, %295 : vector<4x128xf32>
    %298 = arith.divf %296, %297 : vector<4x128xf32>
    %299 = vector.extract_strided_slice %277 {offsets = [0, 256], sizes = [4, 128], strides = [1, 1]} : vector<4x384xf32> to vector<4x128xf32>
    %300 = vector.broadcast %9 : vector<1x128xf32> to vector<4x128xf32>
    %301 = arith.addf %299, %300 : vector<4x128xf32>
    %302 = vector.extract_strided_slice %278 {offsets = [0, 256], sizes = [4, 128], strides = [1, 1]} : vector<4x384xf32> to vector<4x128xf32>
    %303 = vector.broadcast %10 : vector<1x128xf32> to vector<4x128xf32>
    %304 = arith.addf %302, %303 : vector<4x128xf32>
    %305 = arith.mulf %288, %304 : vector<4x128xf32>
    %306 = arith.addf %301, %305 : vector<4x128xf32>
    %307 = math.tanh %306 : vector<4x128xf32>
    %cst_77 = arith.constant 1.000000e+00 : f32
    %308 = vector.broadcast %cst_77 : f32 to vector<4x128xf32>
    %309 = arith.subf %308, %298 : vector<4x128xf32>
    %310 = arith.mulf %309, %307 : vector<4x128xf32>
    %311 = arith.mulf %298, %250 : vector<4x128xf32>
    %312 = arith.addf %310, %311 : vector<4x128xf32>
    %cst_78 = arith.constant dense<0.000000e+00> : vector<4x128xf32>
    %313 = tpu.matmul %312, %6, %cst_78 {dimension_numbers = #tpu.dot_dimension_numbers<[1], [0], [0], [1], [0, 0, 1, 1], [], []>} : vector<4x128xf32>, vector<128x128xf32>, vector<4x128xf32> -> vector<4x128xf32>
    %314 = vector.broadcast %11 : vector<1x128xf32> to vector<4x128xf32>
    %315 = arith.addf %313, %314 : vector<4x128xf32>
    %cst_79 = arith.constant 0.000000e+00 : f32
    %316 = vector.broadcast %cst_79 : f32 to vector<4x128xf32>
    %317 = arith.maximumf %315, %316 : vector<4x128xf32>
    %cst_80 = arith.constant 0.000000e+00 : f32
    %318 = vector.broadcast %cst_80 : f32 to vector<4x128xf32>
    %319 = arith.minimumf %315, %318 : vector<4x128xf32>
    %320 = vector.broadcast %0 : f32 to vector<4x128xf32>
    %321 = arith.mulf %320, %319 : vector<4x128xf32>
    %322 = arith.addf %317, %321 : vector<4x128xf32>
    %cst_81 = arith.constant dense<0xFF800000> : vector<4xf32>
    %323 = vector.multi_reduction <maximumf>, %322, %cst_81 [1] : vector<4x128xf32> to vector<4xf32>
    %324 = vector.shape_cast %323 : vector<4xf32> to vector<4x1xf32>
    %325 = vector.broadcast %324 : vector<4x1xf32> to vector<4x128xf32>
    %326 = arith.subf %322, %325 : vector<4x128xf32>
    %327 = math.exp %326 : vector<4x128xf32>
    %328 = vector.broadcast %16 : vector<1x128xf32> to vector<4x128xf32>
    %329 = arith.mulf %327, %328 : vector<4x128xf32>
    %cst_82 = arith.constant dense<0.000000e+00> : vector<4xf32>
    %330 = vector.multi_reduction <add>, %329, %cst_82 [1] : vector<4x128xf32> to vector<4xf32>
    %331 = vector.shape_cast %330 : vector<4xf32> to vector<4x1xf32>
    %332 = tpu.reciprocal %331 {approx = true} : vector<4x1xf32> -> vector<4x1xf32>
    %333 = vector.broadcast %332 : vector<4x1xf32> to vector<4x128xf32>
    %334 = arith.mulf %329, %333 : vector<4x128xf32>
    %335 = arith.index_cast %c5_i32 : i32 to index
    %c0_83 = arith.constant 0 : index
    %c0_84 = arith.constant 0 : index
    %336 = vector.load %arg11[%335, %c0_83, %c0_84] : memref<8x4x128xf32, #tpu.memory_space<vmem>>, vector<1x4x128xf32>
    %337 = vector.shape_cast %336 : vector<1x4x128xf32> to vector<4x128xf32>
    %338 = vector.shape_cast %334 : vector<4x128xf32> to vector<1x4x128xf32>
    tpu.vector_store %arg11[%335, %c0_83, %c0_84], %338 {strides = array<i32>} : memref<8x4x128xf32, #tpu.memory_space<vmem>>, vector<1x4x128xf32>,
    %c6_i32 = arith.constant 6 : i32
    %cst_85 = arith.constant dense<0.000000e+00> : vector<4x384xf32>
    %339 = tpu.matmul %334, %2, %cst_85 {dimension_numbers = #tpu.dot_dimension_numbers<[1], [0], [0], [1], [0, 0, 1, 1], [], []>} : vector<4x128xf32>, vector<128x384xf32>, vector<4x384xf32> -> vector<4x384xf32>
    %cst_86 = arith.constant dense<0.000000e+00> : vector<4x384xf32>
    %340 = tpu.matmul %312, %4, %cst_86 {dimension_numbers = #tpu.dot_dimension_numbers<[1], [0], [0], [1], [0, 0, 1, 1], [], []>} : vector<4x128xf32>, vector<128x384xf32>, vector<4x384xf32> -> vector<4x384xf32>
    %341 = vector.extract_strided_slice %339 {offsets = [0, 0], sizes = [4, 128], strides = [1, 1]} : vector<4x384xf32> to vector<4x128xf32>
    %342 = vector.extract_strided_slice %340 {offsets = [0, 0], sizes = [4, 128], strides = [1, 1]} : vector<4x384xf32> to vector<4x128xf32>
    %343 = arith.addf %341, %342 : vector<4x128xf32>
    %344 = vector.broadcast %7 : vector<1x128xf32> to vector<4x128xf32>
    %345 = arith.addf %343, %344 : vector<4x128xf32>
    %346 = arith.negf %345 : vector<4x128xf32>
    %347 = math.exp %346 : vector<4x128xf32>
    %cst_87 = arith.constant 1.000000e+00 : f32
    %348 = vector.broadcast %cst_87 : f32 to vector<4x128xf32>
    %349 = arith.addf %348, %347 : vector<4x128xf32>
    %350 = arith.divf %348, %349 : vector<4x128xf32>
    %351 = vector.extract_strided_slice %339 {offsets = [0, 128], sizes = [4, 128], strides = [1, 1]} : vector<4x384xf32> to vector<4x128xf32>
    %352 = vector.extract_strided_slice %340 {offsets = [0, 128], sizes = [4, 128], strides = [1, 1]} : vector<4x384xf32> to vector<4x128xf32>
    %353 = arith.addf %351, %352 : vector<4x128xf32>
    %354 = vector.broadcast %8 : vector<1x128xf32> to vector<4x128xf32>
    %355 = arith.addf %353, %354 : vector<4x128xf32>
    %356 = arith.negf %355 : vector<4x128xf32>
    %357 = math.exp %356 : vector<4x128xf32>
    %cst_88 = arith.constant 1.000000e+00 : f32
    %358 = vector.broadcast %cst_88 : f32 to vector<4x128xf32>
    %359 = arith.addf %358, %357 : vector<4x128xf32>
    %360 = arith.divf %358, %359 : vector<4x128xf32>
    %361 = vector.extract_strided_slice %339 {offsets = [0, 256], sizes = [4, 128], strides = [1, 1]} : vector<4x384xf32> to vector<4x128xf32>
    %362 = vector.broadcast %9 : vector<1x128xf32> to vector<4x128xf32>
    %363 = arith.addf %361, %362 : vector<4x128xf32>
    %364 = vector.extract_strided_slice %340 {offsets = [0, 256], sizes = [4, 128], strides = [1, 1]} : vector<4x384xf32> to vector<4x128xf32>
    %365 = vector.broadcast %10 : vector<1x128xf32> to vector<4x128xf32>
    %366 = arith.addf %364, %365 : vector<4x128xf32>
    %367 = arith.mulf %350, %366 : vector<4x128xf32>
    %368 = arith.addf %363, %367 : vector<4x128xf32>
    %369 = math.tanh %368 : vector<4x128xf32>
    %cst_89 = arith.constant 1.000000e+00 : f32
    %370 = vector.broadcast %cst_89 : f32 to vector<4x128xf32>
    %371 = arith.subf %370, %360 : vector<4x128xf32>
    %372 = arith.mulf %371, %369 : vector<4x128xf32>
    %373 = arith.mulf %360, %312 : vector<4x128xf32>
    %374 = arith.addf %372, %373 : vector<4x128xf32>
    %cst_90 = arith.constant dense<0.000000e+00> : vector<4x128xf32>
    %375 = tpu.matmul %374, %6, %cst_90 {dimension_numbers = #tpu.dot_dimension_numbers<[1], [0], [0], [1], [0, 0, 1, 1], [], []>} : vector<4x128xf32>, vector<128x128xf32>, vector<4x128xf32> -> vector<4x128xf32>
    %376 = vector.broadcast %11 : vector<1x128xf32> to vector<4x128xf32>
    %377 = arith.addf %375, %376 : vector<4x128xf32>
    %cst_91 = arith.constant 0.000000e+00 : f32
    %378 = vector.broadcast %cst_91 : f32 to vector<4x128xf32>
    %379 = arith.maximumf %377, %378 : vector<4x128xf32>
    %cst_92 = arith.constant 0.000000e+00 : f32
    %380 = vector.broadcast %cst_92 : f32 to vector<4x128xf32>
    %381 = arith.minimumf %377, %380 : vector<4x128xf32>
    %382 = vector.broadcast %0 : f32 to vector<4x128xf32>
    %383 = arith.mulf %382, %381 : vector<4x128xf32>
    %384 = arith.addf %379, %383 : vector<4x128xf32>
    %cst_93 = arith.constant dense<0xFF800000> : vector<4xf32>
    %385 = vector.multi_reduction <maximumf>, %384, %cst_93 [1] : vector<4x128xf32> to vector<4xf32>
    %386 = vector.shape_cast %385 : vector<4xf32> to vector<4x1xf32>
    %387 = vector.broadcast %386 : vector<4x1xf32> to vector<4x128xf32>
    %388 = arith.subf %384, %387 : vector<4x128xf32>
    %389 = math.exp %388 : vector<4x128xf32>
    %390 = vector.broadcast %16 : vector<1x128xf32> to vector<4x128xf32>
    %391 = arith.mulf %389, %390 : vector<4x128xf32>
    %cst_94 = arith.constant dense<0.000000e+00> : vector<4xf32>
    %392 = vector.multi_reduction <add>, %391, %cst_94 [1] : vector<4x128xf32> to vector<4xf32>
    %393 = vector.shape_cast %392 : vector<4xf32> to vector<4x1xf32>
    %394 = tpu.reciprocal %393 {approx = true} : vector<4x1xf32> -> vector<4x1xf32>
    %395 = vector.broadcast %394 : vector<4x1xf32> to vector<4x128xf32>
    %396 = arith.mulf %391, %395 : vector<4x128xf32>
    %397 = arith.index_cast %c6_i32 : i32 to index
    %c0_95 = arith.constant 0 : index
    %c0_96 = arith.constant 0 : index
    %398 = vector.load %arg11[%397, %c0_95, %c0_96] : memref<8x4x128xf32, #tpu.memory_space<vmem>>, vector<1x4x128xf32>
    %399 = vector.shape_cast %398 : vector<1x4x128xf32> to vector<4x128xf32>
    %400 = vector.shape_cast %396 : vector<4x128xf32> to vector<1x4x128xf32>
    tpu.vector_store %arg11[%397, %c0_95, %c0_96], %400 {strides = array<i32>} : memref<8x4x128xf32, #tpu.memory_space<vmem>>, vector<1x4x128xf32>,
    %c7_i32 = arith.constant 7 : i32
    %cst_97 = arith.constant dense<0.000000e+00> : vector<4x384xf32>
    %401 = tpu.matmul %396, %2, %cst_97 {dimension_numbers = #tpu.dot_dimension_numbers<[1], [0], [0], [1], [0, 0, 1, 1], [], []>} : vector<4x128xf32>, vector<128x384xf32>, vector<4x384xf32> -> vector<4x384xf32>
    %cst_98 = arith.constant dense<0.000000e+00> : vector<4x384xf32>
    %402 = tpu.matmul %374, %4, %cst_98 {dimension_numbers = #tpu.dot_dimension_numbers<[1], [0], [0], [1], [0, 0, 1, 1], [], []>} : vector<4x128xf32>, vector<128x384xf32>, vector<4x384xf32> -> vector<4x384xf32>
    %403 = vector.extract_strided_slice %401 {offsets = [0, 0], sizes = [4, 128], strides = [1, 1]} : vector<4x384xf32> to vector<4x128xf32>
    %404 = vector.extract_strided_slice %402 {offsets = [0, 0], sizes = [4, 128], strides = [1, 1]} : vector<4x384xf32> to vector<4x128xf32>
    %405 = arith.addf %403, %404 : vector<4x128xf32>
    %406 = vector.broadcast %7 : vector<1x128xf32> to vector<4x128xf32>
    %407 = arith.addf %405, %406 : vector<4x128xf32>
    %408 = arith.negf %407 : vector<4x128xf32>
    %409 = math.exp %408 : vector<4x128xf32>
    %cst_99 = arith.constant 1.000000e+00 : f32
    %410 = vector.broadcast %cst_99 : f32 to vector<4x128xf32>
    %411 = arith.addf %410, %409 : vector<4x128xf32>
    %412 = arith.divf %410, %411 : vector<4x128xf32>
    %413 = vector.extract_strided_slice %401 {offsets = [0, 128], sizes = [4, 128], strides = [1, 1]} : vector<4x384xf32> to vector<4x128xf32>
    %414 = vector.extract_strided_slice %402 {offsets = [0, 128], sizes = [4, 128], strides = [1, 1]} : vector<4x384xf32> to vector<4x128xf32>
    %415 = arith.addf %413, %414 : vector<4x128xf32>
    %416 = vector.broadcast %8 : vector<1x128xf32> to vector<4x128xf32>
    %417 = arith.addf %415, %416 : vector<4x128xf32>
    %418 = arith.negf %417 : vector<4x128xf32>
    %419 = math.exp %418 : vector<4x128xf32>
    %cst_100 = arith.constant 1.000000e+00 : f32
    %420 = vector.broadcast %cst_100 : f32 to vector<4x128xf32>
    %421 = arith.addf %420, %419 : vector<4x128xf32>
    %422 = arith.divf %420, %421 : vector<4x128xf32>
    %423 = vector.extract_strided_slice %401 {offsets = [0, 256], sizes = [4, 128], strides = [1, 1]} : vector<4x384xf32> to vector<4x128xf32>
    %424 = vector.broadcast %9 : vector<1x128xf32> to vector<4x128xf32>
    %425 = arith.addf %423, %424 : vector<4x128xf32>
    %426 = vector.extract_strided_slice %402 {offsets = [0, 256], sizes = [4, 128], strides = [1, 1]} : vector<4x384xf32> to vector<4x128xf32>
    %427 = vector.broadcast %10 : vector<1x128xf32> to vector<4x128xf32>
    %428 = arith.addf %426, %427 : vector<4x128xf32>
    %429 = arith.mulf %412, %428 : vector<4x128xf32>
    %430 = arith.addf %425, %429 : vector<4x128xf32>
    %431 = math.tanh %430 : vector<4x128xf32>
    %cst_101 = arith.constant 1.000000e+00 : f32
    %432 = vector.broadcast %cst_101 : f32 to vector<4x128xf32>
    %433 = arith.subf %432, %422 : vector<4x128xf32>
    %434 = arith.mulf %433, %431 : vector<4x128xf32>
    %435 = arith.mulf %422, %374 : vector<4x128xf32>
    %436 = arith.addf %434, %435 : vector<4x128xf32>
    %cst_102 = arith.constant dense<0.000000e+00> : vector<4x128xf32>
    %437 = tpu.matmul %436, %6, %cst_102 {dimension_numbers = #tpu.dot_dimension_numbers<[1], [0], [0], [1], [0, 0, 1, 1], [], []>} : vector<4x128xf32>, vector<128x128xf32>, vector<4x128xf32> -> vector<4x128xf32>
    %438 = vector.broadcast %11 : vector<1x128xf32> to vector<4x128xf32>
    %439 = arith.addf %437, %438 : vector<4x128xf32>
    %cst_103 = arith.constant 0.000000e+00 : f32
    %440 = vector.broadcast %cst_103 : f32 to vector<4x128xf32>
    %441 = arith.maximumf %439, %440 : vector<4x128xf32>
    %cst_104 = arith.constant 0.000000e+00 : f32
    %442 = vector.broadcast %cst_104 : f32 to vector<4x128xf32>
    %443 = arith.minimumf %439, %442 : vector<4x128xf32>
    %444 = vector.broadcast %0 : f32 to vector<4x128xf32>
    %445 = arith.mulf %444, %443 : vector<4x128xf32>
    %446 = arith.addf %441, %445 : vector<4x128xf32>
    %cst_105 = arith.constant dense<0xFF800000> : vector<4xf32>
    %447 = vector.multi_reduction <maximumf>, %446, %cst_105 [1] : vector<4x128xf32> to vector<4xf32>
    %448 = vector.shape_cast %447 : vector<4xf32> to vector<4x1xf32>
    %449 = vector.broadcast %448 : vector<4x1xf32> to vector<4x128xf32>
    %450 = arith.subf %446, %449 : vector<4x128xf32>
    %451 = math.exp %450 : vector<4x128xf32>
    %452 = vector.broadcast %16 : vector<1x128xf32> to vector<4x128xf32>
    %453 = arith.mulf %451, %452 : vector<4x128xf32>
    %cst_106 = arith.constant dense<0.000000e+00> : vector<4xf32>
    %454 = vector.multi_reduction <add>, %453, %cst_106 [1] : vector<4x128xf32> to vector<4xf32>
    %455 = vector.shape_cast %454 : vector<4xf32> to vector<4x1xf32>
    %456 = tpu.reciprocal %455 {approx = true} : vector<4x1xf32> -> vector<4x1xf32>
    %457 = vector.broadcast %456 : vector<4x1xf32> to vector<4x128xf32>
    %458 = arith.mulf %453, %457 : vector<4x128xf32>
    %459 = arith.index_cast %c7_i32 : i32 to index
    %c0_107 = arith.constant 0 : index
    %c0_108 = arith.constant 0 : index
    %460 = vector.load %arg11[%459, %c0_107, %c0_108] : memref<8x4x128xf32, #tpu.memory_space<vmem>>, vector<1x4x128xf32>
    %461 = vector.shape_cast %460 : vector<1x4x128xf32> to vector<4x128xf32>
    %462 = vector.shape_cast %458 : vector<4x128xf32> to vector<1x4x128xf32>
    tpu.vector_store %arg11[%459, %c0_107, %c0_108], %462 {strides = array<i32>} : memref<8x4x128xf32, #tpu.memory_space<vmem>>, vector<1x4x128xf32>,
    %c7_i32_109 = arith.constant 7 : i32
    return
  }
}

</mosaic_0001>

<bundles_post_ra>
// kernel: tpu_custom_call.1
= control target key start
LH: loop header
LB: loop body
LE: loop exit
PB: predicated region body
PF: predicated region fallthrough
CT: control target
= control target key end

     0   :  { %17 = vsyncpa [#allocation4], 0  ;;  %s6203_s0 = inlined_call_operand.hbm [shape: f32[4,128], index: 0, kind: input, shape index: {}]   ;;  %s6204_s1 = inlined_call_operand.hbm [shape: f32[4,128], index: 1, kind: input, shape index: {}]   ;;  %s6205_s2 = inlined_call_operand.hbm [shape: bf16[128,384], index: 2, kind: input, shape index: {}]   ;;  %s6206_s3 = inlined_call_operand.hbm [shape: bf16[128,384], index: 3, kind: input, shape index: {}]   ;;  %s6207_s4 = inlined_call_operand.vmem [shape: f32[1,128], index: 4, kind: input, shape index: {}]   ;;  %s6208_s5 = inlined_call_operand.vmem [shape: f32[1,128], index: 5, kind: input, shape index: {}]   ;;  %s6209_s6 = inlined_call_operand.vmem [shape: f32[1,128], index: 6, kind: input, shape index: {}]   ;;  %s6210_s7 = inlined_call_operand.vmem [shape: f32[1,128], index: 7, kind: input, shape index: {}]   ;;  %s6211_s8 = inlined_call_operand.hbm [shape: bf16[128,128], index: 8, kind: input, shape index: {}]   ;;  %s6212_s9 = inlined_call_operand.vmem [shape: f32[1,128], index: 9, kind: input, shape index: {}]   ;;  %s6213_s10 = inlined_call_operand.<no memory space> [shape: f32[1,1], index: 10, kind: input, shape index: {}]   ;;  %s6214_s11 = inlined_call_operand.hbm [shape: f32[8,4,128], index: 11, kind: output, shape index: {}]  }
   0x1   :  { %18 = vsyncpa [#allocation7], 0 }
   0x2   :  { %19 = vsyncpa [#allocation10], 0 }
   0x3   :  { %20 = vsyncpa [#allocation5], 0  ;;  %s4529_s17 = smov [#allocation6]  }
   0x4   :  { %s37_s18 = sshll.u32 %s4529_s17, 4  ;;  %s38_s18 = int_to_ptr.vmem [resolvable:$true] %s37_s18 }
   0x5   :  { %s4409_s19 = scalar_lea.vmem %s38_s18, 64  ;;  %p4414_p1 = scmp.lt.s32.totalorder %s38_s18, %s38_s18 }
   0x6   :  { %p4410_p0 = scmp.ne.s32.totalorder %s38_s18, %s4409_s19  ;;  %p4415_p2 = scmp.lt.s32.totalorder %s4409_s19, %s4409_s19 }
   0x8   :  { %p4416_p3 = por %p4415_p2, %p4414_p1 }
   0xa   :  { %p4417_p4 = pnand %p4416_p3, %p4410_p0 }
   0xc   :  { %4420 = shalt.err (!%p4417_p4)
}
   0xd   :  { %40 = dma.hbm_to_vmem [thread:$0]  %s6204_s1, 64, %s38_s18, [#allocation7]  }
   0xe   :  { %s4530_s22 = smov [#allocation9]   ;;  %s4531_s24 = smov [#allocation3]  }
   0xf   :  { %s58_s23 = sshll.u32 %s4530_s22, 4  ;;  %s27_s25 = sshll.u32 %s4531_s24, 4  ;;  %s59_s23 = int_to_ptr.vmem [resolvable:$true] %s58_s23  ;;  %s28_s25 = int_to_ptr.vmem [resolvable:$true] %s27_s25 }
  0x10   :  { %s4429_s26 = scalar_lea.vmem %s59_s23, 3072  ;;  %p4434_p6 = scmp.lt.s32.totalorder %s59_s23, %s59_s23 }
  0x11   :  { %p4430_p5 = scmp.ne.s32.totalorder %s59_s23, %s4429_s26  ;;  %p4435_p7 = scmp.lt.s32.totalorder %s4429_s26, %s4429_s26 }
  0x13   :  { %p4436_p8 = por %p4435_p7, %p4434_p6 }
  0x15   :  { %p4437_p9 = pnand %p4436_p8, %p4430_p5 }
  0x17   :  { %4440 = shalt.err (!%p4437_p9)
}
  0x18   :  { %s4532_s27 = smov 192   ;;  %s4533_s28 = smov 12  }
  0x19   :  { %64 = dma.hbm_to_vmem [thread:$0]  %s6206_s3, 3072, %s59_s23, [#allocation10], %s4532_s27, %s4532_s27, %s4533_s28  }
  0x1a   :  { %s4449_s1 = scalar_lea.vmem %s28_s25, 64  ;;  %p4454_p11 = scmp.lt.s32.totalorder %s28_s25, %s28_s25 }
  0x1b   :  { %p4450_p10 = scmp.ne.s32.totalorder %s28_s25, %s4449_s1  ;;  %p4455_p12 = scmp.lt.s32.totalorder %s4449_s1, %s4449_s1 }
  0x1d   :  { %p4456_p13 = por %p4455_p12, %p4454_p11 }
  0x1f   :  { %p4457_p0 = pnand %p4456_p13, %p4450_p10 }
  0x21   :  { %4460 = shalt.err (!%p4457_p0)
}
  0x22   :  { %30 = dma.hbm_to_vmem [thread:$0]  %s6203_s0, 64, %s28_s25, [#allocation4]  }
  0x23   :  { %s4534_s14 = smov [#allocation8]   ;;  %s4535_s16 = smov [#allocation11]  }
  0x24   :  { %s46_s15 = sshll.u32 %s4534_s14, 4  ;;  %s78_s17 = sshll.u32 %s4535_s16, 4  ;;  %s47_s15 = int_to_ptr.vmem [resolvable:$true] %s46_s15  ;;  %s79_s17 = int_to_ptr.vmem [resolvable:$true] %s78_s17 }
  0x25   :  { %s4469_s18 = scalar_lea.vmem %s47_s15, 3072  ;;  %p4474_p2 = scmp.lt.s32.totalorder %s47_s15, %s47_s15 }
  0x26   :  { %p4470_p1 = scmp.ne.s32.totalorder %s47_s15, %s4469_s18  ;;  %p4475_p3 = scmp.lt.s32.totalorder %s4469_s18, %s4469_s18 }
  0x28   :  { %p4476_p4 = por %p4475_p3, %p4474_p2 }
  0x2a   :  { %p4477_p5 = pnand %p4476_p4, %p4470_p1 }
  0x2c   :  { %4480 = shalt.err (!%p4477_p5)
}
  0x2d   :  { %52 = dma.hbm_to_vmem [thread:$0]  %s6205_s2, 3072, %s47_s15, [#allocation7], %s4532_s27, %s4532_s27, %s4533_s28  }
  0x2e   :  { %s4489_s20 = scalar_lea.vmem %s79_s17, 1024  ;;  %p4494_p7 = scmp.lt.s32.totalorder %s79_s17, %s79_s17 }
  0x2f   :  { %p4490_p6 = scmp.ne.s32.totalorder %s79_s17, %s4489_s20  ;;  %p4495_p8 = scmp.lt.s32.totalorder %s4489_s20, %s4489_s20 }
  0x31   :  { %p4496_p9 = por %p4495_p8, %p4494_p7 }
  0x33   :  { %p4497_p10 = pnand %p4496_p9, %p4490_p6 }
  0x35   :  { %4500 = shalt.err (!%p4497_p10)
}
  0x36   :  { %s4536_s0 = smov 64   ;;  %s4537_s21 = smov 4  }
  0x37   :  { %84 = dma.hbm_to_vmem [thread:$0]  %s6211_s8, 1024, %s79_s17, [#allocation10], %s4536_s0, %s4536_s0, %s4537_s21  }
  0x38   :  { %4521 = dma.done.wait [#allocation4], 64  }
  0x39   :  { %4522 = vsyncadd [#allocation4], 4294967232 }
  0x3a   :  { %4523 = dma.done.wait [#allocation7], 3136  }
  0x3b   :  { %4524 = vsyncadd [#allocation7], 4294964160 }
  0x3c   :  { %4525 = dma.done.wait [#allocation10], 4096  }
  0x3d   :  { %4526 = vsyncadd [#allocation10], 4294963200  ;;  %v6287_v0 = vmov 0.0   ;;  %vm4539_vm0 = vmmov 0   ;;  %v135_v1 = vld [vmem:[#allocation8 + $0xb4] sm:$0xff]  ;;  %v133_v2 = vld [vmem:[#allocation8 + $0xa8] sm:$0xff]  ;;  %v4735_v58 = vstv %s6213_s10 }
  0x3e   :  { %379 = vmatprep.mubr.f32.mxu0 %v6287_v0  ;;  %3546 = vmatprep.subr.mxu1 %v6287_v0  ;;  %v131_v3 = vld [vmem:[#allocation8 + $0x9c] sm:$0xff]  ;;  %v4623_v4 = vunpack.c.h.bf16 %v135_v1  ;;  %v4625_v5 = vunpack.c.l.bf16 %v135_v1  ;;  %v4627_v6 = vunpack.c.h.bf16 %v133_v2  ;;  %v4629_v7 = vunpack.c.l.bf16 %v133_v2  ;;  %v129_v8 = vld [vmem:[#allocation8 + $0x90] sm:$0xff]  ;;  %v127_v11 = vld [vmem:[#allocation8 + $0x84] sm:$0xff]  ;;  %6468 = vst [vmem:[#allocation43_spill] sm:$0xff] %v4735_v58 }
  0x3f   :  { %3578 = vmatprep.mubr.msk.f32.mxu1 %vm4539_vm0, %v6287_v0  ;;  %v4632_v9 = vunpack.c.h.bf16 %v131_v3  ;;  %v4635_v10 = vunpack.c.l.bf16 %v131_v3  ;;  %v4638_v12 = vunpack.c.h.bf16 %v129_v8  ;;  %v4640_v13 = vld [vmem:[#allocation6] sm:$0xf]  ;;  %v4643_v14 = vunpack.c.l.bf16 %v129_v8  ;;  %v123_v19 = vld [vmem:[#allocation8 + $0x6c] sm:$0xff]  ;;  %v132_v20 = vld [vmem:[#allocation8 + $0x98] ss:$12 sps:$4 sm:$0xff]  }
  0x40   :  { %6442 = vst [vmem:[#allocation17_spill] sm:$0xff] %v4623_v4  ;;  %6443 = vst [vmem:[#allocation18_spill] sm:$0xff] %v4625_v5  ;;  %315 = vmatprep.subr.mxu0 %v4623_v4  ;;  %v125_v15 = vld [vmem:[#allocation8 + $0x78] sm:$0xff]  ;;  %v4647_v17 = vunpack.c.h.bf16 %v127_v11  ;;  %v4650_v18 = vunpack.c.l.bf16 %v127_v11  ;;  %v121_v24 = vld [vmem:[#allocation8 + $0x60] sm:$0xff]  ;;  %v4663_v26 = vunpack.c.h.bf16 %v123_v19  ;;  %v4666_v27 = vunpack.c.h.bf16 %v132_v20 }
  0x41   :  { %6444 = vst [vmem:[#allocation19_spill] sm:$0xff] %v4627_v6  ;;  %6445 = vst [vmem:[#allocation20_spill] sm:$0xff] %v4629_v7  ;;  %316 = vmatpush1.msra.mxu0 %v4625_v5  ;;  %v136_v16 = vld [vmem:[#allocation8 + $0xb0] ss:$12 sps:$4 sm:$0xff]   ;;  %v4653_v21 = vunpack.c.h.bf16 %v125_v15  ;;  %v4658_v23 = vunpack.c.l.bf16 %v125_v15  ;;  %v4669_v28 = vunpack.c.l.bf16 %v123_v19  ;;  %v119_v29 = vld [vmem:[#allocation8 + $0x54] sm:$0xff]  ;;  %v4673_v31 = vunpack.c.h.bf16 %v121_v24 }
  0x42   :  { %6446 = vst [vmem:[#allocation21_spill] sm:$0xff] %v4632_v9  ;;  %6447 = vst [vmem:[#allocation22_spill] sm:$0xff] %v4635_v10  ;;  %317 = vmatprep.subr.mxu0 %v4627_v6  ;;  %v4655_v22 = vunpack.c.h.bf16 %v136_v16  ;;  %v4660_v25 = vunpack.c.l.bf16 %v136_v16  ;;  %v128_v30 = vld [vmem:[#allocation8 + $0x80] ss:$12 sps:$4 sm:$0xff]   ;;  %v4676_v32 = vunpack.c.l.bf16 %v132_v20  ;;  %v4679_v33 = vunpack.c.l.bf16 %v121_v24  ;;  %v124_v39 = vld [vmem:[#allocation8 + $0x68] ss:$12 sps:$4 sm:$0xff]  }
  0x43   :  { %6448 = vst [vmem:[#allocation23_spill] sm:$0xff] %v4638_v12  ;;  %318 = vmatpush1.msra.mxu0 %v4629_v7  ;;  %6449 = vst [vmem:[#allocation24_spill] sm:$0xff] %v4643_v14  ;;  %v117_v34 = vld [vmem:[#allocation8 + $0x48] sm:$0xff]  ;;  %v4683_v35 = vunpack.c.h.bf16 %v119_v29  ;;  %v4686_v36 = vunpack.c.h.bf16 %v128_v30  ;;  %v4689_v37 = vunpack.c.l.bf16 %v119_v29  ;;  %v115_v38 = vld [vmem:[#allocation8 + $0x3c] sm:$0xff]  ;;  %v4696_v41 = vunpack.c.l.bf16 %v128_v30 }
  0x44   :  { %308 = vst [vmem:[#allocation12] sm:$0xf] %v4640_v13  ;;  %319 = vmatprep.subr.mxu0 %v4632_v9  ;;  %6450 = vst [vmem:[#allocation25_spill] sm:$0xff] %v4647_v17  ;;  %3547 = vmatpush3.msra.mxu1 %v4655_v22  ;;  %v4693_v40 = vunpack.c.h.bf16 %v117_v34  ;;  %v4699_v42 = vunpack.c.l.bf16 %v117_v34  ;;  %v113_v43 = vld [vmem:[#allocation8 + $0x30] sm:$0xff]  ;;  %v4703_v44 = vunpack.c.h.bf16 %v115_v38  ;;  %v4706_v45 = vunpack.c.h.bf16 %v124_v39  ;;  %v111_v47 = vld [vmem:[#allocation8 + $0x24] sm:$0xff] }
  0x45   :  { %320 = vmatpush1.msra.mxu0 %v4635_v10  ;;  %6451 = vst [vmem:[#allocation26_spill] sm:$0xff] %v4650_v18  ;;  %6452 = vst [vmem:[#allocation27_spill] sm:$0xff] %v4653_v21  ;;  %3548 = vmatprep.subr.mxu1 %v6287_v0  ;;  %v4709_v46 = vunpack.c.l.bf16 %v115_v38  ;;  %v120_v48 = vld [vmem:[#allocation8 + $0x50] ss:$12 sps:$4 sm:$0xff]   ;;  %v4713_v49 = vunpack.c.h.bf16 %v113_v43  ;;  %v4716_v50 = vunpack.c.l.bf16 %v124_v39  ;;  %v4719_v51 = vunpack.c.l.bf16 %v113_v43  ;;  %v116_v59 = vld [vmem:[#allocation8 + $0x38] ss:$12 sps:$4 sm:$0xff]  }
  0x46   :  { %321 = vmatprep.subr.mxu0 %v4638_v12  ;;  %6453 = vst [vmem:[#allocation28_spill] sm:$0xff] %v4658_v23  ;;  %6454 = vst [vmem:[#allocation29_spill] sm:$0xff] %v4663_v26  ;;  %3549 = vmatpush3.msra.mxu1 %v4660_v25  ;;  %v109_v52 = vld [vmem:[#allocation8 + $0x18] sm:$0xff]  ;;  %v4723_v53 = vunpack.c.h.bf16 %v111_v47  ;;  %v310_v54 = vmin.f32 %v4640_v13, 0.0  ;;  %v4727_v55 = vunpack.c.h.bf16 %v120_v48  ;;  %v4730_v56 = vunpack.c.l.bf16 %v111_v47  ;;  %v107_v57 = vld [vmem:[#allocation8 + $0xc] sm:$0xff] }
  0x47   :  { %322 = vmatpush1.msra.mxu0 %v4643_v14  ;;  %6455 = vst [vmem:[#allocation30_spill] sm:$0xff] %v4669_v28  ;;  %6456 = vst [vmem:[#allocation31_spill] sm:$0xff] %v4673_v31  ;;  %3550 = vmatprep.subr.mxu1 %v6287_v0  ;;  %v4739_v60 = vunpack.c.h.bf16 %v109_v52  ;;  %v4742_v61 = vunpack.c.l.bf16 %v120_v48  ;;  %v4745_v62 = vunpack.c.l.bf16 %v109_v52  ;;  %v105_v63 = vld [vmem:[#allocation8] sm:$0xff]  ;;  %v4749_v1 = vunpack.c.h.bf16 %v107_v57  ;;  %v215_v15 = vld [vmem:[#allocation9 + $0xb4] sm:$0xff] }
  0x48   :  { %323 = vmatprep.subr.mxu0 %v4647_v17  ;;  %6457 = vst [vmem:[#allocation32_spill] sm:$0xff] %v4679_v33  ;;  %6458 = vst [vmem:[#allocation33_spill] sm:$0xff] %v4683_v35  ;;  %3551 = vmatpush3.msra.mxu1 %v4666_v27  ;;  %v309_v2 = vmax.f32 %v4640_v13, 0.0  ;;  %v312_v3 = vmul.f32 %v4735_v58, %v310_v54  ;;  %v4754_v8 = vunpack.c.h.bf16 %v116_v59  ;;  %v4757_v11 = vunpack.c.l.bf16 %v107_v57  ;;  %v112_v19 = vld [vmem:[#allocation8 + $0x20] ss:$12 sps:$4 sm:$0xff]   ;;  %v209_v52 = vld [vmem:[#allocation9 + $0x90] sm:$0xff] }
  0x49   :  { %324 = vmatpush1.msra.mxu0 %v4650_v18  ;;  %6459 = vst [vmem:[#allocation34_spill] sm:$0xff] %v4689_v37  ;;  %3552 = vmatprep.subr.mxu1 %v6287_v0  ;;  %6460 = vst [vmem:[#allocation35_spill] sm:$0xff] %v4693_v40  ;;  %v4761_v16 = vunpack.c.h.bf16 %v105_v63  ;;  %v4764_v13 = vunpack.c.l.bf16 %v116_v59  ;;  %v4767_v20 = vunpack.c.l.bf16 %v105_v63  ;;  %v213_v24 = vld [vmem:[#allocation9 + $0xa8] sm:$0xff]  ;;  %v4771_v30 = vunpack.c.h.bf16 %v215_v15  ;;  %v211_v38 = vld [vmem:[#allocation9 + $0x9c] sm:$0xff] }
  0x4a   :  { %325 = vmatprep.subr.mxu0 %v4653_v21  ;;  %3553 = vmatpush3.msra.mxu1 %v4676_v32  ;;  %6461 = vst [vmem:[#allocation36_spill] sm:$0xff] %v4699_v42  ;;  %6462 = vst [vmem:[#allocation37_spill] sm:$0xff] %v4703_v44  ;;  %v313_v29 = vadd.f32 %v312_v3, %v309_v2  ;;  %v4775_v34 = vunpack.c.l.bf16 %v215_v15  ;;  %v4778_v39 = vunpack.c.h.bf16 %v112_v19  ;;  %v4781_v43 = vunpack.c.h.bf16 %v213_v24  ;;  %v108_v47 = vld [vmem:[#allocation8 + $0x8] ss:$12 sps:$4 sm:$0xff]   ;;  %v203_v58 = vld [vmem:[#allocation9 + $0x6c] sm:$0xff] }
  0x4b   :  { %326 = vmatpush1.msra.mxu0 %v4658_v23  ;;  %3554 = vmatprep.subr.mxu1 %v6287_v0  ;;  %6463 = vst [vmem:[#allocation38_spill] sm:$0xff] %v4709_v46  ;;  %6464 = vst [vmem:[#allocation39_spill] sm:$0xff] %v4713_v49  ;;  %v4785_v48 = vunpack.c.l.bf16 %v213_v24  ;;  %v4788_v54 = vunpack.c.l.bf16 %v112_v19  ;;  %v4791_v57 = vunpack.c.h.bf16 %v211_v38  ;;  %v4794_v59 = vunpack.c.l.bf16 %v211_v38  ;;  %v207_v63 = vld [vmem:[#allocation9 + $0x84] sm:$0xff]  ;;  %v205_v19 = vld [vmem:[#allocation9 + $0x78] sm:$0xff] }
  0x4c   :  { %327 = vmatprep.subr.mxu0 %v4663_v26  ;;  %3555 = vmatpush3.msra.mxu1 %v4686_v36  ;;  %6465 = vst [vmem:[#allocation40_spill] sm:$0xff] %v4719_v51  ;;  %6466 = vst [vmem:[#allocation41_spill] sm:$0xff] %v4723_v53  ;;  %v4797_v2 = vunpack.c.h.bf16 %v108_v47  ;;  %v4800_v3 = vunpack.c.h.bf16 %v209_v52  ;;  %v4804_v15 = vunpack.c.l.bf16 %v209_v52  ;;  %v4807_v24 = vunpack.c.l.bf16 %v108_v47 }
  0x4d   :  { %328 = vmatpush1.msra.mxu0 %v4669_v28  ;;  %3556 = vmatprep.subr.mxu1 %v6287_v0  ;;  %6467 = vst [vmem:[#allocation42_spill] sm:$0xff] %v4730_v56  ;;  %6469 = vst [vmem:[#allocation44_spill] sm:$0xff] %v4739_v60  ;;  %v4810_v38 = vunpack.c.h.bf16 %v207_v63  ;;  %v4818_v52 = vunpack.c.h.bf16 %v205_v19  ;;  %v4822_v47 = vunpack.c.l.bf16 %v205_v19  ;;  %vm726_vm1 = vcmask 1043456  }
  0x4e   :  { %329 = vmatprep.subr.mxu0 %v4673_v31  ;;  %3557 = vmatpush3.msra.mxu1 %v4696_v41  ;;  %6470 = vst [vmem:[#allocation45_spill] sm:$0xff] %v4745_v62  ;;  %6471 = vst [vmem:[#allocation46_spill] sm:$0xff] %v4749_v1 }
  0x4f   :  { %330 = vmatpush1.msra.mxu0 %v4679_v33  ;;  %3558 = vmatprep.subr.mxu1 %v6287_v0  ;;  %6472 = vst [vmem:[#allocation47_spill] sm:$0xff] %v4757_v11  ;;  %6473 = vst [vmem:[#allocation48_spill] sm:$0xff] %v4761_v16 }
  0x50   :  { %331 = vmatprep.subr.mxu0 %v4683_v35  ;;  %3559 = vmatpush3.msra.mxu1 %v4706_v45  ;;  %6474 = vst [vmem:[#allocation49_spill] sm:$0xff] %v4767_v20  ;;  %6475 = vst [vmem:[#allocation50_spill] sm:$0xff] %v4771_v30 }
  0x51   :  { %332 = vmatpush1.msra.mxu0 %v4689_v37  ;;  %3560 = vmatprep.subr.mxu1 %v6287_v0  ;;  %6476 = vst [vmem:[#allocation51_spill] sm:$0xff] %v4775_v34  ;;  %6477 = vst [vmem:[#allocation52_spill] sm:$0xff] %v4778_v39 }
  0x52   :  { %333 = vmatprep.subr.mxu0 %v4693_v40  ;;  %3561 = vmatpush3.msra.mxu1 %v4716_v50  ;;  %6478 = vst [vmem:[#allocation53_spill] sm:$0xff] %v4781_v43  ;;  %6479 = vst [vmem:[#allocation54_spill] sm:$0xff] %v4785_v48 }
  0x53   :  { %334 = vmatpush1.msra.mxu0 %v4699_v42  ;;  %3562 = vmatprep.subr.mxu1 %v6287_v0  ;;  %6480 = vst [vmem:[#allocation55_spill] sm:$0xff] %v4788_v54  ;;  %6481 = vst [vmem:[#allocation56_spill] sm:$0xff] %v4791_v57 }
  0x54   :  { %335 = vmatprep.subr.mxu0 %v4703_v44  ;;  %3563 = vmatpush3.msra.mxu1 %v4727_v55  ;;  %6482 = vst [vmem:[#allocation57_spill] sm:$0xff] %v4794_v59  ;;  %6483 = vst [vmem:[#allocation58_spill] sm:$0xff] %v4797_v2 }
  0x55   :  { %336 = vmatpush1.msra.mxu0 %v4709_v46  ;;  %3564 = vmatprep.subr.mxu1 %v6287_v0  ;;  %6484 = vst [vmem:[#allocation59_spill] sm:$0xff] %v4800_v3  ;;  %6485 = vst [vmem:[#allocation60_spill] sm:$0xff] %v4804_v15 }
  0x56   :  { %337 = vmatprep.subr.mxu0 %v4713_v49  ;;  %3565 = vmatpush3.msra.mxu1 %v4742_v61  ;;  %6486 = vst [vmem:[#allocation61_spill] sm:$0xff] %v4807_v24  ;;  %6487 = vst [vmem:[#allocation62_spill] sm:$0xff] %v4810_v38 }
  0x57   :  { %338 = vmatpush1.msra.mxu0 %v4719_v51  ;;  %3566 = vmatprep.subr.mxu1 %v6287_v0  ;;  %6489 = vst [vmem:[#allocation64_spill] sm:$0xff] %v4818_v52  ;;  %6490 = vst [vmem:[#allocation65_spill] sm:$0xff] %v4822_v47 }
  0x58   :  { %339 = vmatprep.subr.mxu0 %v4723_v53  ;;  %3567 = vmatpush3.msra.mxu1 %v4754_v8 }
  0x59   :  { %340 = vmatpush1.msra.mxu0 %v4730_v56  ;;  %3568 = vmatprep.subr.mxu1 %v6287_v0 }
  0x5a   :  { %341 = vmatprep.subr.mxu0 %v4739_v60  ;;  %3569 = vmatpush3.msra.mxu1 %v4764_v13 }
  0x5b   :  { %342 = vmatpush1.msra.mxu0 %v4745_v62  ;;  %3570 = vmatprep.subr.mxu1 %v6287_v0 }
  0x5c   :  { %343 = vmatprep.subr.mxu0 %v4749_v1  ;;  %3571 = vmatpush3.msra.mxu1 %v4778_v39 }
  0x5d   :  { %344 = vmatpush1.msra.mxu0 %v4757_v11  ;;  %3572 = vmatprep.subr.mxu1 %v6287_v0 }
  0x5e   :  { %345 = vmatprep.subr.mxu0 %v4761_v16  ;;  %3573 = vmatpush3.msra.mxu1 %v4788_v54 }
  0x5f   :  { %346 = vmatpush1.msra.mxu0 %v4767_v20  ;;  %3574 = vmatprep.subr.mxu1 %v6287_v0 }
  0x60   :  { %380 = vmatmul.mubr.f32.vlgmr.msra.gmra.mxu0 %v313_v29  ;;  %456 = vmatprep.subr.mxu0 %v4771_v30 }
  0x61   :  { %457 = vmatpush1.msra.mxu0 %v4775_v34  ;;  %v4814_v34 = vunpack.c.l.bf16 %v207_v63  ;;  %3575 = vmatpush3.msra.mxu1 %v4797_v2  ;;  %v4828_v63 = vunpack.c.h.bf16 %v203_v58  ;;  %v199_v2 = vld [vmem:[#allocation9 + $0x54] sm:$0xff] }
  0x62   :  { %458 = vmatprep.subr.mxu0 %v4781_v43  ;;  %v216_v43 = vld [vmem:[#allocation9 + $0xb0] ss:$12 sps:$4 sm:$0xff]   ;;  %3576 = vmatprep.subr.mxu1 %v6287_v0 }
  0x63   :  { %459 = vmatpush1.msra.mxu0 %v4785_v48  ;;  %6488 = vst [vmem:[#allocation63_spill] sm:$0xff] %v4814_v34  ;;  %3577 = vmatpush3.msra.mxu1 %v4807_v24  ;;  %v4825_v48 = vunpack.c.h.bf16 %v216_v43  ;;  %6492 = vst [vmem:[#allocation67_spill] sm:$0xff] %v4828_v63  ;;  %v4835_v19 = vunpack.c.l.bf16 %v216_v43  ;;  %v197_v24 = vld [vmem:[#allocation9 + $0x48] sm:$0xff] }
  0x64   :  { %460 = vmatprep.subr.mxu0 %v4791_v57  ;;  %v201_v57 = vld [vmem:[#allocation9 + $0x60] sm:$0xff]  ;;  %520 = vmatprep.mubr.f32.mxu0 %v6287_v0 }
  0x65   :  { %461 = vmatpush1.msra.mxu0 %v4794_v59  ;;  %6491 = vst [vmem:[#allocation66_spill] sm:$0xff] %v4825_v48  ;;  %v4832_v59 = vunpack.c.l.bf16 %v203_v58  ;;  %3581 = vmatprep.subr.mxu1 %v6287_v0  ;;  %6494 = vst [vmem:[#allocation69_spill] sm:$0xff] %v4835_v19  ;;  %v4847_v58 = vunpack.c.h.bf16 %v199_v2  ;;  %v208_v43 = vld [vmem:[#allocation9 + $0x80] ss:$12 sps:$4 sm:$0xff]  }
  0x66   :  { %462 = vmatprep.subr.mxu0 %v4800_v3  ;;  %v212_v3 = vld [vmem:[#allocation9 + $0x98] ss:$12 sps:$4 sm:$0xff]   ;;  %3579 = vmatmul.mubr.f32.vlgmr.msra.gmra.mxu1 %v313_v29  ;;  %v195_v29 = vld [vmem:[#allocation9 + $0x3c] sm:$0xff] }
  0x67   :  { %463 = vmatpush1.msra.mxu0 %v4804_v15  ;;  %6493 = vst [vmem:[#allocation68_spill] sm:$0xff] %v4832_v59  ;;  %v4838_v15 = vunpack.c.h.bf16 %v201_v57  ;;  %3582 = vmatpush3.msra.mxu1 %v4825_v48  ;;  %6498 = vst [vmem:[#allocation73_spill] sm:$0xff] %v4847_v58  ;;  %v193_v48 = vld [vmem:[#allocation9 + $0x30] sm:$0xff] }
  0x68   :  { %464 = vmatprep.subr.mxu0 %v4810_v38  ;;  %v4841_v38 = vunpack.c.l.bf16 %v201_v57  ;;  %3583 = vmatprep.subr.mxu1 %v6287_v0  ;;  %v4854_v57 = vunpack.c.l.bf16 %v212_v3 }
  0x69   :  { %465 = vmatpush1.msra.mxu0 %v4814_v34  ;;  %6495 = vst [vmem:[#allocation70_spill] sm:$0xff] %v4838_v15  ;;  %v4844_v34 = vunpack.c.h.bf16 %v212_v3  ;;  %3584 = vmatpush3.msra.mxu1 %v4835_v19  ;;  %v204_v3 = vld [vmem:[#allocation9 + $0x68] ss:$12 sps:$4 sm:$0xff]  }
  0x6a   :  { %466 = vmatprep.subr.mxu0 %v4818_v52  ;;  %6496 = vst [vmem:[#allocation71_spill] sm:$0xff] %v4841_v38  ;;  %v4851_v52 = vunpack.c.l.bf16 %v199_v2  ;;  %6500 = vst [vmem:[#allocation75_spill] sm:$0xff] %v4854_v57  ;;  %3585 = vmatprep.subr.mxu1 %v6287_v0  ;;  %v4864_v2 = vunpack.c.h.bf16 %v208_v43  ;;  %v191_v19 = vld [vmem:[#allocation9 + $0x24] sm:$0xff] }
  0x6b   :  { %467 = vmatpush1.msra.mxu0 %v4822_v47  ;;  %6497 = vst [vmem:[#allocation72_spill] sm:$0xff] %v4844_v34  ;;  %v4857_v47 = vunpack.c.h.bf16 %v197_v24  ;;  %3586 = vmatpush3.msra.mxu1 %v4844_v34  ;;  %v189_v34 = vld [vmem:[#allocation9 + $0x18] sm:$0xff] }
  0x6c   :  { %468 = vmatprep.subr.mxu0 %v4828_v63  ;;  %6499 = vst [vmem:[#allocation74_spill] sm:$0xff] %v4851_v52  ;;  %v4861_v63 = vunpack.c.l.bf16 %v197_v24  ;;  %6503 = vst [vmem:[#allocation78_spill] sm:$0xff] %v4864_v2  ;;  %3587 = vmatprep.subr.mxu1 %v6287_v0  ;;  %v4874_v24 = vunpack.c.l.bf16 %v208_v43  ;;  %v200_v43 = vld [vmem:[#allocation9 + $0x50] ss:$12 sps:$4 sm:$0xff]  }
  0x6d   :  { %469 = vmatpush1.msra.mxu0 %v4832_v59  ;;  %6501 = vst [vmem:[#allocation76_spill] sm:$0xff] %v4857_v47  ;;  %v4867_v59 = vunpack.c.h.bf16 %v195_v29  ;;  %3588 = vmatpush3.msra.mxu1 %v4854_v57  ;;  %v187_v57 = vld [vmem:[#allocation9 + $0xc] sm:$0xff] }
  0x6e   :  { %470 = vmatprep.subr.mxu0 %v4838_v15  ;;  %6502 = vst [vmem:[#allocation77_spill] sm:$0xff] %v4861_v63  ;;  %v4871_v15 = vunpack.c.l.bf16 %v195_v29  ;;  %6506 = vst [vmem:[#allocation81_spill] sm:$0xff] %v4874_v24  ;;  %3589 = vmatprep.subr.mxu1 %v6287_v0  ;;  %v4884_v29 = vunpack.c.h.bf16 %v204_v3 }
  0x6f   :  { %471 = vmatpush1.msra.mxu0 %v4841_v38  ;;  %6504 = vst [vmem:[#allocation79_spill] sm:$0xff] %v4867_v59  ;;  %v4877_v38 = vunpack.c.h.bf16 %v193_v48  ;;  %3590 = vmatpush3.msra.mxu1 %v4864_v2  ;;  %v185_v2 = vld [vmem:[#allocation9] sm:$0xff] }
  0x70   :  { %472 = vmatprep.subr.mxu0 %v4847_v58  ;;  %6505 = vst [vmem:[#allocation80_spill] sm:$0xff] %v4871_v15  ;;  %v4881_v58 = vunpack.c.l.bf16 %v193_v48  ;;  %6509 = vst [vmem:[#allocation84_spill] sm:$0xff] %v4884_v29  ;;  %3591 = vmatprep.subr.mxu1 %v6287_v0  ;;  %v4894_v48 = vunpack.c.l.bf16 %v204_v3  ;;  %v196_v3 = vld [vmem:[#allocation9 + $0x38] ss:$12 sps:$4 sm:$0xff]  }
  0x71   :  { %473 = vmatpush1.msra.mxu0 %v4851_v52  ;;  %6507 = vst [vmem:[#allocation82_spill] sm:$0xff] %v4877_v38  ;;  %v4887_v52 = vunpack.c.h.bf16 %v191_v19  ;;  %3592 = vmatpush3.msra.mxu1 %v4874_v24 }
  0x72   :  { %474 = vmatprep.subr.mxu0 %v4857_v47  ;;  %6508 = vst [vmem:[#allocation83_spill] sm:$0xff] %v4881_v58  ;;  %v4891_v47 = vunpack.c.l.bf16 %v191_v19  ;;  %6512 = vst [vmem:[#allocation87_spill] sm:$0xff] %v4894_v48  ;;  %3593 = vmatprep.subr.mxu1 %v6287_v0  ;;  %v4904_v19 = vunpack.c.h.bf16 %v200_v43 }
  0x73   :  { %475 = vmatpush1.msra.mxu0 %v4861_v63  ;;  %6510 = vst [vmem:[#allocation85_spill] sm:$0xff] %v4887_v52  ;;  %v4897_v63 = vunpack.c.h.bf16 %v189_v34  ;;  %3594 = vmatpush3.msra.mxu1 %v4884_v29  ;;  %v4924_v29 = vunpack.c.h.bf16 %v196_v3 }
  0x74   :  { %476 = vmatprep.subr.mxu0 %v4867_v59  ;;  %6511 = vst [vmem:[#allocation86_spill] sm:$0xff] %v4891_v47  ;;  %v4901_v59 = vunpack.c.l.bf16 %v189_v34  ;;  %6515 = vst [vmem:[#allocation90_spill] sm:$0xff] %v4904_v19  ;;  %3595 = vmatprep.subr.mxu1 %v6287_v0  ;;  %v4914_v34 = vunpack.c.l.bf16 %v200_v43  ;;  %v4929_v43 = vld [vmem:[#allocation3] sm:$0xf] }
  0x75   :  { %477 = vmatpush1.msra.mxu0 %v4871_v15  ;;  %6513 = vst [vmem:[#allocation88_spill] sm:$0xff] %v4897_v63  ;;  %v4907_v15 = vunpack.c.h.bf16 %v187_v57  ;;  %3596 = vmatpush3.msra.mxu1 %v4894_v48  ;;  %6521 = vst [vmem:[#allocation96_spill] sm:$0xff] %v4924_v29 }
  0x76   :  { %478 = vmatprep.subr.mxu0 %v4877_v38  ;;  %6514 = vst [vmem:[#allocation89_spill] sm:$0xff] %v4901_v59  ;;  %v4911_v38 = vunpack.c.l.bf16 %v187_v57  ;;  %6518 = vst [vmem:[#allocation93_spill] sm:$0xff] %v4914_v34  ;;  %3597 = vmatprep.subr.mxu1 %v6287_v0  ;;  %v192_v57 = vld [vmem:[#allocation9 + $0x20] ss:$12 sps:$4 sm:$0xff]  }
  0x77   :  { %479 = vmatpush1.msra.mxu0 %v4881_v58  ;;  %6516 = vst [vmem:[#allocation91_spill] sm:$0xff] %v4907_v15  ;;  %v4917_v58 = vunpack.c.h.bf16 %v185_v2  ;;  %3598 = vmatpush3.msra.mxu1 %v4904_v19 }
  0x78   :  { %480 = vmatprep.subr.mxu0 %v4887_v52  ;;  %6517 = vst [vmem:[#allocation92_spill] sm:$0xff] %v4911_v38  ;;  %v4921_v52 = vunpack.c.l.bf16 %v185_v2  ;;  %3599 = vmatprep.subr.mxu1 %v6287_v0  ;;  %v4938_v2 = vunpack.c.h.bf16 %v192_v57 }
  0x79   :  { %481 = vmatpush1.msra.mxu0 %v4891_v47  ;;  %6519 = vst [vmem:[#allocation94_spill] sm:$0xff] %v4917_v58  ;;  %3600 = vmatpush3.msra.mxu1 %v4914_v34 }
  0x7a   :  { %482 = vmatprep.subr.mxu0 %v4897_v63  ;;  %6520 = vst [vmem:[#allocation95_spill] sm:$0xff] %v4921_v52  ;;  %v4932_v63 = vunpack.c.l.bf16 %v196_v3  ;;  %3601 = vmatprep.subr.mxu1 %v6287_v0  ;;  %6523 = vst [vmem:[#allocation98_spill] sm:$0xff] %v4938_v2 }
  0x7b   :  { %483 = vmatpush1.msra.mxu0 %v4901_v59  ;;  %3602 = vmatpush3.msra.mxu1 %v4924_v29 }
  0x7c   :  { %484 = vmatprep.subr.mxu0 %v4907_v15  ;;  %6522 = vst [vmem:[#allocation97_spill] sm:$0xff] %v4932_v63  ;;  %3603 = vmatprep.subr.mxu1 %v6287_v0  ;;  %v4943_v15 = vunpack.c.l.bf16 %v192_v57 }
  0x7d   :  { %485 = vmatpush1.msra.mxu0 %v4911_v38  ;;  %v188_v38 = vld [vmem:[#allocation9 + $0x8] ss:$12 sps:$4 sm:$0xff]   ;;  %3604 = vmatpush3.msra.mxu1 %v4932_v63 }
  0x7e   :  { %486 = vmatprep.subr.mxu0 %v4917_v58  ;;  %6524 = vst [vmem:[#allocation99_spill] sm:$0xff] %v4943_v15  ;;  %3613 = vmatprep.mubr.msk.f32.mxu1 %vm4539_vm0, %v6287_v0  ;;  %v4950_v3 = vunpack.c.h.bf16 %v188_v38  ;;  %v4956_v57 = vunpack.c.l.bf16 %v188_v38  ;;  %v3188_v38 = vld [vmem:[#allocation11 + $0x38] sm:$0xff]  }
  0x7f   :  { %487 = vmatpush1.msra.mxu0 %v4921_v52  ;;  %3605 = vmatprep.subr.mxu1 %v6287_v0 }
  0x80   :  { %521 = vmatmul.mubr.f32.vlgmr.msra.gmra.mxu0 %v4929_v43  ;;  %3616 = vmatprep.subr.mxu0 %v6287_v0  ;;  %6525 = vst [vmem:[#allocation100_spill] sm:$0xff] %v4950_v3  ;;  %6526 = vst [vmem:[#allocation101_spill] sm:$0xff] %v4956_v57 }
  0x81   :  { %3606 = vmatpush3.msra.mxu1 %v4938_v2  ;;  %3648 = vmatprep.mubr.msk.f32.mxu0 %vm4539_vm0, %v6287_v0 }
  0x82   :  { %3607 = vmatprep.subr.mxu1 %v6287_v0 }
  0x83   :  { %3608 = vmatpush3.msra.mxu1 %v4943_v15 }
  0x84   :  { %3609 = vmatprep.subr.mxu1 %v6287_v0 }
  0x85   :  { %3610 = vmatpush3.msra.mxu1 %v4950_v3 }
  0x86   :  { %3611 = vmatprep.subr.mxu1 %v6287_v0 }
  0x87   :  { %3612 = vmatpush3.msra.mxu1 %v4956_v57 }
  0x88   :  { %3614 = vmatmul.mubr.f32.vlgmr.msra.gmra.mxu1 %v4929_v43  ;;  %741 = vmatprep.subr.mxu1 %v4623_v4 }
  0x89   :  { %742 = vmatpush1.msra.mxu1 %v4625_v5  ;;  %805 = vmatprep.mubr.f32.mxu1 %v6287_v0  ;;  %v4997_v0 = vunpack.c.h.bf16 %v3188_v38 }
  0x8a   :  { %743 = vmatprep.subr.mxu1 %v4627_v6 }
  0x8b   :  { %744 = vmatpush1.msra.mxu1 %v4629_v7  ;;  %6527 = vst [vmem:[#allocation102_spill] sm:$0xff] %v4997_v0  ;;  %3617 = vmatpush3.msra.mxu0 %v4997_v0 }
  0x8c   :  { %745 = vmatprep.subr.mxu1 %v4632_v9 }
  0x8d   :  { %746 = vmatpush1.msra.mxu1 %v4635_v10 }
  0x8e   :  { %747 = vmatprep.subr.mxu1 %v4638_v12 }
  0x8f   :  { %748 = vmatpush1.msra.mxu1 %v4643_v14 }
  0x90   :  { %749 = vmatprep.subr.mxu1 %v4647_v17 }
  0x91   :  { %750 = vmatpush1.msra.mxu1 %v4650_v18 }
  0x92   :  { %751 = vmatprep.subr.mxu1 %v4653_v21 }
  0x93   :  { %752 = vmatpush1.msra.mxu1 %v4658_v23 }
  0x94   :  { %753 = vmatprep.subr.mxu1 %v4663_v26 }
  0x95   :  { %754 = vmatpush1.msra.mxu1 %v4669_v28 }
  0x96   :  { %755 = vmatprep.subr.mxu1 %v4673_v31 }
  0x97   :  { %756 = vmatpush1.msra.mxu1 %v4679_v33 }
  0x98   :  { %757 = vmatprep.subr.mxu1 %v4683_v35 }
  0x99   :  { %758 = vmatpush1.msra.mxu1 %v4689_v37 }
  0x9a   :  { %759 = vmatprep.subr.mxu1 %v4693_v40 }
  0x9b   :  { %760 = vmatpush1.msra.mxu1 %v4699_v42 }
  0x9c   :  { %761 = vmatprep.subr.mxu1 %v4703_v44 }
  0x9d   :  { %762 = vmatpush1.msra.mxu1 %v4709_v46 }
  0x9e   :  { %763 = vmatprep.subr.mxu1 %v4713_v49  ;;  %v3183_v49 = vld [vmem:[#allocation11 + $0x10] sm:$0xff]  }
  0x9f   :  { %764 = vmatpush1.msra.mxu1 %v4719_v51  ;;  %v3184_v51 = vld [vmem:[#allocation11 + $0x18] sm:$0xff]   ;;  %v5034_v44 = vunpack.c.h.bf16 %v3183_v49  ;;  %v5038_v42 = vunpack.c.l.bf16 %v3183_v49 }
  0xa0   :  { %765 = vmatprep.subr.mxu1 %v4723_v53  ;;  %v4999_v53 = vunpack.c.l.bf16 %v3188_v38  ;;  %v5030_v46 = vunpack.c.l.bf16 %v3184_v51 }
  0xa1   :  { %766 = vmatpush1.msra.mxu1 %v4730_v56  ;;  %6538 = vst [vmem:[#allocation112_spill] sm:$0xff] %v5034_v44  ;;  %6539 = vst [vmem:[#allocation113_spill] sm:$0xff] %v5038_v42 }
  0xa2   :  { %767 = vmatprep.subr.mxu1 %v4739_v60  ;;  %6528 = vst [vmem:[#allocation103_spill] sm:$0xff] %v4999_v53  ;;  %v6529_v60 = vmov 0.0   ;;  %6537 = vst [vmem:[#allocation111_spill] sm:$0xff] %v5030_v46 }
  0xa3   :  { %768 = vmatpush1.msra.mxu1 %v4745_v62  ;;  %3618 = vmatprep.subr.mxu0 %v6529_v60  ;;  %v3187_v62 = vld [vmem:[#allocation11 + $0x30] sm:$0xff]  }
  0xa4   :  { %769 = vmatprep.subr.mxu1 %v4749_v1  ;;  %3619 = vmatpush3.msra.mxu0 %v4999_v53  ;;  %v5004_v1 = vunpack.c.h.bf16 %v3187_v62 }
  0xa5   :  { %770 = vmatpush1.msra.mxu1 %v4757_v11  ;;  %3620 = vmatprep.subr.mxu0 %v6529_v60  ;;  %v3185_v11 = vld [vmem:[#allocation11 + $0x20] sm:$0xff]  }
  0xa6   :  { %771 = vmatprep.subr.mxu1 %v4761_v16  ;;  %6530 = vst [vmem:[#allocation104_spill] sm:$0xff] %v5004_v1  ;;  %3621 = vmatpush3.msra.mxu0 %v5004_v1  ;;  %v5024_v56 = vunpack.c.l.bf16 %v3185_v11 }
  0xa7   :  { %772 = vmatpush1.msra.mxu1 %v4767_v20  ;;  %v5008_v20 = vunpack.c.l.bf16 %v3187_v62  ;;  %3622 = vmatprep.subr.mxu0 %v6529_v60  ;;  %v5020_v62 = vunpack.c.h.bf16 %v3185_v11  ;;  %v3182_v11 = vld [vmem:[#allocation11 + $0x8] sm:$0xff]  }
  0xa8   :  { %882 = vmatprep.subr.mxu1 %v4771_v30  ;;  %v3186_v30 = vld [vmem:[#allocation11 + $0x28] sm:$0xff]   ;;  %6535 = vst [vmem:[#allocation109_spill] sm:$0xff] %v5024_v56  ;;  %v5042_v40 = vunpack.c.h.bf16 %v3182_v11  ;;  %v5046_v37 = vunpack.c.l.bf16 %v3182_v11 }
  0xa9   :  { %6531 = vst [vmem:[#allocation105_spill] sm:$0xff] %v5008_v20  ;;  %3623 = vmatpush3.msra.mxu0 %v5008_v20  ;;  %v5012_v38 = vunpack.c.h.bf16 %v3186_v30  ;;  %v5016_v16 = vunpack.c.l.bf16 %v3186_v30  ;;  %6534 = vst [vmem:[#allocation108_spill] sm:$0xff] %v5020_v62  ;;  %v5028_v30 = vunpack.c.h.bf16 %v3184_v51  ;;  %v3151_v51 = vld [vmem:[#allocation11] sm:$0xff]  }
  0xaa   :  { %3624 = vmatprep.subr.mxu0 %v6529_v60  ;;  %6540 = vst [vmem:[#allocation114_spill] sm:$0xff] %v5042_v40  ;;  %6541 = vst [vmem:[#allocation115_spill] sm:$0xff] %v5046_v37  ;;  %v5054_v49 = vunpack.c.l.bf16 %v3151_v51 }
  0xab   :  { %6532 = vst [vmem:[#allocation106_spill] sm:$0xff] %v5012_v38  ;;  %3625 = vmatpush3.msra.mxu0 %v5012_v38  ;;  %6533 = vst [vmem:[#allocation107_spill] sm:$0xff] %v5016_v16 }
  0xac   :  { %3626 = vmatprep.subr.mxu0 %v6529_v60  ;;  %6536 = vst [vmem:[#allocation110_spill] sm:$0xff] %v5028_v30  ;;  %6543 = vst [vmem:[#allocation117_spill] sm:$0xff] %v5054_v49 }
  0xad   :  { %3627 = vmatpush3.msra.mxu0 %v5016_v16 }
  0xae   :  { %3628 = vmatprep.subr.mxu0 %v6529_v60 }
  0xaf   :  { %3629 = vmatpush3.msra.mxu0 %v5020_v62 }
  0xb0   :  { %3630 = vmatprep.subr.mxu0 %v6529_v60 }
  0xb1   :  { %3631 = vmatpush3.msra.mxu0 %v5024_v56 }
  0xb2   :  { %3632 = vmatprep.subr.mxu0 %v6529_v60 }
  0xb3   :  { %3633 = vmatpush3.msra.mxu0 %v5028_v30 }
  0xb4   :  { %3634 = vmatprep.subr.mxu0 %v6529_v60 }
  0xb5   :  { %3635 = vmatpush3.msra.mxu0 %v5030_v46  ;;  %v5050_v46 = vunpack.c.h.bf16 %v3151_v51 }
  0xb6   :  { %3636 = vmatprep.subr.mxu0 %v6529_v60 }
  0xb7   :  { %3637 = vmatpush3.msra.mxu0 %v5034_v44  ;;  %6542 = vst [vmem:[#allocation116_spill] sm:$0xff] %v5050_v46 }
  0xb8   :  { %3638 = vmatprep.subr.mxu0 %v6529_v60 }
  0xb9   :  { %3639 = vmatpush3.msra.mxu0 %v5038_v42 }
  0xba   :  { %3640 = vmatprep.subr.mxu0 %v6529_v60 }
  0xbb   :  { %3641 = vmatpush3.msra.mxu0 %v5042_v40 }
  0xbc   :  { %3642 = vmatprep.subr.mxu0 %v6529_v60 }
  0xbd   :  { %3643 = vmatpush3.msra.mxu0 %v5046_v37  ;;  %v5064_v37 = vld [vmem:[%s6207_s4] ss:$0 sm:$0xff] }
  0xbe   :  { %3644 = vmatprep.subr.mxu0 %v6529_v60 }
  0xbf   :  { %3645 = vmatpush3.msra.mxu0 %v5050_v46 }
  0xc0   :  { %3646 = vmatprep.subr.mxu0 %v6529_v60 }
  0xc1   :  { %3647 = vmatpush3.msra.mxu0 %v5054_v49  ;;  %v5070_v49 = vld [vmem:[%s6208_s5] ss:$0 sm:$0xff] }
  0xc2   :  { %3651 = vmatprep.subr.mxu0 %v6529_v60  ;;  %6544 = vst [vmem:[#allocation118_spill] sm:$0xff] %v5070_v49 }
 0x120   :  { %v381_v42 = vpop.f32.mrf.mxu0 }
 0x122   :  { %v383_v44 = vpop.f32.mrf.mxu0 }
 0x126   :  { %v452_v11 = vpop.f32.mrf.mxu1 }
 0x128   :  { %v3580_v40 = vpop.f32.mrf.mxu1 }
 0x140   :  { %v522_v51 = vpop.f32.mrf.mxu0 }
 0x141   :  { %v597_v35 = vadd.f32 %v522_v51, %v381_v42 }
 0x142   :  { %v524_v30 = vpop.f32.mrf.mxu0 }
 0x143   :  { %v604_v46 = vadd.f32 %v5064_v37, %v597_v35  ;;  %v611_v31 = vadd.f32 %v524_v30, %v383_v44  ;;  %v5076_v35 = vld [vmem:[%s6210_s7] ss:$0 sm:$0xff] }
 0x145   :  { %v3132_v33 = vmul.f32 -1.442695, %v604_v46  ;;  %v618_v40 = vadd.f32 %v5070_v49, %v611_v31  ;;  %v5082_v31 = vld [vmem:[%s6209_s6] ss:$0 sm:$0xff] }
 0x147   :  { %4293 = vpow2.f32 %v3132_v33  ;;  %v3134_v26 = vmul.f32 -1.442695, %v618_v40 }
 0x148   :  { %v593_v56 = vpop.f32.mrf.mxu1 }
 0x149   :  { %4295 = vpow2.f32 %v3134_v26  ;;  %v638_v46 = vadd.f32 %v5076_v35, %v593_v56  ;;  %v631_v26 = vadd.f32 %v5082_v31, %v452_v11  ;;  %v6545_v56 = vld [vmem:[#allocation58_spill] sm:$0xff]  ;;  %v5126_v11 = vld [vmem:[%s6212_s9] ss:$0 sm:$0xff] }
 0x14a   :  { %v3615_v28 = vpop.f32.mrf.mxu1 }
 0x154   :  { %v4294_v62 = vpop.eup %4293 }
 0x155   :  { %v608_v23 = vadd.f32 1.0, %v4294_v62 }
 0x156   :  { %v4296_v42 = vpop.eup %4295 }
 0x157   :  { %4297 = vrcp.f32 %v608_v23  ;;  %v622_v44 = vadd.f32 1.0, %v4296_v42 }
 0x159   :  { %4299 = vrcp.f32 %v622_v44 }
 0x164   :  { %v4298_v28 = vpop.eup %4297 }
 0x165   :  { %v639_v33 = vmul.f32 %v4298_v28, %v638_v46 }
 0x166   :  { %v4300_v62 = vpop.eup %4299 }
 0x167   :  { %v640_v23 = vadd.f32 %v639_v33, %v631_v26  ;;  %v642_v30 = vsub.f32 1.0, %v4300_v62  ;;  %v644_v42 = vmul.f32 %v4300_v62, %v4929_v43  ;;  %v6546_v43 = vld [vmem:[#allocation61_spill] sm:$0xff] }
 0x169   :  { %4301 = vtanh.f32 %v640_v23  ;;  %v6547_v23 = vld [vmem:[#allocation43_spill] sm:$0xff] }
 0x176   :  { %v4302_v51 = vpop.eup %4301 }
 0x177   :  { %v643_v40 = vmul.f32 %v4302_v51, %v642_v30 }
 0x179   :  { %v5086_v49 = vadd.f32 %v644_v42, %v643_v40 }
 0x17b   :  { %3649 = vmatmul.mubr.f32.vlgmr.msra.gmra.mxu0 %v5086_v49 }
 0x17c   :  { %3652 = vmatpush3.msra.mxu0 %v4655_v22  ;;  %3683 = vmatprep.mubr.msk.f32.mxu0 %vm4539_vm0, %v6529_v60 }
 0x17d   :  { %3653 = vmatprep.subr.mxu0 %v6529_v60 }
 0x17e   :  { %3654 = vmatpush3.msra.mxu0 %v4660_v25 }
 0x17f   :  { %3655 = vmatprep.subr.mxu0 %v6529_v60 }
 0x180   :  { %3656 = vmatpush3.msra.mxu0 %v4666_v27 }
 0x181   :  { %3657 = vmatprep.subr.mxu0 %v6529_v60 }
 0x182   :  { %3658 = vmatpush3.msra.mxu0 %v4676_v32 }
 0x183   :  { %3659 = vmatprep.subr.mxu0 %v6529_v60 }
 0x184   :  { %3660 = vmatpush3.msra.mxu0 %v4686_v36 }
 0x185   :  { %3661 = vmatprep.subr.mxu0 %v6529_v60 }
 0x186   :  { %3662 = vmatpush3.msra.mxu0 %v4696_v41 }
 0x187   :  { %3663 = vmatprep.subr.mxu0 %v6529_v60 }
 0x188   :  { %3664 = vmatpush3.msra.mxu0 %v4706_v45 }
 0x189   :  { %3665 = vmatprep.subr.mxu0 %v6529_v60 }
 0x18a   :  { %3666 = vmatpush3.msra.mxu0 %v4716_v50 }
 0x18b   :  { %3667 = vmatprep.subr.mxu0 %v6529_v60 }
 0x18c   :  { %3668 = vmatpush3.msra.mxu0 %v4727_v55 }
 0x18d   :  { %3669 = vmatprep.subr.mxu0 %v6529_v60 }
 0x18e   :  { %3670 = vmatpush3.msra.mxu0 %v4742_v61 }
 0x18f   :  { %3671 = vmatprep.subr.mxu0 %v6529_v60 }
 0x190   :  { %3672 = vmatpush3.msra.mxu0 %v4754_v8 }
 0x191   :  { %3673 = vmatprep.subr.mxu0 %v6529_v60 }
 0x192   :  { %3674 = vmatpush3.msra.mxu0 %v4764_v13 }
 0x193   :  { %3675 = vmatprep.subr.mxu0 %v6529_v60 }
 0x194   :  { %3676 = vmatpush3.msra.mxu0 %v4778_v39 }
 0x195   :  { %3677 = vmatprep.subr.mxu0 %v6529_v60 }
 0x196   :  { %3678 = vmatpush3.msra.mxu0 %v4788_v54 }
 0x197   :  { %3679 = vmatprep.subr.mxu0 %v6529_v60 }
 0x198   :  { %3680 = vmatpush3.msra.mxu0 %v6545_v56  ;;  %v302_v56 = vlaneseq }
 0x199   :  { %3681 = vmatprep.subr.mxu0 %v6529_v60 }
 0x19a   :  { %3682 = vmatpush3.msra.mxu0 %v6546_v43  ;;  %v303_v54 = vand.u32 127, %v302_v56  ;;  %v6549_v56 = vld [vmem:[#allocation66_spill] sm:$0xff] }
 0x19b   :  { %3686 = vmatprep.subr.mxu0 %v6529_v60 }
 0x19c   :  { %vm304_vm2 = vcmp.lt.s32.totalorder %v303_v54, 64  ;;  %v6550_v54 = vld [vmem:[#allocation53_spill] sm:$0xff] }
 0x19d   :  { %v5132_v39 = vsel %vm304_vm2, 1.0, %v6529_v60 }
 0x23b   :  { %v718_v44 = vpop.f32.mrf.mxu0 }
 0x23c   :  { %v719_v46 = vadd.f32 %v5126_v11, %v718_v44 }
 0x23d   :  { %v3650_v28 = vpop.f32.mrf.mxu0 }
 0x23e   :  { %v723_v26 = vmin.f32 %v719_v46, 0.0  ;;  %v722_v33 = vmax.f32 %v719_v46, 0.0 }
 0x240   :  { %v724_v62 = vmul.f32 %v723_v26, %v6547_v23 }
 0x242   :  { %v725_v30 = vadd.f32 %v724_v62, %v722_v33 }
 0x244   :  { %v727_v51 = vsel %vm726_vm1, %v725_v30, -inf }
 0x245   :  { %728 = vmax.xlane.f32.xlu0 %v727_v51  ;;  %v6552_v51 = vld [vmem:[#allocation69_spill] sm:$0xff] }
 0x2ce   :  { %v729_v40 = vpop.xlane.xlu0 %728 }
 0x2cf   :  { %v730_v42 = vsub.f32 %v725_v30, %v729_v40  ;;  %v6551_v30 = vld [vmem:[#allocation54_spill] sm:$0xff]  ;;  %v6553_v40 = vld [vmem:[#allocation56_spill] sm:$0xff] }
 0x2d1   :  { %v731_v43 = vmul.f32 1.442695, %v730_v42  ;;  %v6554_v42 = vld [vmem:[#allocation57_spill] sm:$0xff] }
 0x2d3   :  { %4303 = vpow2.f32 %v731_v43  ;;  %v6548_v43 = vld [vmem:[#allocation51_spill] sm:$0xff] }
 0x2e0   :  { %v4304_v44 = vpop.eup %4303 }
 0x2e1   :  { %v733_v46 = vmul.f32 %v4304_v44, %v5132_v39  ;;  %v6555_v44 = vld [vmem:[#allocation72_spill] sm:$0xff] }
 0x2e3   :  { %v734_v28 = vsel %vm726_vm1, %v733_v46, 0.0 }
 0x2e4   :  { %735 = vadd.xlane.f32.xlu0 %v734_v28  ;;  %v6557_v28 = vld [vmem:[#allocation60_spill] sm:$0xff] }
 0x36d   :  { %v736_v26 = vpop.xlane.xlu0 %735 }
 0x36e   :  { %4305 = vrcp.f32 %v736_v26  ;;  %v6558_v26 = vld [vmem:[#allocation75_spill] sm:$0xff] }
 0x37b   :  { %v4306_v33 = vpop.eup %4305 }
 0x37c   :  { %v738_v62 = vmul.f32 %v4306_v33, %v733_v46  ;;  %v6556_v46 = vld [vmem:[#allocation59_spill] sm:$0xff]  ;;  %v6559_v33 = vld [vmem:[#allocation62_spill] sm:$0xff] }
 0x37e   :  { %740 = vst [vmem:[#allocation12 + $0x4] sm:$0xf] %v738_v62  ;;  %806 = vmatmul.mubr.f32.vlgmr.msra.gmra.mxu1 %v738_v62  ;;  %3684 = vmatmul.mubr.f32.vlgmr.msra.gmra.mxu0 %v738_v62  ;;  %v6560_v62 = vld [vmem:[#allocation63_spill] sm:$0xff] }
 0x37f   :  { %883 = vmatpush1.msra.mxu1 %v6548_v43  ;;  %3687 = vmatpush3.msra.mxu0 %v6549_v56 }
 0x380   :  { %884 = vmatprep.subr.mxu1 %v6550_v54  ;;  %3688 = vmatprep.subr.mxu0 %v6529_v60 }
 0x381   :  { %885 = vmatpush1.msra.mxu1 %v6551_v30  ;;  %3689 = vmatpush3.msra.mxu0 %v6552_v51  ;;  %v6562_v51 = vld [vmem:[#allocation64_spill] sm:$0xff] }
 0x382   :  { %886 = vmatprep.subr.mxu1 %v6553_v40  ;;  %3690 = vmatprep.subr.mxu0 %v6529_v60  ;;  %v6561_v40 = vld [vmem:[#allocation78_spill] sm:$0xff] }
 0x383   :  { %887 = vmatpush1.msra.mxu1 %v6554_v42  ;;  %3691 = vmatpush3.msra.mxu0 %v6555_v44  ;;  %v6563_v44 = vld [vmem:[#allocation65_spill] sm:$0xff] }
 0x384   :  { %888 = vmatprep.subr.mxu1 %v6556_v46  ;;  %3692 = vmatprep.subr.mxu0 %v6529_v60  ;;  %v6564_v46 = vld [vmem:[#allocation67_spill] sm:$0xff] }
 0x385   :  { %889 = vmatpush1.msra.mxu1 %v6557_v28  ;;  %3693 = vmatpush3.msra.mxu0 %v6558_v26  ;;  %v6565_v26 = vld [vmem:[#allocation68_spill] sm:$0xff]  ;;  %v6567_v28 = vld [vmem:[#allocation70_spill] sm:$0xff] }
 0x386   :  { %890 = vmatprep.subr.mxu1 %v6559_v33  ;;  %3694 = vmatprep.subr.mxu0 %v6529_v60  ;;  %v6566_v33 = vld [vmem:[#allocation84_spill] sm:$0xff] }
 0x387   :  { %891 = vmatpush1.msra.mxu1 %v6560_v62  ;;  %3695 = vmatpush3.msra.mxu0 %v6561_v40  ;;  %v6568_v40 = vld [vmem:[#allocation71_spill] sm:$0xff] }
 0x388   :  { %892 = vmatprep.subr.mxu1 %v6562_v51  ;;  %3696 = vmatprep.subr.mxu0 %v6529_v60  ;;  %v6569_v51 = vld [vmem:[#allocation73_spill] sm:$0xff] }
 0x389   :  { %893 = vmatpush1.msra.mxu1 %v6563_v44  ;;  %3697 = vmatpush3.msra.mxu0 %v4874_v24  ;;  %v6570_v24 = vld [vmem:[#allocation74_spill] sm:$0xff] }
 0x38a   :  { %894 = vmatprep.subr.mxu1 %v6564_v46  ;;  %3698 = vmatprep.subr.mxu0 %v6529_v60  ;;  %v6571_v46 = vld [vmem:[#allocation76_spill] sm:$0xff] }
 0x38b   :  { %895 = vmatpush1.msra.mxu1 %v6565_v26  ;;  %3699 = vmatpush3.msra.mxu0 %v6566_v33  ;;  %v6572_v33 = vld [vmem:[#allocation77_spill] sm:$0xff] }
 0x38c   :  { %896 = vmatprep.subr.mxu1 %v6567_v28  ;;  %3700 = vmatprep.subr.mxu0 %v6529_v60  ;;  %v6573_v28 = vld [vmem:[#allocation79_spill] sm:$0xff] }
 0x38d   :  { %897 = vmatpush1.msra.mxu1 %v6568_v40  ;;  %3701 = vmatpush3.msra.mxu0 %v4894_v48  ;;  %v6574_v48 = vld [vmem:[#allocation80_spill] sm:$0xff] }
 0x38e   :  { %898 = vmatprep.subr.mxu1 %v6569_v51  ;;  %3702 = vmatprep.subr.mxu0 %v6529_v60  ;;  %v6575_v51 = vld [vmem:[#allocation82_spill] sm:$0xff] }
 0x38f   :  { %899 = vmatpush1.msra.mxu1 %v6570_v24  ;;  %3703 = vmatpush3.msra.mxu0 %v4904_v19  ;;  %v6576_v19 = vld [vmem:[#allocation83_spill] sm:$0xff] }
 0x390   :  { %900 = vmatprep.subr.mxu1 %v6571_v46  ;;  %3704 = vmatprep.subr.mxu0 %v6529_v60  ;;  %v6577_v46 = vld [vmem:[#allocation85_spill] sm:$0xff] }
 0x391   :  { %901 = vmatpush1.msra.mxu1 %v6572_v33  ;;  %3705 = vmatpush3.msra.mxu0 %v4914_v34 }
 0x392   :  { %902 = vmatprep.subr.mxu1 %v6573_v28  ;;  %3706 = vmatprep.subr.mxu0 %v6529_v60  ;;  %v6578_v28 = vld [vmem:[#allocation88_spill] sm:$0xff] }
 0x393   :  { %903 = vmatpush1.msra.mxu1 %v6574_v48  ;;  %3707 = vmatpush3.msra.mxu0 %v4924_v29 }
 0x394   :  { %904 = vmatprep.subr.mxu1 %v6575_v51  ;;  %3708 = vmatprep.subr.mxu0 %v6529_v60  ;;  %v6579_v51 = vld [vmem:[#allocation91_spill] sm:$0xff] }
 0x395   :  { %905 = vmatpush1.msra.mxu1 %v6576_v19  ;;  %3709 = vmatpush3.msra.mxu0 %v4932_v63  ;;  %v6580_v63 = vld [vmem:[#allocation92_spill] sm:$0xff] }
 0x396   :  { %906 = vmatprep.subr.mxu1 %v6577_v46  ;;  %3710 = vmatprep.subr.mxu0 %v6529_v60 }
 0x397   :  { %907 = vmatpush1.msra.mxu1 %v4891_v47  ;;  %3711 = vmatpush3.msra.mxu0 %v4938_v2 }
 0x398   :  { %908 = vmatprep.subr.mxu1 %v6578_v28  ;;  %3712 = vmatprep.subr.mxu0 %v6529_v60 }
 0x399   :  { %909 = vmatpush1.msra.mxu1 %v4901_v59  ;;  %3713 = vmatpush3.msra.mxu0 %v4943_v15 }
 0x39a   :  { %910 = vmatprep.subr.mxu1 %v6579_v51  ;;  %3714 = vmatprep.subr.mxu0 %v6529_v60 }
 0x39b   :  { %911 = vmatpush1.msra.mxu1 %v6580_v63  ;;  %3715 = vmatpush3.msra.mxu0 %v4950_v3 }
 0x39c   :  { %912 = vmatprep.subr.mxu1 %v4917_v58  ;;  %3716 = vmatprep.subr.mxu0 %v6529_v60 }
 0x39d   :  { %913 = vmatpush1.msra.mxu1 %v4921_v52  ;;  %946 = vmatprep.mubr.f32.mxu1 %v6529_v60 }
 0x39e   :  { %3717 = vmatpush3.msra.mxu0 %v4956_v57  ;;  %3718 = vmatprep.mubr.msk.f32.mxu0 %vm4539_vm0, %v6529_v60 }
 0x39f   :  { %947 = vmatmul.mubr.f32.vlgmr.msra.gmra.mxu1 %v5086_v49  ;;  %3719 = vmatmul.mubr.f32.vlgmr.msra.gmra.mxu0 %v5086_v49 }
 0x3a0   :  { %3721 = vmatprep.subr.mxu1 %v6529_v60  ;;  %3753 = vmatprep.mubr.msk.f32.mxu1 %vm4539_vm0, %v6529_v60 }
 0x3a1   :  { %3722 = vmatpush3.msra.mxu1 %v4997_v0  ;;  %1136 = vmatprep.subr.mxu0 %v4623_v4 }
 0x3a2   :  { %3723 = vmatprep.subr.mxu1 %v6529_v60  ;;  %1137 = vmatpush1.msra.mxu0 %v4625_v5  ;;  %v6613_v5 = vld [vmem:[#allocation118_spill] sm:$0xff] }
 0x3a3   :  { %3724 = vmatpush3.msra.mxu1 %v4999_v53  ;;  %1138 = vmatprep.subr.mxu0 %v4627_v6 }
 0x3a4   :  { %3725 = vmatprep.subr.mxu1 %v6529_v60  ;;  %1139 = vmatpush1.msra.mxu0 %v4629_v7 }
 0x3a5   :  { %3726 = vmatpush3.msra.mxu1 %v5004_v1  ;;  %1140 = vmatprep.subr.mxu0 %v4632_v9 }
 0x3a6   :  { %3727 = vmatprep.subr.mxu1 %v6529_v60  ;;  %1141 = vmatpush1.msra.mxu0 %v4635_v10  ;;  %v6583_v10 = vld [vmem:[#allocation29_spill] sm:$0xff] }
 0x3a7   :  { %3728 = vmatpush3.msra.mxu1 %v5008_v20  ;;  %1142 = vmatprep.subr.mxu0 %v4638_v12  ;;  %v6581_v20 = vld [vmem:[#allocation28_spill] sm:$0xff] }
 0x3a8   :  { %3729 = vmatprep.subr.mxu1 %v6529_v60  ;;  %1143 = vmatpush1.msra.mxu0 %v4643_v14  ;;  %v6582_v12 = vld [vmem:[#allocation108_spill] sm:$0xff]  ;;  %v6586_v14 = vld [vmem:[#allocation31_spill] sm:$0xff] }
 0x3a9   :  { %3730 = vmatpush3.msra.mxu1 %v5012_v38  ;;  %1144 = vmatprep.subr.mxu0 %v4647_v17  ;;  %v6584_v38 = vld [vmem:[#allocation30_spill] sm:$0xff]  ;;  %v6585_v17 = vld [vmem:[#allocation109_spill] sm:$0xff] }
 0x3aa   :  { %3731 = vmatprep.subr.mxu1 %v6529_v60  ;;  %1145 = vmatpush1.msra.mxu0 %v4650_v18  ;;  %v6589_v18 = vld [vmem:[#allocation33_spill] sm:$0xff] }
 0x3ab   :  { %3732 = vmatpush3.msra.mxu1 %v5016_v16  ;;  %1146 = vmatprep.subr.mxu0 %v4653_v21  ;;  %v6587_v16 = vld [vmem:[#allocation32_spill] sm:$0xff]  ;;  %v6588_v21 = vld [vmem:[#allocation110_spill] sm:$0xff] }
 0x3ac   :  { %3733 = vmatprep.subr.mxu1 %v6529_v60  ;;  %1147 = vmatpush1.msra.mxu0 %v6581_v20  ;;  %v6592_v20 = vld [vmem:[#allocation35_spill] sm:$0xff] }
 0x3ad   :  { %3734 = vmatpush3.msra.mxu1 %v6582_v12  ;;  %1148 = vmatprep.subr.mxu0 %v6583_v10  ;;  %v6590_v12 = vld [vmem:[#allocation34_spill] sm:$0xff]  ;;  %v6591_v10 = vld [vmem:[#allocation111_spill] sm:$0xff] }
 0x3ae   :  { %3735 = vmatprep.subr.mxu1 %v6529_v60  ;;  %1149 = vmatpush1.msra.mxu0 %v6584_v38  ;;  %v6595_v38 = vld [vmem:[#allocation37_spill] sm:$0xff] }
 0x3af   :  { %3736 = vmatpush3.msra.mxu1 %v6585_v17  ;;  %1150 = vmatprep.subr.mxu0 %v6586_v14  ;;  %v6593_v17 = vld [vmem:[#allocation36_spill] sm:$0xff] }
 0x3b0   :  { %3737 = vmatprep.subr.mxu1 %v6529_v60  ;;  %1151 = vmatpush1.msra.mxu0 %v6587_v16  ;;  %v6594_v14 = vld [vmem:[#allocation112_spill] sm:$0xff]  ;;  %v6598_v16 = vld [vmem:[#allocation39_spill] sm:$0xff] }
 0x3b1   :  { %3738 = vmatpush3.msra.mxu1 %v6588_v21  ;;  %1152 = vmatprep.subr.mxu0 %v6589_v18  ;;  %v6596_v21 = vld [vmem:[#allocation38_spill] sm:$0xff]  ;;  %v6597_v18 = vld [vmem:[#allocation113_spill] sm:$0xff] }
 0x3b2   :  { %3739 = vmatprep.subr.mxu1 %v6529_v60  ;;  %1153 = vmatpush1.msra.mxu0 %v6590_v12  ;;  %v6601_v12 = vld [vmem:[#allocation41_spill] sm:$0xff] }
 0x3b3   :  { %3740 = vmatpush3.msra.mxu1 %v6591_v10  ;;  %1154 = vmatprep.subr.mxu0 %v6592_v20  ;;  %v6599_v10 = vld [vmem:[#allocation40_spill] sm:$0xff]  ;;  %v6600_v20 = vld [vmem:[#allocation114_spill] sm:$0xff] }
 0x3b4   :  { %3741 = vmatprep.subr.mxu1 %v6529_v60  ;;  %1155 = vmatpush1.msra.mxu0 %v6593_v17  ;;  %v6604_v17 = vld [vmem:[#allocation44_spill] sm:$0xff] }
 0x3b5   :  { %3742 = vmatpush3.msra.mxu1 %v6594_v14  ;;  %1156 = vmatprep.subr.mxu0 %v6595_v38  ;;  %v6602_v14 = vld [vmem:[#allocation42_spill] sm:$0xff]  ;;  %v6603_v38 = vld [vmem:[#allocation115_spill] sm:$0xff] }
 0x3b6   :  { %3743 = vmatprep.subr.mxu1 %v6529_v60  ;;  %1157 = vmatpush1.msra.mxu0 %v6596_v21  ;;  %v6607_v21 = vld [vmem:[#allocation46_spill] sm:$0xff] }
 0x3b7   :  { %3744 = vmatpush3.msra.mxu1 %v6597_v18  ;;  %1158 = vmatprep.subr.mxu0 %v6598_v16  ;;  %v6605_v18 = vld [vmem:[#allocation45_spill] sm:$0xff]  ;;  %v6606_v16 = vld [vmem:[#allocation116_spill] sm:$0xff] }
 0x3b8   :  { %3745 = vmatprep.subr.mxu1 %v6529_v60  ;;  %1159 = vmatpush1.msra.mxu0 %v6599_v10  ;;  %v6610_v10 = vld [vmem:[#allocation48_spill] sm:$0xff] }
 0x3b9   :  { %3746 = vmatpush3.msra.mxu1 %v6600_v20  ;;  %1160 = vmatprep.subr.mxu0 %v6601_v12  ;;  %v6608_v20 = vld [vmem:[#allocation47_spill] sm:$0xff]  ;;  %v6609_v12 = vld [vmem:[#allocation117_spill] sm:$0xff] }
 0x3ba   :  { %3747 = vmatprep.subr.mxu1 %v6529_v60  ;;  %1161 = vmatpush1.msra.mxu0 %v6602_v14 }
 0x3bb   :  { %3748 = vmatpush3.msra.mxu1 %v6603_v38  ;;  %1162 = vmatprep.subr.mxu0 %v6604_v17  ;;  %v6611_v38 = vld [vmem:[#allocation49_spill] sm:$0xff]  ;;  %v6612_v17 = vld [vmem:[#allocation50_spill] sm:$0xff] }
 0x3bc   :  { %3749 = vmatprep.subr.mxu1 %v6529_v60  ;;  %1163 = vmatpush1.msra.mxu0 %v6605_v18 }
 0x3bd   :  { %3750 = vmatpush3.msra.mxu1 %v6606_v16  ;;  %1164 = vmatprep.subr.mxu0 %v6607_v21 }
 0x3be   :  { %3751 = vmatprep.subr.mxu1 %v6529_v60  ;;  %1165 = vmatpush1.msra.mxu0 %v6608_v20 }
 0x3bf   :  { %3752 = vmatpush3.msra.mxu1 %v6609_v12  ;;  %1166 = vmatprep.subr.mxu0 %v6610_v10 }
 0x3c0   :  { %3756 = vmatprep.subr.mxu1 %v6529_v60  ;;  %1167 = vmatpush1.msra.mxu0 %v6611_v38 }
 0x3c1   :  { %1200 = vmatprep.mubr.f32.mxu0 %v6529_v60  ;;  %1277 = vmatprep.subr.mxu0 %v6612_v17 }
 0x43e   :  { %v878_v18 = vpop.f32.mrf.mxu0  ;;  %v807_v14 = vpop.f32.mrf.mxu1 }
 0x440   :  { %v3685_v16 = vpop.f32.mrf.mxu0  ;;  %v809_v21 = vpop.f32.mrf.mxu1 }
 0x45f   :  { %v948_v9 = vpop.f32.mrf.mxu1  ;;  %v1019_v1 = vpop.f32.mrf.mxu0 }
 0x460   :  { %v1023_v7 = vadd.f32 %v948_v9, %v807_v14  ;;  %v1040_v52 = vadd.f32 %v5076_v35, %v1019_v1  ;;  %v1039_v9 = vadd.f32 %v5082_v31, %v878_v18  ;;  %v6616_v18 = vld [vmem:[#allocation58_spill] sm:$0xff]  ;;  %v6617_v1 = vld [vmem:[#allocation61_spill] sm:$0xff] }
 0x461   :  { %v950_v20 = vpop.f32.mrf.mxu1  ;;  %v3720_v6 = vpop.f32.mrf.mxu0 }
 0x462   :  { %v1024_v12 = vadd.f32 %v5064_v37, %v1023_v7  ;;  %v1031_v53 = vadd.f32 %v950_v20, %v809_v21 }
 0x464   :  { %v3138_v10 = vmul.f32 -1.442695, %v1024_v12  ;;  %v1032_v38 = vadd.f32 %v6613_v5, %v1031_v53 }
 0x466   :  { %4307 = vpow2.f32 %v3138_v10  ;;  %v3139_v4 = vmul.f32 -1.442695, %v1032_v38 }
 0x468   :  { %4309 = vpow2.f32 %v3139_v4 }
 0x473   :  { %v4308_v0 = vpop.eup %4307 }
 0x474   :  { %v1028_v17 = vadd.f32 1.0, %v4308_v0  ;;  %v6614_v0 = vld [vmem:[#allocation52_spill] sm:$0xff] }
 0x475   :  { %v4310_v16 = vpop.eup %4309 }
 0x476   :  { %4311 = vrcp.f32 %v1028_v17  ;;  %v1036_v57 = vadd.f32 1.0, %v4310_v16  ;;  %v6615_v17 = vld [vmem:[#allocation55_spill] sm:$0xff] }
 0x478   :  { %4313 = vrcp.f32 %v1036_v57 }
 0x483   :  { %v4312_v58 = vpop.eup %4311 }
 0x484   :  { %v1041_v6 = vmul.f32 %v4312_v58, %v1040_v52 }
 0x485   :  { %v4314_v12 = vpop.eup %4313 }
 0x486   :  { %v1042_v7 = vadd.f32 %v1041_v6, %v1039_v9  ;;  %v1044_v10 = vsub.f32 1.0, %v4314_v12  ;;  %v1046_v4 = vmul.f32 %v4314_v12, %v5086_v49 }
 0x488   :  { %4315 = vtanh.f32 %v1042_v7 }
 0x495   :  { %v4316_v14 = vpop.eup %4315 }
 0x496   :  { %v1045_v21 = vmul.f32 %v4316_v14, %v1044_v10 }
 0x498   :  { %v5277_v53 = vadd.f32 %v1046_v4, %v1045_v21 }
 0x49a   :  { %3754 = vmatmul.mubr.f32.vlgmr.msra.gmra.mxu1 %v5277_v53 }
 0x49b   :  { %3757 = vmatpush3.msra.mxu1 %v4655_v22  ;;  %3788 = vmatprep.mubr.msk.f32.mxu1 %vm4539_vm0, %v6529_v60 }
 0x49c   :  { %3758 = vmatprep.subr.mxu1 %v6529_v60 }
 0x49d   :  { %3759 = vmatpush3.msra.mxu1 %v4660_v25 }
 0x49e   :  { %3760 = vmatprep.subr.mxu1 %v6529_v60 }
 0x49f   :  { %3761 = vmatpush3.msra.mxu1 %v4666_v27 }
 0x4a0   :  { %3762 = vmatprep.subr.mxu1 %v6529_v60 }
 0x4a1   :  { %3763 = vmatpush3.msra.mxu1 %v4676_v32 }
 0x4a2   :  { %3764 = vmatprep.subr.mxu1 %v6529_v60 }
 0x4a3   :  { %3765 = vmatpush3.msra.mxu1 %v4686_v36 }
 0x4a4   :  { %3766 = vmatprep.subr.mxu1 %v6529_v60 }
 0x4a5   :  { %3767 = vmatpush3.msra.mxu1 %v4696_v41 }
 0x4a6   :  { %3768 = vmatprep.subr.mxu1 %v6529_v60 }
 0x4a7   :  { %3769 = vmatpush3.msra.mxu1 %v4706_v45 }
 0x4a8   :  { %3770 = vmatprep.subr.mxu1 %v6529_v60 }
 0x4a9   :  { %3771 = vmatpush3.msra.mxu1 %v4716_v50 }
 0x4aa   :  { %3772 = vmatprep.subr.mxu1 %v6529_v60 }
 0x4ab   :  { %3773 = vmatpush3.msra.mxu1 %v4727_v55 }
 0x4ac   :  { %3774 = vmatprep.subr.mxu1 %v6529_v60 }
 0x4ad   :  { %3775 = vmatpush3.msra.mxu1 %v4742_v61 }
 0x4ae   :  { %3776 = vmatprep.subr.mxu1 %v6529_v60 }
 0x4af   :  { %3777 = vmatpush3.msra.mxu1 %v4754_v8 }
 0x4b0   :  { %3778 = vmatprep.subr.mxu1 %v6529_v60 }
 0x4b1   :  { %3779 = vmatpush3.msra.mxu1 %v4764_v13 }
 0x4b2   :  { %3780 = vmatprep.subr.mxu1 %v6529_v60 }
 0x4b3   :  { %3781 = vmatpush3.msra.mxu1 %v6614_v0 }
 0x4b4   :  { %3782 = vmatprep.subr.mxu1 %v6529_v60 }
 0x4b5   :  { %3783 = vmatpush3.msra.mxu1 %v6615_v17 }
 0x4b6   :  { %3784 = vmatprep.subr.mxu1 %v6529_v60 }
 0x4b7   :  { %3785 = vmatpush3.msra.mxu1 %v6616_v18 }
 0x4b8   :  { %3786 = vmatprep.subr.mxu1 %v6529_v60 }
 0x4b9   :  { %3787 = vmatpush3.msra.mxu1 %v6617_v1 }
 0x4ba   :  { %3791 = vmatprep.subr.mxu1 %v6529_v60 }
 0x55a   :  { %v1114_v20 = vpop.f32.mrf.mxu1 }
 0x55b   :  { %v1115_v52 = vadd.f32 %v5126_v11, %v1114_v20 }
 0x55c   :  { %v3755_v58 = vpop.f32.mrf.mxu1 }
 0x55d   :  { %v1119_v57 = vmin.f32 %v1115_v52, 0.0  ;;  %v1118_v38 = vmax.f32 %v1115_v52, 0.0  ;;  %v6618_v58 = vld [vmem:[#allocation69_spill] sm:$0xff] }
 0x55f   :  { %v1120_v49 = vmul.f32 %v1119_v57, %v6547_v23  ;;  %v6619_v57 = vld [vmem:[#allocation56_spill] sm:$0xff] }
 0x561   :  { %v1121_v16 = vadd.f32 %v1120_v49, %v1118_v38  ;;  %v6620_v38 = vld [vmem:[#allocation72_spill] sm:$0xff]  ;;  %v6621_v49 = vld [vmem:[#allocation59_spill] sm:$0xff] }
 0x563   :  { %v1122_v9 = vsel %vm726_vm1, %v1121_v16, -inf }
 0x564   :  { %1123 = vmax.xlane.f32.xlu1 %v1122_v9  ;;  %v6623_v9 = vld [vmem:[#allocation75_spill] sm:$0xff] }
 0x5ed   :  { %v1124_v6 = vpop.xlane.xlu1 %1123 }
 0x5ee   :  { %v1125_v7 = vsub.f32 %v1121_v16, %v1124_v6  ;;  %v6622_v16 = vld [vmem:[#allocation60_spill] sm:$0xff]  ;;  %v6624_v6 = vld [vmem:[#allocation62_spill] sm:$0xff] }
 0x5f0   :  { %v1126_v12 = vmul.f32 1.442695, %v1125_v7  ;;  %v6625_v7 = vld [vmem:[#allocation78_spill] sm:$0xff] }
 0x5f2   :  { %4317 = vpow2.f32 %v1126_v12  ;;  %v6626_v12 = vld [vmem:[#allocation64_spill] sm:$0xff] }
 0x5ff   :  { %v4318_v10 = vpop.eup %4317 }
 0x600   :  { %v1128_v14 = vmul.f32 %v4318_v10, %v5132_v39  ;;  %v6627_v10 = vld [vmem:[#allocation81_spill] sm:$0xff] }
 0x602   :  { %v1129_v21 = vsel %vm726_vm1, %v1128_v14, 0.0 }
 0x603   :  { %1130 = vadd.xlane.f32.xlu1 %v1129_v21  ;;  %v6629_v21 = vld [vmem:[#allocation84_spill] sm:$0xff] }
 0x68c   :  { %v1131_v4 = vpop.xlane.xlu1 %1130 }
 0x68d   :  { %4319 = vrcp.f32 %v1131_v4  ;;  %v6630_v4 = vld [vmem:[#allocation70_spill] sm:$0xff] }
 0x69a   :  { %v4320_v20 = vpop.eup %4319 }
 0x69b   :  { %v1133_v52 = vmul.f32 %v4320_v20, %v1128_v14  ;;  %v6628_v14 = vld [vmem:[#allocation67_spill] sm:$0xff] }
 0x69c   :  { %v6631_v20 = vld [vmem:[#allocation87_spill] sm:$0xff] }
 0x69d   :  { %1135 = vst [vmem:[#allocation12 + $0x8] sm:$0xf] %v1133_v52  ;;  %1201 = vmatmul.mubr.f32.vlgmr.msra.gmra.mxu0 %v1133_v52  ;;  %3789 = vmatmul.mubr.f32.vlgmr.msra.gmra.mxu1 %v1133_v52  ;;  %v6632_v52 = vld [vmem:[#allocation73_spill] sm:$0xff] }
 0x69e   :  { %1278 = vmatpush1.msra.mxu0 %v6548_v43  ;;  %3792 = vmatpush3.msra.mxu1 %v6549_v56 }
 0x69f   :  { %1279 = vmatprep.subr.mxu0 %v6550_v54  ;;  %3793 = vmatprep.subr.mxu1 %v6529_v60 }
 0x6a0   :  { %1280 = vmatpush1.msra.mxu0 %v6551_v30  ;;  %3794 = vmatpush3.msra.mxu1 %v6618_v58 }
 0x6a1   :  { %1281 = vmatprep.subr.mxu0 %v6619_v57  ;;  %3795 = vmatprep.subr.mxu1 %v6529_v60 }
 0x6a2   :  { %1282 = vmatpush1.msra.mxu0 %v6554_v42  ;;  %3796 = vmatpush3.msra.mxu1 %v6620_v38 }
 0x6a3   :  { %1283 = vmatprep.subr.mxu0 %v6621_v49  ;;  %3797 = vmatprep.subr.mxu1 %v6529_v60 }
 0x6a4   :  { %1284 = vmatpush1.msra.mxu0 %v6622_v16  ;;  %3798 = vmatpush3.msra.mxu1 %v6623_v9 }
 0x6a5   :  { %1285 = vmatprep.subr.mxu0 %v6624_v6  ;;  %3799 = vmatprep.subr.mxu1 %v6529_v60 }
 0x6a6   :  { %1286 = vmatpush1.msra.mxu0 %v6560_v62  ;;  %3800 = vmatpush3.msra.mxu1 %v6625_v7 }
 0x6a7   :  { %1287 = vmatprep.subr.mxu0 %v6626_v12  ;;  %3801 = vmatprep.subr.mxu1 %v6529_v60 }
 0x6a8   :  { %1288 = vmatpush1.msra.mxu0 %v6563_v44  ;;  %3802 = vmatpush3.msra.mxu1 %v6627_v10  ;;  %v6634_v10 = vld [vmem:[#allocation76_spill] sm:$0xff] }
 0x6a9   :  { %1289 = vmatprep.subr.mxu0 %v6628_v14  ;;  %3803 = vmatprep.subr.mxu1 %v6529_v60  ;;  %v6633_v14 = vld [vmem:[#allocation90_spill] sm:$0xff] }
 0x6aa   :  { %1290 = vmatpush1.msra.mxu0 %v6565_v26  ;;  %3804 = vmatpush3.msra.mxu1 %v6629_v21 }
 0x6ab   :  { %1291 = vmatprep.subr.mxu0 %v6630_v4  ;;  %3805 = vmatprep.subr.mxu1 %v6529_v60  ;;  %v6635_v4 = vld [vmem:[#allocation79_spill] sm:$0xff] }
 0x6ac   :  { %1292 = vmatpush1.msra.mxu0 %v6568_v40  ;;  %3806 = vmatpush3.msra.mxu1 %v6631_v20 }
 0x6ad   :  { %1293 = vmatprep.subr.mxu0 %v6632_v52  ;;  %3807 = vmatprep.subr.mxu1 %v6529_v60  ;;  %v6636_v52 = vld [vmem:[#allocation82_spill] sm:$0xff] }
 0x6ae   :  { %1294 = vmatpush1.msra.mxu0 %v6570_v24  ;;  %3808 = vmatpush3.msra.mxu1 %v6633_v14 }
 0x6af   :  { %1295 = vmatprep.subr.mxu0 %v6634_v10  ;;  %3809 = vmatprep.subr.mxu1 %v6529_v60  ;;  %v6637_v10 = vld [vmem:[#allocation97_spill] sm:$0xff] }
 0x6b0   :  { %1296 = vmatpush1.msra.mxu0 %v6572_v33  ;;  %3810 = vmatpush3.msra.mxu1 %v4914_v34 }
 0x6b1   :  { %1297 = vmatprep.subr.mxu0 %v6635_v4  ;;  %3811 = vmatprep.subr.mxu1 %v6529_v60 }
 0x6b2   :  { %1298 = vmatpush1.msra.mxu0 %v6574_v48  ;;  %3812 = vmatpush3.msra.mxu1 %v4924_v29 }
 0x6b3   :  { %1299 = vmatprep.subr.mxu0 %v6636_v52  ;;  %3813 = vmatprep.subr.mxu1 %v6529_v60 }
 0x6b4   :  { %1300 = vmatpush1.msra.mxu0 %v6576_v19  ;;  %3814 = vmatpush3.msra.mxu1 %v6637_v10 }
 0x6b5   :  { %1301 = vmatprep.subr.mxu0 %v6577_v46  ;;  %3815 = vmatprep.subr.mxu1 %v6529_v60  ;;  %v6638_v46 = vld [vmem:[#allocation94_spill] sm:$0xff] }
 0x6b6   :  { %1302 = vmatpush1.msra.mxu0 %v4891_v47  ;;  %3816 = vmatpush3.msra.mxu1 %v4938_v2  ;;  %v6639_v2 = vld [vmem:[#allocation95_spill] sm:$0xff] }
 0x6b7   :  { %1303 = vmatprep.subr.mxu0 %v6578_v28  ;;  %3817 = vmatprep.subr.mxu1 %v6529_v60  ;;  %v6640_v28 = vld [vmem:[#allocation101_spill] sm:$0xff]  ;;  %v6651_v47 = vld [vmem:[#allocation23_spill] sm:$0xff] }
 0x6b8   :  { %1304 = vmatpush1.msra.mxu0 %v4901_v59  ;;  %3818 = vmatpush3.msra.mxu1 %v4943_v15  ;;  %v6647_v15 = vld [vmem:[#allocation104_spill] sm:$0xff]  ;;  %v6648_v59 = vld [vmem:[#allocation21_spill] sm:$0xff] }
 0x6b9   :  { %1305 = vmatprep.subr.mxu0 %v6579_v51  ;;  %3819 = vmatprep.subr.mxu1 %v6529_v60  ;;  %v6646_v51 = vld [vmem:[#allocation20_spill] sm:$0xff] }
 0x6ba   :  { %1306 = vmatpush1.msra.mxu0 %v6580_v63  ;;  %3820 = vmatpush3.msra.mxu1 %v4950_v3  ;;  %v6642_v3 = vld [vmem:[#allocation17_spill] sm:$0xff]  ;;  %v6645_v63 = vld [vmem:[#allocation19_spill] sm:$0xff] }
 0x6bb   :  { %1307 = vmatprep.subr.mxu0 %v6638_v46  ;;  %3821 = vmatprep.subr.mxu1 %v6529_v60  ;;  %v6641_v46 = vld [vmem:[#allocation102_spill] sm:$0xff] }
 0x6bc   :  { %1308 = vmatpush1.msra.mxu0 %v6639_v2  ;;  %1341 = vmatprep.mubr.f32.mxu0 %v6529_v60  ;;  %v6643_v2 = vld [vmem:[#allocation18_spill] sm:$0xff] }
 0x6bd   :  { %3822 = vmatpush3.msra.mxu1 %v6640_v28  ;;  %3823 = vmatprep.mubr.msk.f32.mxu1 %vm4539_vm0, %v6529_v60  ;;  %v6644_v28 = vld [vmem:[#allocation103_spill] sm:$0xff] }
 0x6be   :  { %1342 = vmatmul.mubr.f32.vlgmr.msra.gmra.mxu0 %v5277_v53  ;;  %3824 = vmatmul.mubr.f32.vlgmr.msra.gmra.mxu1 %v5277_v53 }
 0x6bf   :  { %3826 = vmatprep.subr.mxu0 %v6529_v60  ;;  %3858 = vmatprep.mubr.msk.f32.mxu0 %vm4539_vm0, %v6529_v60 }
 0x6c0   :  { %3827 = vmatpush3.msra.mxu0 %v6641_v46  ;;  %1531 = vmatprep.subr.mxu1 %v6642_v3  ;;  %v6649_v46 = vld [vmem:[#allocation22_spill] sm:$0xff]  ;;  %v6650_v3 = vld [vmem:[#allocation105_spill] sm:$0xff] }
 0x6c1   :  { %3828 = vmatprep.subr.mxu0 %v6529_v60  ;;  %1532 = vmatpush1.msra.mxu1 %v6643_v2  ;;  %v6654_v2 = vld [vmem:[#allocation25_spill] sm:$0xff] }
 0x6c2   :  { %3829 = vmatpush3.msra.mxu0 %v6644_v28  ;;  %1533 = vmatprep.subr.mxu1 %v6645_v63  ;;  %v6652_v28 = vld [vmem:[#allocation24_spill] sm:$0xff]  ;;  %v6653_v63 = vld [vmem:[#allocation106_spill] sm:$0xff] }
 0x6c3   :  { %3830 = vmatprep.subr.mxu0 %v6529_v60  ;;  %1534 = vmatpush1.msra.mxu1 %v6646_v51  ;;  %v6657_v51 = vld [vmem:[#allocation27_spill] sm:$0xff] }
 0x6c4   :  { %3831 = vmatpush3.msra.mxu0 %v6647_v15  ;;  %1535 = vmatprep.subr.mxu1 %v6648_v59  ;;  %v6655_v15 = vld [vmem:[#allocation26_spill] sm:$0xff]  ;;  %v6656_v59 = vld [vmem:[#allocation107_spill] sm:$0xff] }
 0x6c5   :  { %3832 = vmatprep.subr.mxu0 %v6529_v60  ;;  %1536 = vmatpush1.msra.mxu1 %v6649_v46  ;;  %v6660_v46 = vld [vmem:[#allocation29_spill] sm:$0xff] }
 0x6c6   :  { %3833 = vmatpush3.msra.mxu0 %v6650_v3  ;;  %1537 = vmatprep.subr.mxu1 %v6651_v47  ;;  %v6658_v3 = vld [vmem:[#allocation28_spill] sm:$0xff] }
 0x6c7   :  { %3834 = vmatprep.subr.mxu0 %v6529_v60  ;;  %1538 = vmatpush1.msra.mxu1 %v6652_v28  ;;  %v6659_v47 = vld [vmem:[#allocation108_spill] sm:$0xff]  ;;  %v6663_v28 = vld [vmem:[#allocation31_spill] sm:$0xff] }
 0x6c8   :  { %3835 = vmatpush3.msra.mxu0 %v6653_v63  ;;  %1539 = vmatprep.subr.mxu1 %v6654_v2  ;;  %v6661_v63 = vld [vmem:[#allocation30_spill] sm:$0xff]  ;;  %v6662_v2 = vld [vmem:[#allocation109_spill] sm:$0xff] }
 0x6c9   :  { %3836 = vmatprep.subr.mxu0 %v6529_v60  ;;  %1540 = vmatpush1.msra.mxu1 %v6655_v15  ;;  %v6666_v15 = vld [vmem:[#allocation33_spill] sm:$0xff] }
 0x6ca   :  { %3837 = vmatpush3.msra.mxu0 %v6656_v59  ;;  %1541 = vmatprep.subr.mxu1 %v6657_v51  ;;  %v6664_v59 = vld [vmem:[#allocation32_spill] sm:$0xff]  ;;  %v6665_v51 = vld [vmem:[#allocation110_spill] sm:$0xff] }
 0x6cb   :  { %3838 = vmatprep.subr.mxu0 %v6529_v60  ;;  %1542 = vmatpush1.msra.mxu1 %v6658_v3  ;;  %v6669_v3 = vld [vmem:[#allocation35_spill] sm:$0xff] }
 0x6cc   :  { %3839 = vmatpush3.msra.mxu0 %v6659_v47  ;;  %1543 = vmatprep.subr.mxu1 %v6660_v46  ;;  %v6667_v47 = vld [vmem:[#allocation34_spill] sm:$0xff]  ;;  %v6668_v46 = vld [vmem:[#allocation111_spill] sm:$0xff] }
 0x6cd   :  { %3840 = vmatprep.subr.mxu0 %v6529_v60  ;;  %1544 = vmatpush1.msra.mxu1 %v6661_v63  ;;  %v6672_v63 = vld [vmem:[#allocation37_spill] sm:$0xff] }
 0x6ce   :  { %3841 = vmatpush3.msra.mxu0 %v6662_v2  ;;  %1545 = vmatprep.subr.mxu1 %v6663_v28  ;;  %v6670_v2 = vld [vmem:[#allocation36_spill] sm:$0xff] }
 0x6cf   :  { %3842 = vmatprep.subr.mxu0 %v6529_v60  ;;  %1546 = vmatpush1.msra.mxu1 %v6664_v59  ;;  %v6671_v28 = vld [vmem:[#allocation112_spill] sm:$0xff]  ;;  %v6675_v59 = vld [vmem:[#allocation39_spill] sm:$0xff] }
 0x6d0   :  { %3843 = vmatpush3.msra.mxu0 %v6665_v51  ;;  %1547 = vmatprep.subr.mxu1 %v6666_v15  ;;  %v6673_v51 = vld [vmem:[#allocation38_spill] sm:$0xff]  ;;  %v6674_v15 = vld [vmem:[#allocation113_spill] sm:$0xff] }
 0x6d1   :  { %3844 = vmatprep.subr.mxu0 %v6529_v60  ;;  %1548 = vmatpush1.msra.mxu1 %v6667_v47  ;;  %v6678_v47 = vld [vmem:[#allocation41_spill] sm:$0xff] }
 0x6d2   :  { %3845 = vmatpush3.msra.mxu0 %v6668_v46  ;;  %1549 = vmatprep.subr.mxu1 %v6669_v3  ;;  %v6676_v46 = vld [vmem:[#allocation40_spill] sm:$0xff]  ;;  %v6677_v3 = vld [vmem:[#allocation114_spill] sm:$0xff] }
 0x6d3   :  { %3846 = vmatprep.subr.mxu0 %v6529_v60  ;;  %1550 = vmatpush1.msra.mxu1 %v6670_v2  ;;  %v6681_v2 = vld [vmem:[#allocation44_spill] sm:$0xff] }
 0x6d4   :  { %3847 = vmatpush3.msra.mxu0 %v6671_v28  ;;  %1551 = vmatprep.subr.mxu1 %v6672_v63  ;;  %v6679_v28 = vld [vmem:[#allocation42_spill] sm:$0xff]  ;;  %v6680_v63 = vld [vmem:[#allocation115_spill] sm:$0xff] }
 0x6d5   :  { %3848 = vmatprep.subr.mxu0 %v6529_v60  ;;  %1552 = vmatpush1.msra.mxu1 %v6673_v51  ;;  %v6684_v51 = vld [vmem:[#allocation46_spill] sm:$0xff] }
 0x6d6   :  { %3849 = vmatpush3.msra.mxu0 %v6674_v15  ;;  %1553 = vmatprep.subr.mxu1 %v6675_v59  ;;  %v6682_v15 = vld [vmem:[#allocation45_spill] sm:$0xff]  ;;  %v6683_v59 = vld [vmem:[#allocation116_spill] sm:$0xff] }
 0x6d7   :  { %3850 = vmatprep.subr.mxu0 %v6529_v60  ;;  %1554 = vmatpush1.msra.mxu1 %v6676_v46  ;;  %v6687_v46 = vld [vmem:[#allocation48_spill] sm:$0xff] }
 0x6d8   :  { %3851 = vmatpush3.msra.mxu0 %v6677_v3  ;;  %1555 = vmatprep.subr.mxu1 %v6678_v47  ;;  %v6685_v3 = vld [vmem:[#allocation47_spill] sm:$0xff]  ;;  %v6686_v47 = vld [vmem:[#allocation117_spill] sm:$0xff] }
 0x6d9   :  { %3852 = vmatprep.subr.mxu0 %v6529_v60  ;;  %1556 = vmatpush1.msra.mxu1 %v6679_v28 }
 0x6da   :  { %3853 = vmatpush3.msra.mxu0 %v6680_v63  ;;  %1557 = vmatprep.subr.mxu1 %v6681_v2  ;;  %v6688_v63 = vld [vmem:[#allocation49_spill] sm:$0xff]  ;;  %v6689_v2 = vld [vmem:[#allocation50_spill] sm:$0xff] }
 0x6db   :  { %3854 = vmatprep.subr.mxu0 %v6529_v60  ;;  %1558 = vmatpush1.msra.mxu1 %v6682_v15 }
 0x6dc   :  { %3855 = vmatpush3.msra.mxu0 %v6683_v59  ;;  %1559 = vmatprep.subr.mxu1 %v6684_v51 }
 0x6dd   :  { %3856 = vmatprep.subr.mxu0 %v6529_v60  ;;  %1560 = vmatpush1.msra.mxu1 %v6685_v3 }
 0x6de   :  { %3857 = vmatpush3.msra.mxu0 %v6686_v47  ;;  %1561 = vmatprep.subr.mxu1 %v6687_v46 }
 0x6df   :  { %3861 = vmatprep.subr.mxu0 %v6529_v60  ;;  %1562 = vmatpush1.msra.mxu1 %v6688_v63 }
 0x6e0   :  { %1595 = vmatprep.mubr.f32.mxu1 %v6529_v60  ;;  %1672 = vmatprep.subr.mxu1 %v6689_v2 }
 0x75d   :  { %v1273_v15 = vpop.f32.mrf.mxu1  ;;  %v1202_v28 = vpop.f32.mrf.mxu0 }
 0x75f   :  { %v3790_v59 = vpop.f32.mrf.mxu1  ;;  %v1204_v51 = vpop.f32.mrf.mxu0 }
 0x77e   :  { %v1343_v10 = vpop.f32.mrf.mxu0  ;;  %v1414_v19 = vpop.f32.mrf.mxu1 }
 0x77f   :  { %v1418_v52 = vadd.f32 %v1343_v10, %v1202_v28  ;;  %v1435_v14 = vadd.f32 %v5076_v35, %v1414_v19  ;;  %v1434_v28 = vadd.f32 %v5082_v31, %v1273_v15 }
 0x780   :  { %v1345_v3 = vpop.f32.mrf.mxu0  ;;  %v3825_v29 = vpop.f32.mrf.mxu1 }
 0x781   :  { %v1419_v47 = vadd.f32 %v5064_v37, %v1418_v52  ;;  %v1426_v48 = vadd.f32 %v1345_v3, %v1204_v51 }
 0x783   :  { %v3140_v46 = vmul.f32 -1.442695, %v1419_v47  ;;  %v1427_v63 = vadd.f32 %v6613_v5, %v1426_v48 }
 0x785   :  { %4321 = vpow2.f32 %v3140_v46  ;;  %v3141_v4 = vmul.f32 -1.442695, %v1427_v63 }
 0x787   :  { %4323 = vpow2.f32 %v3141_v4 }
 0x792   :  { %v4322_v34 = vpop.eup %4321 }
 0x793   :  { %v1423_v2 = vadd.f32 1.0, %v4322_v34 }
 0x794   :  { %v4324_v59 = vpop.eup %4323 }
 0x795   :  { %4325 = vrcp.f32 %v1423_v2  ;;  %v1431_v33 = vadd.f32 1.0, %v4324_v59 }
 0x797   :  { %4327 = vrcp.f32 %v1431_v33 }
 0x7a2   :  { %v4326_v24 = vpop.eup %4325 }
 0x7a3   :  { %v1436_v29 = vmul.f32 %v4326_v24, %v1435_v14 }
 0x7a4   :  { %v4328_v47 = vpop.eup %4327 }
 0x7a5   :  { %v1437_v37 = vadd.f32 %v1436_v29, %v1434_v28  ;;  %v1439_v3 = vsub.f32 1.0, %v4328_v47  ;;  %v1441_v63 = vmul.f32 %v4328_v47, %v5277_v53  ;;  %v6690_v29 = vld [vmem:[#allocation81_spill] sm:$0xff]  ;;  %v6692_v47 = vld [vmem:[#allocation70_spill] sm:$0xff] }
 0x7a7   :  { %4329 = vtanh.f32 %v1437_v37  ;;  %v6691_v37 = vld [vmem:[#allocation67_spill] sm:$0xff] }
 0x7b4   :  { %v4330_v51 = vpop.eup %4329 }
 0x7b5   :  { %v1440_v5 = vmul.f32 %v4330_v51, %v1439_v3  ;;  %v6693_v3 = vld [vmem:[#allocation73_spill] sm:$0xff]  ;;  %v6694_v51 = vld [vmem:[#allocation74_spill] sm:$0xff] }
 0x7b7   :  { %v5460_v48 = vadd.f32 %v1441_v63, %v1440_v5  ;;  %v6695_v5 = vld [vmem:[#allocation90_spill] sm:$0xff]  ;;  %v6696_v63 = vld [vmem:[#allocation76_spill] sm:$0xff] }
 0x7b9   :  { %3859 = vmatmul.mubr.f32.vlgmr.msra.gmra.mxu0 %v5460_v48 }
 0x7ba   :  { %3862 = vmatpush3.msra.mxu0 %v4655_v22  ;;  %3893 = vmatprep.mubr.msk.f32.mxu0 %vm4539_vm0, %v6529_v60 }
 0x7bb   :  { %3863 = vmatprep.subr.mxu0 %v6529_v60 }
 0x7bc   :  { %3864 = vmatpush3.msra.mxu0 %v4660_v25 }
 0x7bd   :  { %3865 = vmatprep.subr.mxu0 %v6529_v60 }
 0x7be   :  { %3866 = vmatpush3.msra.mxu0 %v4666_v27 }
 0x7bf   :  { %3867 = vmatprep.subr.mxu0 %v6529_v60 }
 0x7c0   :  { %3868 = vmatpush3.msra.mxu0 %v4676_v32 }
 0x7c1   :  { %3869 = vmatprep.subr.mxu0 %v6529_v60 }
 0x7c2   :  { %3870 = vmatpush3.msra.mxu0 %v4686_v36 }
 0x7c3   :  { %3871 = vmatprep.subr.mxu0 %v6529_v60 }
 0x7c4   :  { %3872 = vmatpush3.msra.mxu0 %v4696_v41 }
 0x7c5   :  { %3873 = vmatprep.subr.mxu0 %v6529_v60 }
 0x7c6   :  { %3874 = vmatpush3.msra.mxu0 %v4706_v45 }
 0x7c7   :  { %3875 = vmatprep.subr.mxu0 %v6529_v60 }
 0x7c8   :  { %3876 = vmatpush3.msra.mxu0 %v4716_v50 }
 0x7c9   :  { %3877 = vmatprep.subr.mxu0 %v6529_v60 }
 0x7ca   :  { %3878 = vmatpush3.msra.mxu0 %v4727_v55 }
 0x7cb   :  { %3879 = vmatprep.subr.mxu0 %v6529_v60 }
 0x7cc   :  { %3880 = vmatpush3.msra.mxu0 %v4742_v61 }
 0x7cd   :  { %3881 = vmatprep.subr.mxu0 %v6529_v60 }
 0x7ce   :  { %3882 = vmatpush3.msra.mxu0 %v4754_v8 }
 0x7cf   :  { %3883 = vmatprep.subr.mxu0 %v6529_v60 }
 0x7d0   :  { %3884 = vmatpush3.msra.mxu0 %v4764_v13 }
 0x7d1   :  { %3885 = vmatprep.subr.mxu0 %v6529_v60 }
 0x7d2   :  { %3886 = vmatpush3.msra.mxu0 %v6614_v0 }
 0x7d3   :  { %3887 = vmatprep.subr.mxu0 %v6529_v60 }
 0x7d4   :  { %3888 = vmatpush3.msra.mxu0 %v6615_v17 }
 0x7d5   :  { %3889 = vmatprep.subr.mxu0 %v6529_v60 }
 0x7d6   :  { %3890 = vmatpush3.msra.mxu0 %v6616_v18 }
 0x7d7   :  { %3891 = vmatprep.subr.mxu0 %v6529_v60 }
 0x7d8   :  { %3892 = vmatpush3.msra.mxu0 %v6617_v1 }
 0x7d9   :  { %3896 = vmatprep.subr.mxu0 %v6529_v60 }
 0x879   :  { %v1509_v15 = vpop.f32.mrf.mxu0 }
 0x87a   :  { %v1510_v24 = vadd.f32 %v5126_v11, %v1509_v15  ;;  %v6697_v15 = vld [vmem:[#allocation77_spill] sm:$0xff] }
 0x87b   :  { %v3860_v19 = vpop.f32.mrf.mxu0 }
 0x87c   :  { %v1514_v34 = vmin.f32 %v1510_v24, 0.0  ;;  %v1513_v2 = vmax.f32 %v1510_v24, 0.0  ;;  %v6698_v24 = vld [vmem:[#allocation93_spill] sm:$0xff]  ;;  %v6699_v19 = vld [vmem:[#allocation79_spill] sm:$0xff] }
 0x87e   :  { %v1515_v35 = vmul.f32 %v1514_v34, %v6547_v23  ;;  %v6700_v34 = vld [vmem:[#allocation80_spill] sm:$0xff] }
 0x880   :  { %v1516_v31 = vadd.f32 %v1515_v35, %v1513_v2  ;;  %v6701_v2 = vld [vmem:[#allocation96_spill] sm:$0xff]  ;;  %v6702_v35 = vld [vmem:[#allocation82_spill] sm:$0xff] }
 0x882   :  { %v1517_v46 = vsel %vm726_vm1, %v1516_v31, -inf }
 0x883   :  { %1518 = vmax.xlane.f32.xlu0 %v1517_v46  ;;  %v6704_v46 = vld [vmem:[#allocation97_spill] sm:$0xff] }
 0x90c   :  { %v1519_v33 = vpop.xlane.xlu0 %1518 }
 0x90d   :  { %v1520_v53 = vsub.f32 %v1516_v31, %v1519_v33  ;;  %v6703_v31 = vld [vmem:[#allocation83_spill] sm:$0xff]  ;;  %v6705_v33 = vld [vmem:[#allocation85_spill] sm:$0xff] }
 0x90f   :  { %v1521_v10 = vmul.f32 1.442695, %v1520_v53  ;;  %v6706_v53 = vld [vmem:[#allocation86_spill] sm:$0xff] }
 0x911   :  { %4331 = vpow2.f32 %v1521_v10  ;;  %v6707_v10 = vld [vmem:[#allocation98_spill] sm:$0xff] }
 0x91e   :  { %v4332_v14 = vpop.eup %4331 }
 0x91f   :  { %v1523_v4 = vmul.f32 %v4332_v14, %v5132_v39  ;;  %v6708_v14 = vld [vmem:[#allocation88_spill] sm:$0xff] }
 0x921   :  { %v1524_v52 = vsel %vm726_vm1, %v1523_v4, 0.0 }
 0x922   :  { %1525 = vadd.xlane.f32.xlu1 %v1524_v52  ;;  %v6710_v52 = vld [vmem:[#allocation99_spill] sm:$0xff] }
 0x9ab   :  { %v1526_v11 = vpop.xlane.xlu1 %1525 }
 0x9ac   :  { %4333 = vrcp.f32 %v1526_v11  ;;  %v6711_v11 = vld [vmem:[#allocation91_spill] sm:$0xff] }
 0x9b9   :  { %v4334_v59 = vpop.eup %4333 }
 0x9ba   :  { %v1528_v28 = vmul.f32 %v4334_v59, %v1523_v4  ;;  %v6709_v4 = vld [vmem:[#allocation89_spill] sm:$0xff]  ;;  %v6712_v59 = vld [vmem:[#allocation92_spill] sm:$0xff] }
 0x9bc   :  { %1530 = vst [vmem:[#allocation12 + $0xc] sm:$0xf] %v1528_v28  ;;  %1596 = vmatmul.mubr.f32.vlgmr.msra.gmra.mxu1 %v1528_v28  ;;  %3894 = vmatmul.mubr.f32.vlgmr.msra.gmra.mxu0 %v1528_v28  ;;  %v6713_v28 = vld [vmem:[#allocation100_spill] sm:$0xff] }
 0x9bd   :  { %1673 = vmatpush1.msra.mxu1 %v6548_v43  ;;  %3897 = vmatpush3.msra.mxu0 %v6549_v56 }
 0x9be   :  { %1674 = vmatprep.subr.mxu1 %v6550_v54  ;;  %3898 = vmatprep.subr.mxu0 %v6529_v60 }
 0x9bf   :  { %1675 = vmatpush1.msra.mxu1 %v6551_v30  ;;  %3899 = vmatpush3.msra.mxu0 %v6618_v58 }
 0x9c0   :  { %1676 = vmatprep.subr.mxu1 %v6619_v57  ;;  %3900 = vmatprep.subr.mxu0 %v6529_v60 }
 0x9c1   :  { %1677 = vmatpush1.msra.mxu1 %v6554_v42  ;;  %3901 = vmatpush3.msra.mxu0 %v6620_v38 }
 0x9c2   :  { %1678 = vmatprep.subr.mxu1 %v6621_v49  ;;  %3902 = vmatprep.subr.mxu0 %v6529_v60 }
 0x9c3   :  { %1679 = vmatpush1.msra.mxu1 %v6622_v16  ;;  %3903 = vmatpush3.msra.mxu0 %v6623_v9 }
 0x9c4   :  { %1680 = vmatprep.subr.mxu1 %v6624_v6  ;;  %3904 = vmatprep.subr.mxu0 %v6529_v60 }
 0x9c5   :  { %1681 = vmatpush1.msra.mxu1 %v6560_v62  ;;  %3905 = vmatpush3.msra.mxu0 %v6625_v7 }
 0x9c6   :  { %1682 = vmatprep.subr.mxu1 %v6626_v12  ;;  %3906 = vmatprep.subr.mxu0 %v6529_v60 }
 0x9c7   :  { %1683 = vmatpush1.msra.mxu1 %v6563_v44  ;;  %3907 = vmatpush3.msra.mxu0 %v6690_v29 }
 0x9c8   :  { %1684 = vmatprep.subr.mxu1 %v6691_v37  ;;  %3908 = vmatprep.subr.mxu0 %v6529_v60 }
 0x9c9   :  { %1685 = vmatpush1.msra.mxu1 %v6565_v26  ;;  %3909 = vmatpush3.msra.mxu0 %v6629_v21 }
 0x9ca   :  { %1686 = vmatprep.subr.mxu1 %v6692_v47  ;;  %3910 = vmatprep.subr.mxu0 %v6529_v60 }
 0x9cb   :  { %1687 = vmatpush1.msra.mxu1 %v6568_v40  ;;  %3911 = vmatpush3.msra.mxu0 %v6631_v20 }
 0x9cc   :  { %1688 = vmatprep.subr.mxu1 %v6693_v3  ;;  %3912 = vmatprep.subr.mxu0 %v6529_v60 }
 0x9cd   :  { %1689 = vmatpush1.msra.mxu1 %v6694_v51  ;;  %3913 = vmatpush3.msra.mxu0 %v6695_v5 }
 0x9ce   :  { %1690 = vmatprep.subr.mxu1 %v6696_v63  ;;  %3914 = vmatprep.subr.mxu0 %v6529_v60 }
 0x9cf   :  { %1691 = vmatpush1.msra.mxu1 %v6697_v15  ;;  %3915 = vmatpush3.msra.mxu0 %v6698_v24 }
 0x9d0   :  { %1692 = vmatprep.subr.mxu1 %v6699_v19  ;;  %3916 = vmatprep.subr.mxu0 %v6529_v60 }
 0x9d1   :  { %1693 = vmatpush1.msra.mxu1 %v6700_v34  ;;  %3917 = vmatpush3.msra.mxu0 %v6701_v2 }
 0x9d2   :  { %1694 = vmatprep.subr.mxu1 %v6702_v35  ;;  %3918 = vmatprep.subr.mxu0 %v6529_v60 }
 0x9d3   :  { %1695 = vmatpush1.msra.mxu1 %v6703_v31  ;;  %3919 = vmatpush3.msra.mxu0 %v6704_v46 }
 0x9d4   :  { %1696 = vmatprep.subr.mxu1 %v6705_v33  ;;  %3920 = vmatprep.subr.mxu0 %v6529_v60  ;;  %v6714_v33 = vld [vmem:[#allocation94_spill] sm:$0xff] }
 0x9d5   :  { %1697 = vmatpush1.msra.mxu1 %v6706_v53  ;;  %3921 = vmatpush3.msra.mxu0 %v6707_v10  ;;  %v6715_v10 = vld [vmem:[#allocation95_spill] sm:$0xff] }
 0x9d6   :  { %1698 = vmatprep.subr.mxu1 %v6708_v14  ;;  %3922 = vmatprep.subr.mxu0 %v6529_v60  ;;  %v6716_v14 = vld [vmem:[#allocation101_spill] sm:$0xff]  ;;  %v6727_v53 = vld [vmem:[#allocation23_spill] sm:$0xff] }
 0x9d7   :  { %1699 = vmatpush1.msra.mxu1 %v6709_v4  ;;  %3923 = vmatpush3.msra.mxu0 %v6710_v52  ;;  %v6723_v52 = vld [vmem:[#allocation104_spill] sm:$0xff]  ;;  %v6724_v4 = vld [vmem:[#allocation21_spill] sm:$0xff] }
 0x9d8   :  { %1700 = vmatprep.subr.mxu1 %v6711_v11  ;;  %3924 = vmatprep.subr.mxu0 %v6529_v60  ;;  %v6722_v11 = vld [vmem:[#allocation20_spill] sm:$0xff] }
 0x9d9   :  { %1701 = vmatpush1.msra.mxu1 %v6712_v59  ;;  %3925 = vmatpush3.msra.mxu0 %v6713_v28  ;;  %v6718_v28 = vld [vmem:[#allocation17_spill] sm:$0xff]  ;;  %v6721_v59 = vld [vmem:[#allocation19_spill] sm:$0xff] }
 0x9da   :  { %1702 = vmatprep.subr.mxu1 %v6714_v33  ;;  %3926 = vmatprep.subr.mxu0 %v6529_v60  ;;  %v6717_v33 = vld [vmem:[#allocation102_spill] sm:$0xff] }
 0x9db   :  { %1703 = vmatpush1.msra.mxu1 %v6715_v10  ;;  %1736 = vmatprep.mubr.f32.mxu1 %v6529_v60  ;;  %v6719_v10 = vld [vmem:[#allocation18_spill] sm:$0xff] }
 0x9dc   :  { %3927 = vmatpush3.msra.mxu0 %v6716_v14  ;;  %3928 = vmatprep.mubr.msk.f32.mxu0 %vm4539_vm0, %v6529_v60  ;;  %v6720_v14 = vld [vmem:[#allocation103_spill] sm:$0xff] }
 0x9dd   :  { %1737 = vmatmul.mubr.f32.vlgmr.msra.gmra.mxu1 %v5460_v48  ;;  %3929 = vmatmul.mubr.f32.vlgmr.msra.gmra.mxu0 %v5460_v48 }
 0x9de   :  { %3931 = vmatprep.subr.mxu1 %v6529_v60  ;;  %3963 = vmatprep.mubr.msk.f32.mxu1 %vm4539_vm0, %v6529_v60 }
 0x9df   :  { %3932 = vmatpush3.msra.mxu1 %v6717_v33  ;;  %1926 = vmatprep.subr.mxu0 %v6718_v28  ;;  %v6725_v33 = vld [vmem:[#allocation22_spill] sm:$0xff]  ;;  %v6726_v28 = vld [vmem:[#allocation105_spill] sm:$0xff] }
 0x9e0   :  { %3933 = vmatprep.subr.mxu1 %v6529_v60  ;;  %1927 = vmatpush1.msra.mxu0 %v6719_v10  ;;  %v6730_v10 = vld [vmem:[#allocation25_spill] sm:$0xff] }
 0x9e1   :  { %3934 = vmatpush3.msra.mxu1 %v6720_v14  ;;  %1928 = vmatprep.subr.mxu0 %v6721_v59  ;;  %v6728_v14 = vld [vmem:[#allocation24_spill] sm:$0xff]  ;;  %v6729_v59 = vld [vmem:[#allocation106_spill] sm:$0xff] }
 0x9e2   :  { %3935 = vmatprep.subr.mxu1 %v6529_v60  ;;  %1929 = vmatpush1.msra.mxu0 %v6722_v11  ;;  %v6733_v11 = vld [vmem:[#allocation27_spill] sm:$0xff] }
 0x9e3   :  { %3936 = vmatpush3.msra.mxu1 %v6723_v52  ;;  %1930 = vmatprep.subr.mxu0 %v6724_v4  ;;  %v6731_v52 = vld [vmem:[#allocation26_spill] sm:$0xff]  ;;  %v6732_v4 = vld [vmem:[#allocation107_spill] sm:$0xff] }
 0x9e4   :  { %3937 = vmatprep.subr.mxu1 %v6529_v60  ;;  %1931 = vmatpush1.msra.mxu0 %v6725_v33  ;;  %v6736_v33 = vld [vmem:[#allocation29_spill] sm:$0xff] }
 0x9e5   :  { %3938 = vmatpush3.msra.mxu1 %v6726_v28  ;;  %1932 = vmatprep.subr.mxu0 %v6727_v53  ;;  %v6734_v28 = vld [vmem:[#allocation28_spill] sm:$0xff] }
 0x9e6   :  { %3939 = vmatprep.subr.mxu1 %v6529_v60  ;;  %1933 = vmatpush1.msra.mxu0 %v6728_v14  ;;  %v6735_v53 = vld [vmem:[#allocation108_spill] sm:$0xff]  ;;  %v6739_v14 = vld [vmem:[#allocation31_spill] sm:$0xff] }
 0x9e7   :  { %3940 = vmatpush3.msra.mxu1 %v6729_v59  ;;  %1934 = vmatprep.subr.mxu0 %v6730_v10  ;;  %v6737_v59 = vld [vmem:[#allocation30_spill] sm:$0xff]  ;;  %v6738_v10 = vld [vmem:[#allocation109_spill] sm:$0xff] }
 0x9e8   :  { %3941 = vmatprep.subr.mxu1 %v6529_v60  ;;  %1935 = vmatpush1.msra.mxu0 %v6731_v52  ;;  %v6742_v52 = vld [vmem:[#allocation33_spill] sm:$0xff] }
 0x9e9   :  { %3942 = vmatpush3.msra.mxu1 %v6732_v4  ;;  %1936 = vmatprep.subr.mxu0 %v6733_v11  ;;  %v6740_v4 = vld [vmem:[#allocation32_spill] sm:$0xff]  ;;  %v6741_v11 = vld [vmem:[#allocation110_spill] sm:$0xff] }
 0x9ea   :  { %3943 = vmatprep.subr.mxu1 %v6529_v60  ;;  %1937 = vmatpush1.msra.mxu0 %v6734_v28  ;;  %v6745_v28 = vld [vmem:[#allocation35_spill] sm:$0xff] }
 0x9eb   :  { %3944 = vmatpush3.msra.mxu1 %v6735_v53  ;;  %1938 = vmatprep.subr.mxu0 %v6736_v33  ;;  %v6743_v53 = vld [vmem:[#allocation34_spill] sm:$0xff]  ;;  %v6744_v33 = vld [vmem:[#allocation111_spill] sm:$0xff] }
 0x9ec   :  { %3945 = vmatprep.subr.mxu1 %v6529_v60  ;;  %1939 = vmatpush1.msra.mxu0 %v6737_v59  ;;  %v6748_v59 = vld [vmem:[#allocation37_spill] sm:$0xff] }
 0x9ed   :  { %3946 = vmatpush3.msra.mxu1 %v6738_v10  ;;  %1940 = vmatprep.subr.mxu0 %v6739_v14  ;;  %v6746_v10 = vld [vmem:[#allocation36_spill] sm:$0xff] }
 0x9ee   :  { %3947 = vmatprep.subr.mxu1 %v6529_v60  ;;  %1941 = vmatpush1.msra.mxu0 %v6740_v4  ;;  %v6747_v14 = vld [vmem:[#allocation112_spill] sm:$0xff]  ;;  %v6751_v4 = vld [vmem:[#allocation39_spill] sm:$0xff] }
 0x9ef   :  { %3948 = vmatpush3.msra.mxu1 %v6741_v11  ;;  %1942 = vmatprep.subr.mxu0 %v6742_v52  ;;  %v6749_v11 = vld [vmem:[#allocation38_spill] sm:$0xff]  ;;  %v6750_v52 = vld [vmem:[#allocation113_spill] sm:$0xff] }
 0x9f0   :  { %3949 = vmatprep.subr.mxu1 %v6529_v60  ;;  %1943 = vmatpush1.msra.mxu0 %v6743_v53  ;;  %v6754_v53 = vld [vmem:[#allocation41_spill] sm:$0xff] }
 0x9f1   :  { %3950 = vmatpush3.msra.mxu1 %v6744_v33  ;;  %1944 = vmatprep.subr.mxu0 %v6745_v28  ;;  %v6752_v33 = vld [vmem:[#allocation40_spill] sm:$0xff]  ;;  %v6753_v28 = vld [vmem:[#allocation114_spill] sm:$0xff] }
 0x9f2   :  { %3951 = vmatprep.subr.mxu1 %v6529_v60  ;;  %1945 = vmatpush1.msra.mxu0 %v6746_v10  ;;  %v6757_v10 = vld [vmem:[#allocation44_spill] sm:$0xff] }
 0x9f3   :  { %3952 = vmatpush3.msra.mxu1 %v6747_v14  ;;  %1946 = vmatprep.subr.mxu0 %v6748_v59  ;;  %v6755_v14 = vld [vmem:[#allocation42_spill] sm:$0xff]  ;;  %v6756_v59 = vld [vmem:[#allocation115_spill] sm:$0xff] }
 0x9f4   :  { %3953 = vmatprep.subr.mxu1 %v6529_v60  ;;  %1947 = vmatpush1.msra.mxu0 %v6749_v11  ;;  %v6760_v11 = vld [vmem:[#allocation46_spill] sm:$0xff] }
 0x9f5   :  { %3954 = vmatpush3.msra.mxu1 %v6750_v52  ;;  %1948 = vmatprep.subr.mxu0 %v6751_v4  ;;  %v6758_v52 = vld [vmem:[#allocation45_spill] sm:$0xff]  ;;  %v6759_v4 = vld [vmem:[#allocation116_spill] sm:$0xff] }
 0x9f6   :  { %3955 = vmatprep.subr.mxu1 %v6529_v60  ;;  %1949 = vmatpush1.msra.mxu0 %v6752_v33  ;;  %v6763_v33 = vld [vmem:[#allocation48_spill] sm:$0xff] }
 0x9f7   :  { %3956 = vmatpush3.msra.mxu1 %v6753_v28  ;;  %1950 = vmatprep.subr.mxu0 %v6754_v53  ;;  %v6761_v28 = vld [vmem:[#allocation47_spill] sm:$0xff]  ;;  %v6762_v53 = vld [vmem:[#allocation117_spill] sm:$0xff] }
 0x9f8   :  { %3957 = vmatprep.subr.mxu1 %v6529_v60  ;;  %1951 = vmatpush1.msra.mxu0 %v6755_v14 }
 0x9f9   :  { %3958 = vmatpush3.msra.mxu1 %v6756_v59  ;;  %1952 = vmatprep.subr.mxu0 %v6757_v10  ;;  %v6764_v59 = vld [vmem:[#allocation49_spill] sm:$0xff]  ;;  %v6765_v10 = vld [vmem:[#allocation50_spill] sm:$0xff] }
 0x9fa   :  { %3959 = vmatprep.subr.mxu1 %v6529_v60  ;;  %1953 = vmatpush1.msra.mxu0 %v6758_v52 }
 0x9fb   :  { %3960 = vmatpush3.msra.mxu1 %v6759_v4  ;;  %1954 = vmatprep.subr.mxu0 %v6760_v11 }
 0x9fc   :  { %3961 = vmatprep.subr.mxu1 %v6529_v60  ;;  %1955 = vmatpush1.msra.mxu0 %v6761_v28 }
 0x9fd   :  { %3962 = vmatpush3.msra.mxu1 %v6762_v53  ;;  %1956 = vmatprep.subr.mxu0 %v6763_v33  ;;  %v5641_v33 = vld [vmem:[%s6207_s4] ss:$0 sm:$0xff] }
 0x9fe   :  { %3966 = vmatprep.subr.mxu1 %v6529_v60  ;;  %1957 = vmatpush1.msra.mxu0 %v6764_v59  ;;  %6766 = vst [vmem:[#allocation43_spill] sm:$0xff] %v5641_v33 }
 0x9ff   :  { %1990 = vmatprep.mubr.f32.mxu0 %v6529_v60  ;;  %2067 = vmatprep.subr.mxu0 %v6765_v10 }
 0xa7c   :  { %v1668_v52 = vpop.f32.mrf.mxu0  ;;  %v1597_v14 = vpop.f32.mrf.mxu1 }
 0xa7e   :  { %v3895_v4 = vpop.f32.mrf.mxu0  ;;  %v1599_v11 = vpop.f32.mrf.mxu1 }
 0xa7f   :  { %v5647_v4 = vld [vmem:[%s6208_s5] ss:$0 sm:$0xff] }
 0xa80   :  { %6767 = vst [vmem:[#allocation51_spill] sm:$0xff] %v5647_v4 }
 0xa9d   :  { %v1738_v46 = vpop.f32.mrf.mxu1  ;;  %v1809_v31 = vpop.f32.mrf.mxu0 }
 0xa9e   :  { %v1813_v35 = vadd.f32 %v1738_v46, %v1597_v14 }
 0xa9f   :  { %v1740_v28 = vpop.f32.mrf.mxu1  ;;  %v3930_v2 = vpop.f32.mrf.mxu0 }
 0xaa0   :  { %v1814_v59 = vadd.f32 %v5641_v33, %v1813_v35  ;;  %v1821_v34 = vadd.f32 %v1740_v28, %v1599_v11  ;;  %v5653_v35 = vld [vmem:[%s6210_s7] ss:$0 sm:$0xff] }
 0xaa2   :  { %v3142_v53 = vmul.f32 -1.442695, %v1814_v59  ;;  %v1822_v10 = vadd.f32 %v5647_v4, %v1821_v34  ;;  %v5659_v59 = vld [vmem:[%s6209_s6] ss:$0 sm:$0xff] }
 0xaa3   :  { %v1829_v34 = vadd.f32 %v5659_v59, %v1668_v52 }
 0xaa4   :  { %4335 = vpow2.f32 %v3142_v53  ;;  %v3143_v46 = vmul.f32 -1.442695, %v1822_v10  ;;  %v1830_v53 = vadd.f32 %v5653_v35, %v1809_v31 }
 0xaa6   :  { %4337 = vpow2.f32 %v3143_v46 }
 0xab1   :  { %v4336_v2 = vpop.eup %4335 }
 0xab2   :  { %v1818_v14 = vadd.f32 1.0, %v4336_v2 }
 0xab3   :  { %v4338_v19 = vpop.eup %4337 }
 0xab4   :  { %4339 = vrcp.f32 %v1818_v14  ;;  %v1826_v24 = vadd.f32 1.0, %v4338_v19 }
 0xab6   :  { %4341 = vrcp.f32 %v1826_v24  ;;  %v5703_v24 = vld [vmem:[%s6212_s9] ss:$0 sm:$0xff] }
 0xac1   :  { %v4340_v11 = vpop.eup %4339 }
 0xac2   :  { %v1831_v10 = vmul.f32 %v4340_v11, %v1830_v53 }
 0xac3   :  { %v4342_v19 = vpop.eup %4341 }
 0xac4   :  { %v1832_v28 = vadd.f32 %v1831_v10, %v1829_v34  ;;  %v1834_v46 = vsub.f32 1.0, %v4342_v19  ;;  %v1836_v4 = vmul.f32 %v4342_v19, %v5460_v48 }
 0xac6   :  { %4343 = vtanh.f32 %v1832_v28 }
 0xad3   :  { %v4344_v2 = vpop.eup %4343 }
 0xad4   :  { %v1835_v14 = vmul.f32 %v4344_v2, %v1834_v46 }
 0xad6   :  { %v5663_v33 = vadd.f32 %v1836_v4, %v1835_v14 }
 0xad8   :  { %3964 = vmatmul.mubr.f32.vlgmr.msra.gmra.mxu1 %v5663_v33 }
 0xad9   :  { %3967 = vmatpush3.msra.mxu1 %v4655_v22  ;;  %3998 = vmatprep.mubr.msk.f32.mxu1 %vm4539_vm0, %v6529_v60 }
 0xada   :  { %3968 = vmatprep.subr.mxu1 %v6529_v60 }
 0xadb   :  { %3969 = vmatpush3.msra.mxu1 %v4660_v25 }
 0xadc   :  { %3970 = vmatprep.subr.mxu1 %v6529_v60 }
 0xadd   :  { %3971 = vmatpush3.msra.mxu1 %v4666_v27 }
 0xade   :  { %3972 = vmatprep.subr.mxu1 %v6529_v60 }
 0xadf   :  { %3973 = vmatpush3.msra.mxu1 %v4676_v32 }
 0xae0   :  { %3974 = vmatprep.subr.mxu1 %v6529_v60 }
 0xae1   :  { %3975 = vmatpush3.msra.mxu1 %v4686_v36 }
 0xae2   :  { %3976 = vmatprep.subr.mxu1 %v6529_v60 }
 0xae3   :  { %3977 = vmatpush3.msra.mxu1 %v4696_v41 }
 0xae4   :  { %3978 = vmatprep.subr.mxu1 %v6529_v60 }
 0xae5   :  { %3979 = vmatpush3.msra.mxu1 %v4706_v45 }
 0xae6   :  { %3980 = vmatprep.subr.mxu1 %v6529_v60 }
 0xae7   :  { %3981 = vmatpush3.msra.mxu1 %v4716_v50 }
 0xae8   :  { %3982 = vmatprep.subr.mxu1 %v6529_v60 }
 0xae9   :  { %3983 = vmatpush3.msra.mxu1 %v4727_v55 }
 0xaea   :  { %3984 = vmatprep.subr.mxu1 %v6529_v60 }
 0xaeb   :  { %3985 = vmatpush3.msra.mxu1 %v4742_v61 }
 0xaec   :  { %3986 = vmatprep.subr.mxu1 %v6529_v60 }
 0xaed   :  { %3987 = vmatpush3.msra.mxu1 %v4754_v8 }
 0xaee   :  { %3988 = vmatprep.subr.mxu1 %v6529_v60 }
 0xaef   :  { %3989 = vmatpush3.msra.mxu1 %v4764_v13 }
 0xaf0   :  { %3990 = vmatprep.subr.mxu1 %v6529_v60 }
 0xaf1   :  { %3991 = vmatpush3.msra.mxu1 %v6614_v0 }
 0xaf2   :  { %3992 = vmatprep.subr.mxu1 %v6529_v60 }
 0xaf3   :  { %3993 = vmatpush3.msra.mxu1 %v6615_v17 }
 0xaf4   :  { %3994 = vmatprep.subr.mxu1 %v6529_v60 }
 0xaf5   :  { %3995 = vmatpush3.msra.mxu1 %v6616_v18 }
 0xaf6   :  { %3996 = vmatprep.subr.mxu1 %v6529_v60 }
 0xaf7   :  { %3997 = vmatpush3.msra.mxu1 %v6617_v1 }
 0xaf8   :  { %4001 = vmatprep.subr.mxu1 %v6529_v60 }
 0xb98   :  { %v1904_v48 = vpop.f32.mrf.mxu1 }
 0xb99   :  { %v1905_v31 = vadd.f32 %v5703_v24, %v1904_v48 }
 0xb9a   :  { %v3965_v52 = vpop.f32.mrf.mxu1 }
 0xb9b   :  { %v1909_v4 = vmin.f32 %v1905_v31, 0.0  ;;  %v1908_v53 = vmax.f32 %v1905_v31, 0.0 }
 0xb9d   :  { %v1910_v11 = vmul.f32 %v1909_v4, %v6547_v23  ;;  %v6769_v4 = vld [vmem:[#allocation79_spill] sm:$0xff] }
 0xb9f   :  { %v1911_v34 = vadd.f32 %v1910_v11, %v1908_v53  ;;  %v6770_v53 = vld [vmem:[#allocation80_spill] sm:$0xff] }
 0xba0   :  { %v6771_v11 = vld [vmem:[#allocation96_spill] sm:$0xff] }
 0xba1   :  { %v1912_v10 = vsel %vm726_vm1, %v1911_v34, -inf }
 0xba2   :  { %1913 = vmax.xlane.f32.xlu0 %v1912_v10  ;;  %v6773_v10 = vld [vmem:[#allocation83_spill] sm:$0xff] }
 0xc2b   :  { %v1914_v28 = vpop.xlane.xlu0 %1913 }
 0xc2c   :  { %v1915_v19 = vsub.f32 %v1911_v34, %v1914_v28  ;;  %v6772_v34 = vld [vmem:[#allocation82_spill] sm:$0xff]  ;;  %v6774_v28 = vld [vmem:[#allocation97_spill] sm:$0xff] }
 0xc2e   :  { %v1916_v46 = vmul.f32 1.442695, %v1915_v19  ;;  %v6775_v19 = vld [vmem:[#allocation85_spill] sm:$0xff] }
 0xc30   :  { %4345 = vpow2.f32 %v1916_v46  ;;  %v6776_v46 = vld [vmem:[#allocation86_spill] sm:$0xff] }
 0xc3d   :  { %v4346_v2 = vpop.eup %4345 }
 0xc3e   :  { %v1918_v14 = vmul.f32 %v4346_v2, %v5132_v39  ;;  %v6777_v2 = vld [vmem:[#allocation98_spill] sm:$0xff] }
 0xc40   :  { %v1919_v1 = vsel %vm726_vm1, %v1918_v14, 0.0 }
 0xc41   :  { %1920 = vadd.xlane.f32.xlu1 %v1919_v1  ;;  %v6768_v1 = vld [vmem:[#allocation93_spill] sm:$0xff] }
 0xcca   :  { %v1921_v48 = vpop.xlane.xlu1 %1920 }
 0xccb   :  { %4347 = vrcp.f32 %v1921_v48  ;;  %v6779_v48 = vld [vmem:[#allocation89_spill] sm:$0xff] }
 0xcd8   :  { %v4348_v52 = vpop.eup %4347 }
 0xcd9   :  { %v1923_v31 = vmul.f32 %v4348_v52, %v1918_v14  ;;  %v6778_v14 = vld [vmem:[#allocation88_spill] sm:$0xff]  ;;  %v6780_v52 = vld [vmem:[#allocation99_spill] sm:$0xff] }
 0xcdb   :  { %1925 = vst [vmem:[#allocation12 + $0x10] sm:$0xf] %v1923_v31  ;;  %1991 = vmatmul.mubr.f32.vlgmr.msra.gmra.mxu0 %v1923_v31  ;;  %3999 = vmatmul.mubr.f32.vlgmr.msra.gmra.mxu1 %v1923_v31  ;;  %v6781_v31 = vld [vmem:[#allocation91_spill] sm:$0xff] }
 0xcdc   :  { %2068 = vmatpush1.msra.mxu0 %v6548_v43  ;;  %4002 = vmatpush3.msra.mxu1 %v6549_v56 }
 0xcdd   :  { %2069 = vmatprep.subr.mxu0 %v6550_v54  ;;  %4003 = vmatprep.subr.mxu1 %v6529_v60 }
 0xcde   :  { %2070 = vmatpush1.msra.mxu0 %v6551_v30  ;;  %4004 = vmatpush3.msra.mxu1 %v6618_v58 }
 0xcdf   :  { %2071 = vmatprep.subr.mxu0 %v6619_v57  ;;  %4005 = vmatprep.subr.mxu1 %v6529_v60 }
 0xce0   :  { %2072 = vmatpush1.msra.mxu0 %v6554_v42  ;;  %4006 = vmatpush3.msra.mxu1 %v6620_v38 }
 0xce1   :  { %2073 = vmatprep.subr.mxu0 %v6621_v49  ;;  %4007 = vmatprep.subr.mxu1 %v6529_v60 }
 0xce2   :  { %2074 = vmatpush1.msra.mxu0 %v6622_v16  ;;  %4008 = vmatpush3.msra.mxu1 %v6623_v9 }
 0xce3   :  { %2075 = vmatprep.subr.mxu0 %v6624_v6  ;;  %4009 = vmatprep.subr.mxu1 %v6529_v60 }
 0xce4   :  { %2076 = vmatpush1.msra.mxu0 %v6560_v62  ;;  %4010 = vmatpush3.msra.mxu1 %v6625_v7 }
 0xce5   :  { %2077 = vmatprep.subr.mxu0 %v6626_v12  ;;  %4011 = vmatprep.subr.mxu1 %v6529_v60 }
 0xce6   :  { %2078 = vmatpush1.msra.mxu0 %v6563_v44  ;;  %4012 = vmatpush3.msra.mxu1 %v6690_v29 }
 0xce7   :  { %2079 = vmatprep.subr.mxu0 %v6691_v37  ;;  %4013 = vmatprep.subr.mxu1 %v6529_v60 }
 0xce8   :  { %2080 = vmatpush1.msra.mxu0 %v6565_v26  ;;  %4014 = vmatpush3.msra.mxu1 %v6629_v21 }
 0xce9   :  { %2081 = vmatprep.subr.mxu0 %v6692_v47  ;;  %4015 = vmatprep.subr.mxu1 %v6529_v60 }
 0xcea   :  { %2082 = vmatpush1.msra.mxu0 %v6568_v40  ;;  %4016 = vmatpush3.msra.mxu1 %v6631_v20 }
 0xceb   :  { %2083 = vmatprep.subr.mxu0 %v6693_v3  ;;  %4017 = vmatprep.subr.mxu1 %v6529_v60 }
 0xcec   :  { %2084 = vmatpush1.msra.mxu0 %v6694_v51  ;;  %4018 = vmatpush3.msra.mxu1 %v6695_v5 }
 0xced   :  { %2085 = vmatprep.subr.mxu0 %v6696_v63  ;;  %4019 = vmatprep.subr.mxu1 %v6529_v60  ;;  %v6837_v63 = vld [vmem:[#allocation51_spill] sm:$0xff] }
 0xcee   :  { %2086 = vmatpush1.msra.mxu0 %v6697_v15  ;;  %4020 = vmatpush3.msra.mxu1 %v6768_v1 }
 0xcef   :  { %2087 = vmatprep.subr.mxu0 %v6769_v4  ;;  %4021 = vmatprep.subr.mxu1 %v6529_v60 }
 0xcf0   :  { %2088 = vmatpush1.msra.mxu0 %v6770_v53  ;;  %4022 = vmatpush3.msra.mxu1 %v6771_v11 }
 0xcf1   :  { %2089 = vmatprep.subr.mxu0 %v6772_v34  ;;  %4023 = vmatprep.subr.mxu1 %v6529_v60 }
 0xcf2   :  { %2090 = vmatpush1.msra.mxu0 %v6773_v10  ;;  %4024 = vmatpush3.msra.mxu1 %v6774_v28  ;;  %v6782_v28 = vld [vmem:[#allocation92_spill] sm:$0xff]  ;;  %v6784_v10 = vld [vmem:[#allocation94_spill] sm:$0xff] }
 0xcf3   :  { %2091 = vmatprep.subr.mxu0 %v6775_v19  ;;  %4025 = vmatprep.subr.mxu1 %v6529_v60  ;;  %v6783_v19 = vld [vmem:[#allocation100_spill] sm:$0xff] }
 0xcf4   :  { %2092 = vmatpush1.msra.mxu0 %v6776_v46  ;;  %4026 = vmatpush3.msra.mxu1 %v6777_v2  ;;  %v6785_v2 = vld [vmem:[#allocation95_spill] sm:$0xff] }
 0xcf5   :  { %2093 = vmatprep.subr.mxu0 %v6778_v14  ;;  %4027 = vmatprep.subr.mxu1 %v6529_v60  ;;  %v6786_v14 = vld [vmem:[#allocation101_spill] sm:$0xff]  ;;  %v6797_v46 = vld [vmem:[#allocation23_spill] sm:$0xff] }
 0xcf6   :  { %2094 = vmatpush1.msra.mxu0 %v6779_v48  ;;  %4028 = vmatpush3.msra.mxu1 %v6780_v52  ;;  %v6793_v52 = vld [vmem:[#allocation104_spill] sm:$0xff]  ;;  %v6794_v48 = vld [vmem:[#allocation21_spill] sm:$0xff] }
 0xcf7   :  { %2095 = vmatprep.subr.mxu0 %v6781_v31  ;;  %4029 = vmatprep.subr.mxu1 %v6529_v60  ;;  %v6792_v31 = vld [vmem:[#allocation20_spill] sm:$0xff] }
 0xcf8   :  { %2096 = vmatpush1.msra.mxu0 %v6782_v28  ;;  %4030 = vmatpush3.msra.mxu1 %v6783_v19  ;;  %v6788_v19 = vld [vmem:[#allocation17_spill] sm:$0xff]  ;;  %v6791_v28 = vld [vmem:[#allocation19_spill] sm:$0xff] }
 0xcf9   :  { %2097 = vmatprep.subr.mxu0 %v6784_v10  ;;  %4031 = vmatprep.subr.mxu1 %v6529_v60  ;;  %v6787_v10 = vld [vmem:[#allocation102_spill] sm:$0xff] }
 0xcfa   :  { %2098 = vmatpush1.msra.mxu0 %v6785_v2  ;;  %2131 = vmatprep.mubr.f32.mxu0 %v6529_v60  ;;  %v6789_v2 = vld [vmem:[#allocation18_spill] sm:$0xff] }
 0xcfb   :  { %4032 = vmatpush3.msra.mxu1 %v6786_v14  ;;  %4033 = vmatprep.mubr.msk.f32.mxu1 %vm4539_vm0, %v6529_v60  ;;  %v6790_v14 = vld [vmem:[#allocation103_spill] sm:$0xff] }
 0xcfc   :  { %2132 = vmatmul.mubr.f32.vlgmr.msra.gmra.mxu0 %v5663_v33  ;;  %4034 = vmatmul.mubr.f32.vlgmr.msra.gmra.mxu1 %v5663_v33 }
 0xcfd   :  { %4036 = vmatprep.subr.mxu0 %v6529_v60  ;;  %4068 = vmatprep.mubr.msk.f32.mxu0 %vm4539_vm0, %v6529_v60 }
 0xcfe   :  { %4037 = vmatpush3.msra.mxu0 %v6787_v10  ;;  %2321 = vmatprep.subr.mxu1 %v6788_v19  ;;  %v6795_v10 = vld [vmem:[#allocation22_spill] sm:$0xff]  ;;  %v6796_v19 = vld [vmem:[#allocation105_spill] sm:$0xff] }
 0xcff   :  { %4038 = vmatprep.subr.mxu0 %v6529_v60  ;;  %2322 = vmatpush1.msra.mxu1 %v6789_v2  ;;  %v6800_v2 = vld [vmem:[#allocation25_spill] sm:$0xff] }
 0xd00   :  { %4039 = vmatpush3.msra.mxu0 %v6790_v14  ;;  %2323 = vmatprep.subr.mxu1 %v6791_v28  ;;  %v6798_v14 = vld [vmem:[#allocation24_spill] sm:$0xff]  ;;  %v6799_v28 = vld [vmem:[#allocation106_spill] sm:$0xff] }
 0xd01   :  { %4040 = vmatprep.subr.mxu0 %v6529_v60  ;;  %2324 = vmatpush1.msra.mxu1 %v6792_v31  ;;  %v6803_v31 = vld [vmem:[#allocation27_spill] sm:$0xff] }
 0xd02   :  { %4041 = vmatpush3.msra.mxu0 %v6793_v52  ;;  %2325 = vmatprep.subr.mxu1 %v6794_v48  ;;  %v6801_v52 = vld [vmem:[#allocation26_spill] sm:$0xff]  ;;  %v6802_v48 = vld [vmem:[#allocation107_spill] sm:$0xff] }
 0xd03   :  { %4042 = vmatprep.subr.mxu0 %v6529_v60  ;;  %2326 = vmatpush1.msra.mxu1 %v6795_v10  ;;  %v6806_v10 = vld [vmem:[#allocation29_spill] sm:$0xff] }
 0xd04   :  { %4043 = vmatpush3.msra.mxu0 %v6796_v19  ;;  %2327 = vmatprep.subr.mxu1 %v6797_v46  ;;  %v6804_v19 = vld [vmem:[#allocation28_spill] sm:$0xff] }
 0xd05   :  { %4044 = vmatprep.subr.mxu0 %v6529_v60  ;;  %2328 = vmatpush1.msra.mxu1 %v6798_v14  ;;  %v6805_v46 = vld [vmem:[#allocation108_spill] sm:$0xff]  ;;  %v6809_v14 = vld [vmem:[#allocation31_spill] sm:$0xff] }
 0xd06   :  { %4045 = vmatpush3.msra.mxu0 %v6799_v28  ;;  %2329 = vmatprep.subr.mxu1 %v6800_v2  ;;  %v6807_v28 = vld [vmem:[#allocation30_spill] sm:$0xff]  ;;  %v6808_v2 = vld [vmem:[#allocation109_spill] sm:$0xff] }
 0xd07   :  { %4046 = vmatprep.subr.mxu0 %v6529_v60  ;;  %2330 = vmatpush1.msra.mxu1 %v6801_v52  ;;  %v6812_v52 = vld [vmem:[#allocation33_spill] sm:$0xff] }
 0xd08   :  { %4047 = vmatpush3.msra.mxu0 %v6802_v48  ;;  %2331 = vmatprep.subr.mxu1 %v6803_v31  ;;  %v6810_v48 = vld [vmem:[#allocation32_spill] sm:$0xff]  ;;  %v6811_v31 = vld [vmem:[#allocation110_spill] sm:$0xff] }
 0xd09   :  { %4048 = vmatprep.subr.mxu0 %v6529_v60  ;;  %2332 = vmatpush1.msra.mxu1 %v6804_v19  ;;  %v6815_v19 = vld [vmem:[#allocation35_spill] sm:$0xff] }
 0xd0a   :  { %4049 = vmatpush3.msra.mxu0 %v6805_v46  ;;  %2333 = vmatprep.subr.mxu1 %v6806_v10  ;;  %v6813_v46 = vld [vmem:[#allocation34_spill] sm:$0xff]  ;;  %v6814_v10 = vld [vmem:[#allocation111_spill] sm:$0xff] }
 0xd0b   :  { %4050 = vmatprep.subr.mxu0 %v6529_v60  ;;  %2334 = vmatpush1.msra.mxu1 %v6807_v28  ;;  %v6818_v28 = vld [vmem:[#allocation37_spill] sm:$0xff] }
 0xd0c   :  { %4051 = vmatpush3.msra.mxu0 %v6808_v2  ;;  %2335 = vmatprep.subr.mxu1 %v6809_v14  ;;  %v6816_v2 = vld [vmem:[#allocation36_spill] sm:$0xff] }
 0xd0d   :  { %4052 = vmatprep.subr.mxu0 %v6529_v60  ;;  %2336 = vmatpush1.msra.mxu1 %v6810_v48  ;;  %v6817_v14 = vld [vmem:[#allocation112_spill] sm:$0xff]  ;;  %v6821_v48 = vld [vmem:[#allocation39_spill] sm:$0xff] }
 0xd0e   :  { %4053 = vmatpush3.msra.mxu0 %v6811_v31  ;;  %2337 = vmatprep.subr.mxu1 %v6812_v52  ;;  %v6819_v31 = vld [vmem:[#allocation38_spill] sm:$0xff]  ;;  %v6820_v52 = vld [vmem:[#allocation113_spill] sm:$0xff] }
 0xd0f   :  { %4054 = vmatprep.subr.mxu0 %v6529_v60  ;;  %2338 = vmatpush1.msra.mxu1 %v6813_v46  ;;  %v6824_v46 = vld [vmem:[#allocation41_spill] sm:$0xff] }
 0xd10   :  { %4055 = vmatpush3.msra.mxu0 %v6814_v10  ;;  %2339 = vmatprep.subr.mxu1 %v6815_v19  ;;  %v6822_v10 = vld [vmem:[#allocation40_spill] sm:$0xff]  ;;  %v6823_v19 = vld [vmem:[#allocation114_spill] sm:$0xff] }
 0xd11   :  { %4056 = vmatprep.subr.mxu0 %v6529_v60  ;;  %2340 = vmatpush1.msra.mxu1 %v6816_v2  ;;  %v6827_v2 = vld [vmem:[#allocation44_spill] sm:$0xff] }
 0xd12   :  { %4057 = vmatpush3.msra.mxu0 %v6817_v14  ;;  %2341 = vmatprep.subr.mxu1 %v6818_v28  ;;  %v6825_v14 = vld [vmem:[#allocation42_spill] sm:$0xff]  ;;  %v6826_v28 = vld [vmem:[#allocation115_spill] sm:$0xff] }
 0xd13   :  { %4058 = vmatprep.subr.mxu0 %v6529_v60  ;;  %2342 = vmatpush1.msra.mxu1 %v6819_v31  ;;  %v6830_v31 = vld [vmem:[#allocation46_spill] sm:$0xff] }
 0xd14   :  { %4059 = vmatpush3.msra.mxu0 %v6820_v52  ;;  %2343 = vmatprep.subr.mxu1 %v6821_v48  ;;  %v6828_v52 = vld [vmem:[#allocation45_spill] sm:$0xff]  ;;  %v6829_v48 = vld [vmem:[#allocation116_spill] sm:$0xff] }
 0xd15   :  { %4060 = vmatprep.subr.mxu0 %v6529_v60  ;;  %2344 = vmatpush1.msra.mxu1 %v6822_v10  ;;  %v6833_v10 = vld [vmem:[#allocation48_spill] sm:$0xff] }
 0xd16   :  { %4061 = vmatpush3.msra.mxu0 %v6823_v19  ;;  %2345 = vmatprep.subr.mxu1 %v6824_v46  ;;  %v6831_v19 = vld [vmem:[#allocation47_spill] sm:$0xff]  ;;  %v6832_v46 = vld [vmem:[#allocation117_spill] sm:$0xff] }
 0xd17   :  { %4062 = vmatprep.subr.mxu0 %v6529_v60  ;;  %2346 = vmatpush1.msra.mxu1 %v6825_v14 }
 0xd18   :  { %4063 = vmatpush3.msra.mxu0 %v6826_v28  ;;  %2347 = vmatprep.subr.mxu1 %v6827_v2  ;;  %v6834_v28 = vld [vmem:[#allocation49_spill] sm:$0xff]  ;;  %v6835_v2 = vld [vmem:[#allocation50_spill] sm:$0xff] }
 0xd19   :  { %4064 = vmatprep.subr.mxu0 %v6529_v60  ;;  %2348 = vmatpush1.msra.mxu1 %v6828_v52 }
 0xd1a   :  { %4065 = vmatpush3.msra.mxu0 %v6829_v48  ;;  %2349 = vmatprep.subr.mxu1 %v6830_v31 }
 0xd1b   :  { %4066 = vmatprep.subr.mxu0 %v6529_v60  ;;  %2350 = vmatpush1.msra.mxu1 %v6831_v19 }
 0xd1c   :  { %4067 = vmatpush3.msra.mxu0 %v6832_v46  ;;  %2351 = vmatprep.subr.mxu1 %v6833_v10  ;;  %v6836_v46 = vld [vmem:[#allocation43_spill] sm:$0xff] }
 0xd1d   :  { %4071 = vmatprep.subr.mxu0 %v6529_v60  ;;  %2352 = vmatpush1.msra.mxu1 %v6834_v28 }
 0xd1e   :  { %2385 = vmatprep.mubr.f32.mxu1 %v6529_v60  ;;  %2462 = vmatprep.subr.mxu1 %v6835_v2 }
 0xd9b   :  { %v2063_v52 = vpop.f32.mrf.mxu1  ;;  %v1992_v14 = vpop.f32.mrf.mxu0 }
 0xd9d   :  { %v4000_v48 = vpop.f32.mrf.mxu1  ;;  %v1994_v31 = vpop.f32.mrf.mxu0 }
 0xdbc   :  { %v2133_v34 = vpop.f32.mrf.mxu0  ;;  %v2204_v11 = vpop.f32.mrf.mxu1 }
 0xdbd   :  { %v2208_v53 = vadd.f32 %v2133_v34, %v1992_v14  ;;  %v2225_v20 = vadd.f32 %v5653_v35, %v2204_v11  ;;  %v2224_v34 = vadd.f32 %v5659_v59, %v2063_v52 }
 0xdbe   :  { %v2135_v19 = vpop.f32.mrf.mxu0  ;;  %v4035_v4 = vpop.f32.mrf.mxu1 }
 0xdbf   :  { %v2209_v1 = vadd.f32 %v6836_v46, %v2208_v53  ;;  %v2216_v15 = vadd.f32 %v2135_v19, %v1994_v31 }
 0xdc1   :  { %v3144_v10 = vmul.f32 -1.442695, %v2209_v1  ;;  %v2217_v28 = vadd.f32 %v6837_v63, %v2216_v15 }
 0xdc3   :  { %4349 = vpow2.f32 %v3144_v10  ;;  %v3145_v5 = vmul.f32 -1.442695, %v2217_v28 }
 0xdc5   :  { %4351 = vpow2.f32 %v3145_v5 }
 0xdd0   :  { %v4350_v51 = vpop.eup %4349 }
 0xdd1   :  { %v2213_v2 = vadd.f32 1.0, %v4350_v51 }
 0xdd2   :  { %v4352_v48 = vpop.eup %4351 }
 0xdd3   :  { %4353 = vrcp.f32 %v2213_v2  ;;  %v2221_v3 = vadd.f32 1.0, %v4352_v48 }
 0xdd5   :  { %4355 = vrcp.f32 %v2221_v3 }
 0xde0   :  { %v4354_v40 = vpop.eup %4353 }
 0xde1   :  { %v2226_v4 = vmul.f32 %v4354_v40, %v2225_v20  ;;  %v6838_v40 = vld [vmem:[#allocation61_spill] sm:$0xff] }
 0xde2   :  { %v4356_v1 = vpop.eup %4355 }
 0xde3   :  { %v2227_v53 = vadd.f32 %v2226_v4, %v2224_v34  ;;  %v2229_v10 = vsub.f32 1.0, %v4356_v1  ;;  %v2231_v5 = vmul.f32 %v4356_v1, %v5663_v33 }
 0xde5   :  { %4357 = vtanh.f32 %v2227_v53 }
 0xdf2   :  { %v4358_v19 = vpop.eup %4357 }
 0xdf3   :  { %v2230_v15 = vmul.f32 %v4358_v19, %v2229_v10 }
 0xdf5   :  { %v5851_v28 = vadd.f32 %v2231_v5, %v2230_v15  ;;  %v6839_v5 = vld [vmem:[#allocation71_spill] sm:$0xff] }
 0xdf7   :  { %4069 = vmatmul.mubr.f32.vlgmr.msra.gmra.mxu0 %v5851_v28 }
 0xdf8   :  { %4072 = vmatpush3.msra.mxu0 %v4655_v22  ;;  %4103 = vmatprep.mubr.msk.f32.mxu0 %vm4539_vm0, %v6529_v60 }
 0xdf9   :  { %4073 = vmatprep.subr.mxu0 %v6529_v60 }
 0xdfa   :  { %4074 = vmatpush3.msra.mxu0 %v4660_v25 }
 0xdfb   :  { %4075 = vmatprep.subr.mxu0 %v6529_v60 }
 0xdfc   :  { %4076 = vmatpush3.msra.mxu0 %v4666_v27 }
 0xdfd   :  { %4077 = vmatprep.subr.mxu0 %v6529_v60 }
 0xdfe   :  { %4078 = vmatpush3.msra.mxu0 %v4676_v32 }
 0xdff   :  { %4079 = vmatprep.subr.mxu0 %v6529_v60 }
 0xe00   :  { %4080 = vmatpush3.msra.mxu0 %v4686_v36 }
 0xe01   :  { %4081 = vmatprep.subr.mxu0 %v6529_v60 }
 0xe02   :  { %4082 = vmatpush3.msra.mxu0 %v4696_v41 }
 0xe03   :  { %4083 = vmatprep.subr.mxu0 %v6529_v60 }
 0xe04   :  { %4084 = vmatpush3.msra.mxu0 %v4706_v45 }
 0xe05   :  { %4085 = vmatprep.subr.mxu0 %v6529_v60 }
 0xe06   :  { %4086 = vmatpush3.msra.mxu0 %v4716_v50 }
 0xe07   :  { %4087 = vmatprep.subr.mxu0 %v6529_v60 }
 0xe08   :  { %4088 = vmatpush3.msra.mxu0 %v4727_v55 }
 0xe09   :  { %4089 = vmatprep.subr.mxu0 %v6529_v60 }
 0xe0a   :  { %4090 = vmatpush3.msra.mxu0 %v4742_v61 }
 0xe0b   :  { %4091 = vmatprep.subr.mxu0 %v6529_v60 }
 0xe0c   :  { %4092 = vmatpush3.msra.mxu0 %v4754_v8 }
 0xe0d   :  { %4093 = vmatprep.subr.mxu0 %v6529_v60 }
 0xe0e   :  { %4094 = vmatpush3.msra.mxu0 %v4764_v13 }
 0xe0f   :  { %4095 = vmatprep.subr.mxu0 %v6529_v60 }
 0xe10   :  { %4096 = vmatpush3.msra.mxu0 %v6614_v0 }
 0xe11   :  { %4097 = vmatprep.subr.mxu0 %v6529_v60 }
 0xe12   :  { %4098 = vmatpush3.msra.mxu0 %v6615_v17 }
 0xe13   :  { %4099 = vmatprep.subr.mxu0 %v6529_v60 }
 0xe14   :  { %4100 = vmatpush3.msra.mxu0 %v6616_v18 }
 0xe15   :  { %4101 = vmatprep.subr.mxu0 %v6529_v60 }
 0xe16   :  { %4102 = vmatpush3.msra.mxu0 %v6838_v40 }
 0xe17   :  { %4106 = vmatprep.subr.mxu0 %v6529_v60 }
 0xeb7   :  { %v2299_v20 = vpop.f32.mrf.mxu0 }
 0xeb8   :  { %v2300_v3 = vadd.f32 %v5703_v24, %v2299_v20  ;;  %v6840_v20 = vld [vmem:[#allocation87_spill] sm:$0xff] }
 0xeb9   :  { %v4070_v51 = vpop.f32.mrf.mxu0 }
 0xeba   :  { %v2304_v33 = vmin.f32 %v2300_v3, 0.0  ;;  %v2303_v11 = vmax.f32 %v2300_v3, 0.0  ;;  %v6841_v3 = vld [vmem:[#allocation73_spill] sm:$0xff]  ;;  %v6842_v51 = vld [vmem:[#allocation74_spill] sm:$0xff] }
 0xebc   :  { %v2305_v2 = vmul.f32 %v2304_v33, %v6547_v23  ;;  %v6843_v33 = vld [vmem:[#allocation90_spill] sm:$0xff] }
 0xebe   :  { %v2306_v14 = vadd.f32 %v2305_v2, %v2303_v11  ;;  %v6844_v11 = vld [vmem:[#allocation76_spill] sm:$0xff]  ;;  %v6845_v2 = vld [vmem:[#allocation77_spill] sm:$0xff] }
 0xec0   :  { %v2307_v52 = vsel %vm726_vm1, %v2306_v14, -inf }
 0xec1   :  { %2308 = vmax.xlane.f32.xlu0 %v2307_v52  ;;  %v6847_v52 = vld [vmem:[#allocation79_spill] sm:$0xff] }
 0xf4a   :  { %v2309_v31 = vpop.xlane.xlu0 %2308 }
 0xf4b   :  { %v2310_v48 = vsub.f32 %v2306_v14, %v2309_v31  ;;  %v6846_v14 = vld [vmem:[#allocation93_spill] sm:$0xff]  ;;  %v6848_v31 = vld [vmem:[#allocation80_spill] sm:$0xff] }
 0xf4d   :  { %v2311_v34 = vmul.f32 1.442695, %v2310_v48  ;;  %v6849_v48 = vld [vmem:[#allocation96_spill] sm:$0xff] }
 0xf4f   :  { %4359 = vpow2.f32 %v2311_v34  ;;  %v6850_v34 = vld [vmem:[#allocation82_spill] sm:$0xff] }
 0xf5c   :  { %v4360_v4 = vpop.eup %4359 }
 0xf5d   :  { %v2313_v53 = vmul.f32 %v4360_v4, %v5132_v39  ;;  %v6851_v4 = vld [vmem:[#allocation83_spill] sm:$0xff] }
 0xf5f   :  { %v2314_v1 = vsel %vm726_vm1, %v2313_v53, 0.0 }
 0xf60   :  { %2315 = vadd.xlane.f32.xlu1 %v2314_v1  ;;  %v6853_v1 = vld [vmem:[#allocation85_spill] sm:$0xff] }
 0xfe9   :  { %v2316_v10 = vpop.xlane.xlu1 %2315 }
 0xfea   :  { %4361 = vrcp.f32 %v2316_v10  ;;  %v6854_v10 = vld [vmem:[#allocation86_spill] sm:$0xff] }
 0xff7   :  { %v4362_v19 = vpop.eup %4361 }
 0xff8   :  { %v2318_v15 = vmul.f32 %v4362_v19, %v2313_v53  ;;  %v6852_v53 = vld [vmem:[#allocation97_spill] sm:$0xff]  ;;  %v6855_v19 = vld [vmem:[#allocation98_spill] sm:$0xff] }
 0xffa   :  { %2320 = vst [vmem:[#allocation12 + $0x14] sm:$0xf] %v2318_v15  ;;  %2386 = vmatmul.mubr.f32.vlgmr.msra.gmra.mxu1 %v2318_v15  ;;  %4104 = vmatmul.mubr.f32.vlgmr.msra.gmra.mxu0 %v2318_v15  ;;  %v6856_v15 = vld [vmem:[#allocation88_spill] sm:$0xff] }
 0xffb   :  { %2463 = vmatpush1.msra.mxu1 %v6548_v43  ;;  %4107 = vmatpush3.msra.mxu0 %v6549_v56 }
 0xffc   :  { %2464 = vmatprep.subr.mxu1 %v6550_v54  ;;  %4108 = vmatprep.subr.mxu0 %v6529_v60 }
 0xffd   :  { %2465 = vmatpush1.msra.mxu1 %v6551_v30  ;;  %4109 = vmatpush3.msra.mxu0 %v6618_v58 }
 0xffe   :  { %2466 = vmatprep.subr.mxu1 %v6619_v57  ;;  %4110 = vmatprep.subr.mxu0 %v6529_v60 }
 0xfff   :  { %2467 = vmatpush1.msra.mxu1 %v6554_v42  ;;  %4111 = vmatpush3.msra.mxu0 %v6620_v38 }
0x1000   :  { %2468 = vmatprep.subr.mxu1 %v6621_v49  ;;  %4112 = vmatprep.subr.mxu0 %v6529_v60 }
0x1001   :  { %2469 = vmatpush1.msra.mxu1 %v6622_v16  ;;  %4113 = vmatpush3.msra.mxu0 %v6623_v9 }
0x1002   :  { %2470 = vmatprep.subr.mxu1 %v6624_v6  ;;  %4114 = vmatprep.subr.mxu0 %v6529_v60 }
0x1003   :  { %2471 = vmatpush1.msra.mxu1 %v6560_v62  ;;  %4115 = vmatpush3.msra.mxu0 %v6625_v7 }
0x1004   :  { %2472 = vmatprep.subr.mxu1 %v6626_v12  ;;  %4116 = vmatprep.subr.mxu0 %v6529_v60 }
0x1005   :  { %2473 = vmatpush1.msra.mxu1 %v6563_v44  ;;  %4117 = vmatpush3.msra.mxu0 %v6690_v29 }
0x1006   :  { %2474 = vmatprep.subr.mxu1 %v6691_v37  ;;  %4118 = vmatprep.subr.mxu0 %v6529_v60 }
0x1007   :  { %2475 = vmatpush1.msra.mxu1 %v6565_v26  ;;  %4119 = vmatpush3.msra.mxu0 %v6629_v21 }
0x1008   :  { %2476 = vmatprep.subr.mxu1 %v6692_v47  ;;  %4120 = vmatprep.subr.mxu0 %v6529_v60 }
0x1009   :  { %2477 = vmatpush1.msra.mxu1 %v6839_v5  ;;  %4121 = vmatpush3.msra.mxu0 %v6840_v20 }
0x100a   :  { %2478 = vmatprep.subr.mxu1 %v6841_v3  ;;  %4122 = vmatprep.subr.mxu0 %v6529_v60 }
0x100b   :  { %2479 = vmatpush1.msra.mxu1 %v6842_v51  ;;  %4123 = vmatpush3.msra.mxu0 %v6843_v33 }
0x100c   :  { %2480 = vmatprep.subr.mxu1 %v6844_v11  ;;  %4124 = vmatprep.subr.mxu0 %v6529_v60 }
0x100d   :  { %2481 = vmatpush1.msra.mxu1 %v6845_v2  ;;  %4125 = vmatpush3.msra.mxu0 %v6846_v14 }
0x100e   :  { %2482 = vmatprep.subr.mxu1 %v6847_v52  ;;  %4126 = vmatprep.subr.mxu0 %v6529_v60 }
0x100f   :  { %2483 = vmatpush1.msra.mxu1 %v6848_v31  ;;  %4127 = vmatpush3.msra.mxu0 %v6849_v48  ;;  %v6857_v48 = vld [vmem:[#allocation89_spill] sm:$0xff]  ;;  %v6859_v31 = vld [vmem:[#allocation91_spill] sm:$0xff] }
0x1010   :  { %2484 = vmatprep.subr.mxu1 %v6850_v34  ;;  %4128 = vmatprep.subr.mxu0 %v6529_v60  ;;  %v6858_v34 = vld [vmem:[#allocation99_spill] sm:$0xff] }
0x1011   :  { %2485 = vmatpush1.msra.mxu1 %v6851_v4  ;;  %4129 = vmatpush3.msra.mxu0 %v6852_v53  ;;  %v6860_v53 = vld [vmem:[#allocation92_spill] sm:$0xff]  ;;  %v6862_v4 = vld [vmem:[#allocation94_spill] sm:$0xff] }
0x1012   :  { %2486 = vmatprep.subr.mxu1 %v6853_v1  ;;  %4130 = vmatprep.subr.mxu0 %v6529_v60  ;;  %v6861_v1 = vld [vmem:[#allocation100_spill] sm:$0xff] }
0x1013   :  { %2487 = vmatpush1.msra.mxu1 %v6854_v10  ;;  %4131 = vmatpush3.msra.mxu0 %v6855_v19  ;;  %v6863_v19 = vld [vmem:[#allocation95_spill] sm:$0xff] }
0x1014   :  { %2488 = vmatprep.subr.mxu1 %v6856_v15  ;;  %4132 = vmatprep.subr.mxu0 %v6529_v60  ;;  %v6864_v15 = vld [vmem:[#allocation101_spill] sm:$0xff]  ;;  %v6875_v10 = vld [vmem:[#allocation23_spill] sm:$0xff] }
0x1015   :  { %2489 = vmatpush1.msra.mxu1 %v6857_v48  ;;  %4133 = vmatpush3.msra.mxu0 %v6858_v34  ;;  %v6871_v34 = vld [vmem:[#allocation104_spill] sm:$0xff]  ;;  %v6872_v48 = vld [vmem:[#allocation21_spill] sm:$0xff] }
0x1016   :  { %2490 = vmatprep.subr.mxu1 %v6859_v31  ;;  %4134 = vmatprep.subr.mxu0 %v6529_v60  ;;  %v6870_v31 = vld [vmem:[#allocation20_spill] sm:$0xff] }
0x1017   :  { %2491 = vmatpush1.msra.mxu1 %v6860_v53  ;;  %4135 = vmatpush3.msra.mxu0 %v6861_v1  ;;  %v6866_v1 = vld [vmem:[#allocation17_spill] sm:$0xff]  ;;  %v6869_v53 = vld [vmem:[#allocation19_spill] sm:$0xff] }
0x1018   :  { %2492 = vmatprep.subr.mxu1 %v6862_v4  ;;  %4136 = vmatprep.subr.mxu0 %v6529_v60  ;;  %v6865_v4 = vld [vmem:[#allocation102_spill] sm:$0xff] }
0x1019   :  { %2493 = vmatpush1.msra.mxu1 %v6863_v19  ;;  %2526 = vmatprep.mubr.f32.mxu1 %v6529_v60  ;;  %v6867_v19 = vld [vmem:[#allocation18_spill] sm:$0xff] }
0x101a   :  { %4137 = vmatpush3.msra.mxu0 %v6864_v15  ;;  %4138 = vmatprep.mubr.msk.f32.mxu0 %vm4539_vm0, %v6529_v60  ;;  %v6868_v15 = vld [vmem:[#allocation103_spill] sm:$0xff] }
0x101b   :  { %2527 = vmatmul.mubr.f32.vlgmr.msra.gmra.mxu1 %v5851_v28  ;;  %4139 = vmatmul.mubr.f32.vlgmr.msra.gmra.mxu0 %v5851_v28 }
0x101c   :  { %4141 = vmatprep.subr.mxu1 %v6529_v60  ;;  %4173 = vmatprep.mubr.msk.f32.mxu1 %vm4539_vm0, %v6529_v60 }
0x101d   :  { %4142 = vmatpush3.msra.mxu1 %v6865_v4  ;;  %2716 = vmatprep.subr.mxu0 %v6866_v1  ;;  %v6873_v4 = vld [vmem:[#allocation22_spill] sm:$0xff]  ;;  %v6874_v1 = vld [vmem:[#allocation105_spill] sm:$0xff] }
0x101e   :  { %4143 = vmatprep.subr.mxu1 %v6529_v60  ;;  %2717 = vmatpush1.msra.mxu0 %v6867_v19  ;;  %v6876_v19 = vld [vmem:[#allocation24_spill] sm:$0xff] }
0x101f   :  { %4144 = vmatpush3.msra.mxu1 %v6868_v15  ;;  %2718 = vmatprep.subr.mxu0 %v6869_v53  ;;  %v6877_v53 = vld [vmem:[#allocation106_spill] sm:$0xff]  ;;  %v6878_v15 = vld [vmem:[#allocation25_spill] sm:$0xff] }
0x1020   :  { %4145 = vmatprep.subr.mxu1 %v6529_v60  ;;  %2719 = vmatpush1.msra.mxu0 %v6870_v31  ;;  %v6879_v31 = vld [vmem:[#allocation26_spill] sm:$0xff] }
0x1021   :  { %4146 = vmatpush3.msra.mxu1 %v6871_v34  ;;  %2720 = vmatprep.subr.mxu0 %v6872_v48  ;;  %v6880_v48 = vld [vmem:[#allocation107_spill] sm:$0xff] }
0x1022   :  { %4147 = vmatprep.subr.mxu1 %v6529_v60  ;;  %2721 = vmatpush1.msra.mxu0 %v6873_v4  ;;  %v6881_v34 = vld [vmem:[#allocation27_spill] sm:$0xff]  ;;  %v6882_v4 = vld [vmem:[#allocation28_spill] sm:$0xff] }
0x1023   :  { %4148 = vmatpush3.msra.mxu1 %v6874_v1  ;;  %2722 = vmatprep.subr.mxu0 %v6875_v10  ;;  %v6883_v10 = vld [vmem:[#allocation108_spill] sm:$0xff]  ;;  %v6884_v1 = vld [vmem:[#allocation29_spill] sm:$0xff] }
0x1024   :  { %4149 = vmatprep.subr.mxu1 %v6529_v60  ;;  %2723 = vmatpush1.msra.mxu0 %v6876_v19  ;;  %v6885_v19 = vld [vmem:[#allocation30_spill] sm:$0xff] }
0x1025   :  { %4150 = vmatpush3.msra.mxu1 %v6877_v53  ;;  %2724 = vmatprep.subr.mxu0 %v6878_v15  ;;  %v6886_v15 = vld [vmem:[#allocation109_spill] sm:$0xff]  ;;  %v6887_v53 = vld [vmem:[#allocation31_spill] sm:$0xff] }
0x1026   :  { %4151 = vmatprep.subr.mxu1 %v6529_v60  ;;  %2725 = vmatpush1.msra.mxu0 %v6879_v31  ;;  %v6888_v31 = vld [vmem:[#allocation32_spill] sm:$0xff] }
0x1027   :  { %4152 = vmatpush3.msra.mxu1 %v6880_v48  ;;  %2726 = vmatprep.subr.mxu0 %v6881_v34  ;;  %v6889_v34 = vld [vmem:[#allocation110_spill] sm:$0xff]  ;;  %v6890_v48 = vld [vmem:[#allocation33_spill] sm:$0xff] }
0x1028   :  { %4153 = vmatprep.subr.mxu1 %v6529_v60  ;;  %2727 = vmatpush1.msra.mxu0 %v6882_v4  ;;  %v6891_v4 = vld [vmem:[#allocation34_spill] sm:$0xff] }
0x1029   :  { %4154 = vmatpush3.msra.mxu1 %v6883_v10  ;;  %2728 = vmatprep.subr.mxu0 %v6884_v1  ;;  %v6892_v1 = vld [vmem:[#allocation111_spill] sm:$0xff] }
0x102a   :  { %4155 = vmatprep.subr.mxu1 %v6529_v60  ;;  %2729 = vmatpush1.msra.mxu0 %v6885_v19  ;;  %v6893_v10 = vld [vmem:[#allocation35_spill] sm:$0xff]  ;;  %v6894_v19 = vld [vmem:[#allocation36_spill] sm:$0xff] }
0x102b   :  { %4156 = vmatpush3.msra.mxu1 %v6886_v15  ;;  %2730 = vmatprep.subr.mxu0 %v6887_v53  ;;  %v6895_v53 = vld [vmem:[#allocation112_spill] sm:$0xff]  ;;  %v6896_v15 = vld [vmem:[#allocation37_spill] sm:$0xff] }
0x102c   :  { %4157 = vmatprep.subr.mxu1 %v6529_v60  ;;  %2731 = vmatpush1.msra.mxu0 %v6888_v31  ;;  %v6897_v31 = vld [vmem:[#allocation38_spill] sm:$0xff] }
0x102d   :  { %4158 = vmatpush3.msra.mxu1 %v6889_v34  ;;  %2732 = vmatprep.subr.mxu0 %v6890_v48  ;;  %v6898_v48 = vld [vmem:[#allocation113_spill] sm:$0xff]  ;;  %v6899_v34 = vld [vmem:[#allocation39_spill] sm:$0xff] }
0x102e   :  { %4159 = vmatprep.subr.mxu1 %v6529_v60  ;;  %2733 = vmatpush1.msra.mxu0 %v6891_v4  ;;  %v6900_v4 = vld [vmem:[#allocation40_spill] sm:$0xff] }
0x102f   :  { %4160 = vmatpush3.msra.mxu1 %v6892_v1  ;;  %2734 = vmatprep.subr.mxu0 %v6893_v10  ;;  %v6901_v10 = vld [vmem:[#allocation114_spill] sm:$0xff]  ;;  %v6902_v1 = vld [vmem:[#allocation41_spill] sm:$0xff] }
0x1030   :  { %4161 = vmatprep.subr.mxu1 %v6529_v60  ;;  %2735 = vmatpush1.msra.mxu0 %v6894_v19  ;;  %v6903_v19 = vld [vmem:[#allocation42_spill] sm:$0xff] }
0x1031   :  { %4162 = vmatpush3.msra.mxu1 %v6895_v53  ;;  %2736 = vmatprep.subr.mxu0 %v6896_v15  ;;  %v6904_v15 = vld [vmem:[#allocation115_spill] sm:$0xff]  ;;  %v6905_v53 = vld [vmem:[#allocation44_spill] sm:$0xff] }
0x1032   :  { %4163 = vmatprep.subr.mxu1 %v6529_v60  ;;  %2737 = vmatpush1.msra.mxu0 %v6897_v31  ;;  %v6906_v31 = vld [vmem:[#allocation45_spill] sm:$0xff] }
0x1033   :  { %4164 = vmatpush3.msra.mxu1 %v6898_v48  ;;  %2738 = vmatprep.subr.mxu0 %v6899_v34  ;;  %v6907_v34 = vld [vmem:[#allocation116_spill] sm:$0xff]  ;;  %v6908_v48 = vld [vmem:[#allocation46_spill] sm:$0xff] }
0x1034   :  { %4165 = vmatprep.subr.mxu1 %v6529_v60  ;;  %2739 = vmatpush1.msra.mxu0 %v6900_v4  ;;  %v6909_v4 = vld [vmem:[#allocation47_spill] sm:$0xff] }
0x1035   :  { %4166 = vmatpush3.msra.mxu1 %v6901_v10  ;;  %2740 = vmatprep.subr.mxu0 %v6902_v1  ;;  %v6910_v1 = vld [vmem:[#allocation117_spill] sm:$0xff]  ;;  %v6911_v10 = vld [vmem:[#allocation48_spill] sm:$0xff] }
0x1036   :  { %4167 = vmatprep.subr.mxu1 %v6529_v60  ;;  %2741 = vmatpush1.msra.mxu0 %v6903_v19  ;;  %v6912_v19 = vld [vmem:[#allocation49_spill] sm:$0xff] }
0x1037   :  { %4168 = vmatpush3.msra.mxu1 %v6904_v15  ;;  %2742 = vmatprep.subr.mxu0 %v6905_v53  ;;  %v6913_v53 = vld [vmem:[#allocation50_spill] sm:$0xff] }
0x1038   :  { %4169 = vmatprep.subr.mxu1 %v6529_v60  ;;  %2743 = vmatpush1.msra.mxu0 %v6906_v31 }
0x1039   :  { %4170 = vmatpush3.msra.mxu1 %v6907_v34  ;;  %2744 = vmatprep.subr.mxu0 %v6908_v48 }
0x103a   :  { %4171 = vmatprep.subr.mxu1 %v6529_v60  ;;  %2745 = vmatpush1.msra.mxu0 %v6909_v4 }
0x103b   :  { %4172 = vmatpush3.msra.mxu1 %v6910_v1  ;;  %2746 = vmatprep.subr.mxu0 %v6911_v10 }
0x103c   :  { %4176 = vmatprep.subr.mxu1 %v6529_v60  ;;  %2747 = vmatpush1.msra.mxu0 %v6912_v19 }
0x103d   :  { %2780 = vmatprep.mubr.f32.mxu0 %v6529_v60  ;;  %2857 = vmatprep.subr.mxu0 %v6913_v53 }
0x10ba   :  { %v2458_v31 = vpop.f32.mrf.mxu0  ;;  %v2387_v15 = vpop.f32.mrf.mxu1 }
0x10bc   :  { %v4105_v34 = vpop.f32.mrf.mxu0  ;;  %v2389_v48 = vpop.f32.mrf.mxu1 }
0x10db   :  { %v2528_v52 = vpop.f32.mrf.mxu1  ;;  %v2599_v14 = vpop.f32.mrf.mxu0 }
0x10dc   :  { %v2603_v2 = vadd.f32 %v2528_v52, %v2387_v15  ;;  %v2620_v5 = vadd.f32 %v5653_v35, %v2599_v14  ;;  %v2619_v52 = vadd.f32 %v5659_v59, %v2458_v31  ;;  %v6934_v59 = vld [vmem:[#allocation99_spill] sm:$0xff]  ;;  %v6941_v14 = vld [vmem:[#allocation102_spill] sm:$0xff] }
0x10dd   :  { %v2530_v4 = vpop.f32.mrf.mxu1  ;;  %v4140_v11 = vpop.f32.mrf.mxu0  ;;  %v6942_v31 = vld [vmem:[#allocation103_spill] sm:$0xff] }
0x10de   :  { %v2604_v1 = vadd.f32 %v6836_v46, %v2603_v2  ;;  %v2611_v33 = vadd.f32 %v2530_v4, %v2389_v48  ;;  %v6943_v48 = vld [vmem:[#allocation104_spill] sm:$0xff]  ;;  %v6944_v4 = vld [vmem:[#allocation105_spill] sm:$0xff] }
0x10e0   :  { %v3146_v10 = vmul.f32 -1.442695, %v2604_v1  ;;  %v2612_v19 = vadd.f32 %v6837_v63, %v2611_v33 }
0x10e2   :  { %4363 = vpow2.f32 %v3146_v10  ;;  %v3147_v51 = vmul.f32 -1.442695, %v2612_v19  ;;  %v6945_v10 = vld [vmem:[#allocation106_spill] sm:$0xff]  ;;  %v6946_v19 = vld [vmem:[#allocation107_spill] sm:$0xff] }
0x10e4   :  { %4365 = vpow2.f32 %v3147_v51 }
0x10ef   :  { %v4364_v3 = vpop.eup %4363 }
0x10f0   :  { %v2608_v53 = vadd.f32 1.0, %v4364_v3  ;;  %v6940_v3 = vld [vmem:[#allocation101_spill] sm:$0xff] }
0x10f1   :  { %v4366_v34 = vpop.eup %4365 }
0x10f2   :  { %4367 = vrcp.f32 %v2608_v53  ;;  %v2616_v20 = vadd.f32 1.0, %v4366_v34  ;;  %v6947_v53 = vld [vmem:[#allocation108_spill] sm:$0xff]  ;;  %v6948_v34 = vld [vmem:[#allocation109_spill] sm:$0xff] }
0x10f4   :  { %4369 = vrcp.f32 %v2616_v20  ;;  %v6939_v20 = vld [vmem:[#allocation95_spill] sm:$0xff] }
0x10ff   :  { %v4368_v47 = vpop.eup %4367 }
0x1100   :  { %v2621_v11 = vmul.f32 %v4368_v47, %v2620_v5  ;;  %v6938_v5 = vld [vmem:[#allocation94_spill] sm:$0xff] }
0x1101   :  { %v4370_v2 = vpop.eup %4369 }
0x1102   :  { %v2622_v46 = vadd.f32 %v2621_v11, %v2619_v52  ;;  %v2624_v15 = vsub.f32 1.0, %v4370_v2  ;;  %v2626_v51 = vmul.f32 %v4370_v2, %v5851_v28  ;;  %v6936_v28 = vld [vmem:[#allocation92_spill] sm:$0xff]  ;;  %v6949_v52 = vld [vmem:[#allocation110_spill] sm:$0xff]  ;;  %v6950_v11 = vld [vmem:[#allocation111_spill] sm:$0xff] }
0x1103   :  { %v6952_v2 = vld [vmem:[#allocation113_spill] sm:$0xff] }
0x1104   :  { %4371 = vtanh.f32 %v2622_v46  ;;  %v6951_v46 = vld [vmem:[#allocation112_spill] sm:$0xff] }
0x1111   :  { %v4372_v1 = vpop.eup %4371 }
0x1112   :  { %v2625_v63 = vmul.f32 %v4372_v1, %v2624_v15  ;;  %v6953_v15 = vld [vmem:[#allocation114_spill] sm:$0xff]  ;;  %v6954_v1 = vld [vmem:[#allocation115_spill] sm:$0xff] }
0x1114   :  { %v6034_v33 = vadd.f32 %v2626_v51, %v2625_v63  ;;  %v6955_v63 = vld [vmem:[#allocation116_spill] sm:$0xff]  ;;  %v6956_v51 = vld [vmem:[#allocation117_spill] sm:$0xff] }
0x1116   :  { %4174 = vmatmul.mubr.f32.vlgmr.msra.gmra.mxu1 %v6034_v33 }
0x1117   :  { %4177 = vmatpush3.msra.mxu1 %v4655_v22  ;;  %4208 = vmatprep.mubr.msk.f32.mxu1 %vm4539_vm0, %v6529_v60 }
0x1118   :  { %4178 = vmatprep.subr.mxu1 %v6529_v60 }
0x1119   :  { %4179 = vmatpush3.msra.mxu1 %v4660_v25 }
0x111a   :  { %4180 = vmatprep.subr.mxu1 %v6529_v60 }
0x111b   :  { %4181 = vmatpush3.msra.mxu1 %v4666_v27 }
0x111c   :  { %4182 = vmatprep.subr.mxu1 %v6529_v60 }
0x111d   :  { %4183 = vmatpush3.msra.mxu1 %v4676_v32 }
0x111e   :  { %4184 = vmatprep.subr.mxu1 %v6529_v60 }
0x111f   :  { %4185 = vmatpush3.msra.mxu1 %v4686_v36 }
0x1120   :  { %4186 = vmatprep.subr.mxu1 %v6529_v60 }
0x1121   :  { %4187 = vmatpush3.msra.mxu1 %v4696_v41 }
0x1122   :  { %4188 = vmatprep.subr.mxu1 %v6529_v60 }
0x1123   :  { %4189 = vmatpush3.msra.mxu1 %v4706_v45 }
0x1124   :  { %4190 = vmatprep.subr.mxu1 %v6529_v60 }
0x1125   :  { %4191 = vmatpush3.msra.mxu1 %v4716_v50 }
0x1126   :  { %4192 = vmatprep.subr.mxu1 %v6529_v60 }
0x1127   :  { %4193 = vmatpush3.msra.mxu1 %v4727_v55 }
0x1128   :  { %4194 = vmatprep.subr.mxu1 %v6529_v60 }
0x1129   :  { %4195 = vmatpush3.msra.mxu1 %v4742_v61 }
0x112a   :  { %4196 = vmatprep.subr.mxu1 %v6529_v60 }
0x112b   :  { %4197 = vmatpush3.msra.mxu1 %v4754_v8 }
0x112c   :  { %4198 = vmatprep.subr.mxu1 %v6529_v60 }
0x112d   :  { %4199 = vmatpush3.msra.mxu1 %v4764_v13 }
0x112e   :  { %4200 = vmatprep.subr.mxu1 %v6529_v60 }
0x112f   :  { %4201 = vmatpush3.msra.mxu1 %v6614_v0 }
0x1130   :  { %4202 = vmatprep.subr.mxu1 %v6529_v60 }
0x1131   :  { %4203 = vmatpush3.msra.mxu1 %v6615_v17 }
0x1132   :  { %4204 = vmatprep.subr.mxu1 %v6529_v60 }
0x1133   :  { %4205 = vmatpush3.msra.mxu1 %v6616_v18 }
0x1134   :  { %4206 = vmatprep.subr.mxu1 %v6529_v60 }
0x1135   :  { %4207 = vmatpush3.msra.mxu1 %v6838_v40  ;;  %v6937_v40 = vld [vmem:[#allocation100_spill] sm:$0xff] }
0x1136   :  { %4211 = vmatprep.subr.mxu1 %v6529_v60 }
0x11d6   :  { %v2694_v22 = vpop.f32.mrf.mxu1 }
0x11d7   :  { %v2695_v25 = vadd.f32 %v5703_v24, %v2694_v22  ;;  %v6935_v24 = vld [vmem:[#allocation91_spill] sm:$0xff] }
0x11d8   :  { %v4175_v27 = vpop.f32.mrf.mxu1 }
0x11d9   :  { %v2699_v32 = vmin.f32 %v2695_v25, 0.0  ;;  %v2698_v36 = vmax.f32 %v2695_v25, 0.0 }
0x11db   :  { %v2700_v41 = vmul.f32 %v2699_v32, %v6547_v23 }
0x11dd   :  { %v2701_v45 = vadd.f32 %v2700_v41, %v2698_v36 }
0x11df   :  { %v2702_v50 = vsel %vm726_vm1, %v2701_v45, -inf }
0x11e0   :  { %2703 = vmax.xlane.f32.xlu0 %v2702_v50 }
0x1269   :  { %v2704_v55 = vpop.xlane.xlu0 %2703 }
0x126a   :  { %v2705_v61 = vsub.f32 %v2701_v45, %v2704_v55 }
0x126c   :  { %v2706_v8 = vmul.f32 1.442695, %v2705_v61  ;;  %v4396_v61 = vld [vmem:[%s6207_s4] ss:$0 sm:$0xff] }
0x126e   :  { %4373 = vpow2.f32 %v2706_v8 }
0x127b   :  { %v4374_v13 = vpop.eup %4373 }
0x127c   :  { %v2708_v0 = vmul.f32 %v4374_v13, %v5132_v39 }
0x127e   :  { %v2709_v17 = vsel %vm726_vm1, %v2708_v0, 0.0 }
0x127f   :  { %2710 = vadd.xlane.f32.xlu1 %v2709_v17 }
0x1308   :  { %v2711_v18 = vpop.xlane.xlu1 %2710 }
0x1309   :  { %4375 = vrcp.f32 %v2711_v18 }
0x1316   :  { %v4376_v47 = vpop.eup %4375 }
0x1317   :  { %v2713_v35 = vmul.f32 %v4376_v47, %v2708_v0 }
0x1319   :  { %2715 = vst [vmem:[#allocation12 + $0x18] sm:$0xf] %v2713_v35  ;;  %2781 = vmatmul.mubr.f32.vlgmr.msra.gmra.mxu0 %v2713_v35  ;;  %4209 = vmatmul.mubr.f32.vlgmr.msra.gmra.mxu1 %v2713_v35 }
0x131a   :  { %2858 = vmatpush1.msra.mxu0 %v6548_v43  ;;  %4212 = vmatpush3.msra.mxu1 %v6549_v56  ;;  %v6914_v43 = vld [vmem:[#allocation70_spill] sm:$0xff]  ;;  %v6915_v56 = vld [vmem:[#allocation71_spill] sm:$0xff] }
0x131b   :  { %2859 = vmatprep.subr.mxu0 %v6550_v54  ;;  %4213 = vmatprep.subr.mxu1 %v6529_v60  ;;  %v6916_v54 = vld [vmem:[#allocation87_spill] sm:$0xff] }
0x131c   :  { %2860 = vmatpush1.msra.mxu0 %v6551_v30  ;;  %4214 = vmatpush3.msra.mxu1 %v6618_v58  ;;  %v6917_v30 = vld [vmem:[#allocation73_spill] sm:$0xff] }
0x131d   :  { %2861 = vmatprep.subr.mxu0 %v6619_v57  ;;  %4215 = vmatprep.subr.mxu1 %v6529_v60  ;;  %v6922_v58 = vld [vmem:[#allocation93_spill] sm:$0xff]  ;;  %v6923_v57 = vld [vmem:[#allocation79_spill] sm:$0xff] }
0x131e   :  { %2862 = vmatpush1.msra.mxu0 %v6554_v42  ;;  %4216 = vmatpush3.msra.mxu1 %v6620_v38  ;;  %v6918_v42 = vld [vmem:[#allocation74_spill] sm:$0xff]  ;;  %v6924_v38 = vld [vmem:[#allocation80_spill] sm:$0xff] }
0x131f   :  { %2863 = vmatprep.subr.mxu0 %v6621_v49  ;;  %4217 = vmatprep.subr.mxu1 %v6529_v60  ;;  %v6925_v49 = vld [vmem:[#allocation96_spill] sm:$0xff] }
0x1320   :  { %2864 = vmatpush1.msra.mxu0 %v6622_v16  ;;  %4218 = vmatpush3.msra.mxu1 %v6623_v9  ;;  %v6926_v16 = vld [vmem:[#allocation82_spill] sm:$0xff]  ;;  %v6927_v9 = vld [vmem:[#allocation83_spill] sm:$0xff] }
0x1321   :  { %2865 = vmatprep.subr.mxu0 %v6624_v6  ;;  %4219 = vmatprep.subr.mxu1 %v6529_v60  ;;  %v6928_v6 = vld [vmem:[#allocation97_spill] sm:$0xff] }
0x1322   :  { %2866 = vmatpush1.msra.mxu0 %v6560_v62  ;;  %4220 = vmatpush3.msra.mxu1 %v6625_v7  ;;  %v6920_v62 = vld [vmem:[#allocation76_spill] sm:$0xff]  ;;  %v6929_v7 = vld [vmem:[#allocation85_spill] sm:$0xff] }
0x1323   :  { %2867 = vmatprep.subr.mxu0 %v6626_v12  ;;  %4221 = vmatprep.subr.mxu1 %v6529_v60  ;;  %v6930_v12 = vld [vmem:[#allocation86_spill] sm:$0xff] }
0x1324   :  { %2868 = vmatpush1.msra.mxu0 %v6563_v44  ;;  %4222 = vmatpush3.msra.mxu1 %v6690_v29  ;;  %v6919_v44 = vld [vmem:[#allocation90_spill] sm:$0xff]  ;;  %v6932_v29 = vld [vmem:[#allocation88_spill] sm:$0xff] }
0x1325   :  { %2869 = vmatprep.subr.mxu0 %v6691_v37  ;;  %4223 = vmatprep.subr.mxu1 %v6529_v60  ;;  %v6933_v37 = vld [vmem:[#allocation89_spill] sm:$0xff] }
0x1326   :  { %2870 = vmatpush1.msra.mxu0 %v6565_v26  ;;  %4224 = vmatpush3.msra.mxu1 %v6629_v21  ;;  %v6921_v26 = vld [vmem:[#allocation77_spill] sm:$0xff]  ;;  %v6931_v21 = vld [vmem:[#allocation98_spill] sm:$0xff] }
0x1327   :  { %2871 = vmatprep.subr.mxu0 %v6914_v43  ;;  %4225 = vmatprep.subr.mxu1 %v6529_v60 }
0x1328   :  { %2872 = vmatpush1.msra.mxu0 %v6915_v56  ;;  %4226 = vmatpush3.msra.mxu1 %v6916_v54  ;;  %v4398_v54 = vld [vmem:[%s6210_s7] ss:$0 sm:$0xff] }
0x1329   :  { %2873 = vmatprep.subr.mxu0 %v6917_v30  ;;  %4227 = vmatprep.subr.mxu1 %v6529_v60 }
0x132a   :  { %2874 = vmatpush1.msra.mxu0 %v6918_v42  ;;  %4228 = vmatpush3.msra.mxu1 %v6919_v44  ;;  %v4399_v44 = vld [vmem:[%s6209_s6] ss:$0 sm:$0xff]  ;;  %s4540_s6 = smov [#allocation12]  }
0x132b   :  { %2875 = vmatprep.subr.mxu0 %v6920_v62  ;;  %4229 = vmatprep.subr.mxu1 %v6529_v60 }
0x132c   :  { %2876 = vmatpush1.msra.mxu0 %v6921_v26  ;;  %4230 = vmatpush3.msra.mxu1 %v6922_v58 }
0x132d   :  { %2877 = vmatprep.subr.mxu0 %v6923_v57  ;;  %4231 = vmatprep.subr.mxu1 %v6529_v60 }
0x132e   :  { %2878 = vmatpush1.msra.mxu0 %v6924_v38  ;;  %4232 = vmatpush3.msra.mxu1 %v6925_v49 }
0x132f   :  { %2879 = vmatprep.subr.mxu0 %v6926_v16  ;;  %4233 = vmatprep.subr.mxu1 %v6529_v60 }
0x1330   :  { %2880 = vmatpush1.msra.mxu0 %v6927_v9  ;;  %4234 = vmatpush3.msra.mxu1 %v6928_v6 }
0x1331   :  { %2881 = vmatprep.subr.mxu0 %v6929_v7  ;;  %4235 = vmatprep.subr.mxu1 %v6529_v60 }
0x1332   :  { %2882 = vmatpush1.msra.mxu0 %v6930_v12  ;;  %4236 = vmatpush3.msra.mxu1 %v6931_v21  ;;  %v4400_v12 = vld [vmem:[%s6212_s9] ss:$0 sm:$0xff]  ;;  %s3116_s9 = sshll.u32 %s4540_s6, 4  ;;  %s3117_s9 = int_to_ptr.vmem [resolvable:$true] %s3116_s9 }
0x1333   :  { %2883 = vmatprep.subr.mxu0 %v6932_v29  ;;  %4237 = vmatprep.subr.mxu1 %v6529_v60  ;;  %s4501_s27 = scalar_lea.vmem %s3117_s9, 512  ;;  %p4506_p12 = scmp.lt.s32.totalorder %s3117_s9, %s3117_s9 }
0x1334   :  { %2884 = vmatpush1.msra.mxu0 %v6933_v37  ;;  %4238 = vmatpush3.msra.mxu1 %v6934_v59  ;;  %p4502_p11 = scmp.ne.s32.totalorder %s3117_s9, %s4501_s27  ;;  %p4507_p13 = scmp.lt.s32.totalorder %s4501_s27, %s4501_s27 }
0x1335   :  { %2885 = vmatprep.subr.mxu0 %v6935_v24  ;;  %4239 = vmatprep.subr.mxu1 %v6529_v60 }
0x1336   :  { %2886 = vmatpush1.msra.mxu0 %v6936_v28  ;;  %4240 = vmatpush3.msra.mxu1 %v6937_v40  ;;  %p4508_p0 = por %p4507_p13, %p4506_p12 }
0x1337   :  { %2887 = vmatprep.subr.mxu0 %v6938_v5  ;;  %4241 = vmatprep.subr.mxu1 %v6529_v60 }
0x1338   :  { %2888 = vmatpush1.msra.mxu0 %v6939_v20  ;;  %2921 = vmatprep.mubr.f32.mxu0 %v6529_v60  ;;  %p4509_p1 = pnand %p4508_p0, %p4502_p11 }
0x1339   :  { %4242 = vmatpush3.msra.mxu1 %v6940_v3  ;;  %4243 = vmatprep.mubr.msk.f32.mxu1 %vm4539_vm0, %v6529_v60 }
0x133a   :  { %2922 = vmatmul.mubr.f32.vlgmr.msra.gmra.mxu0 %v6034_v33  ;;  %4244 = vmatmul.mubr.f32.vlgmr.msra.gmra.mxu1 %v6034_v33 }
0x133b   :  { %4246 = vmatprep.subr.mxu0 %v6529_v60  ;;  %4278 = vmatprep.mubr.msk.f32.mxu0 %vm4539_vm0, %v6529_v60 }
0x133c   :  { %4247 = vmatpush3.msra.mxu0 %v6941_v14 }
0x133d   :  { %4248 = vmatprep.subr.mxu0 %v6529_v60 }
0x133e   :  { %4249 = vmatpush3.msra.mxu0 %v6942_v31 }
0x133f   :  { %4250 = vmatprep.subr.mxu0 %v6529_v60 }
0x1340   :  { %4251 = vmatpush3.msra.mxu0 %v6943_v48 }
0x1341   :  { %4252 = vmatprep.subr.mxu0 %v6529_v60 }
0x1342   :  { %4253 = vmatpush3.msra.mxu0 %v6944_v4 }
0x1343   :  { %4254 = vmatprep.subr.mxu0 %v6529_v60 }
0x1344   :  { %4255 = vmatpush3.msra.mxu0 %v6945_v10 }
0x1345   :  { %4256 = vmatprep.subr.mxu0 %v6529_v60 }
0x1346   :  { %4257 = vmatpush3.msra.mxu0 %v6946_v19 }
0x1347   :  { %4258 = vmatprep.subr.mxu0 %v6529_v60 }
0x1348   :  { %4259 = vmatpush3.msra.mxu0 %v6947_v53 }
0x1349   :  { %4260 = vmatprep.subr.mxu0 %v6529_v60 }
0x134a   :  { %4261 = vmatpush3.msra.mxu0 %v6948_v34 }
0x134b   :  { %4262 = vmatprep.subr.mxu0 %v6529_v60 }
0x134c   :  { %4263 = vmatpush3.msra.mxu0 %v6949_v52 }
0x134d   :  { %4264 = vmatprep.subr.mxu0 %v6529_v60 }
0x134e   :  { %4265 = vmatpush3.msra.mxu0 %v6950_v11 }
0x134f   :  { %4266 = vmatprep.subr.mxu0 %v6529_v60 }
0x1350   :  { %4267 = vmatpush3.msra.mxu0 %v6951_v46 }
0x1351   :  { %4268 = vmatprep.subr.mxu0 %v6529_v60 }
0x1352   :  { %4269 = vmatpush3.msra.mxu0 %v6952_v2 }
0x1353   :  { %4270 = vmatprep.subr.mxu0 %v6529_v60 }
0x1354   :  { %4271 = vmatpush3.msra.mxu0 %v6953_v15 }
0x1355   :  { %4272 = vmatprep.subr.mxu0 %v6529_v60 }
0x1356   :  { %4273 = vmatpush3.msra.mxu0 %v6954_v1 }
0x1357   :  { %4274 = vmatprep.subr.mxu0 %v6529_v60 }
0x1358   :  { %4275 = vmatpush3.msra.mxu0 %v6955_v63 }
0x1359   :  { %4276 = vmatprep.subr.mxu0 %v6529_v60  ;;  %v4397_v60 = vld [vmem:[%s6208_s5] ss:$0 sm:$0xff] }
0x135a   :  { %4277 = vmatpush3.msra.mxu0 %v6956_v51 }
0x13d9   :  { %v2853_v22 = vpop.f32.mrf.mxu1  ;;  %v2782_v27 = vpop.f32.mrf.mxu0 }
0x13da   :  { %v3014_v62 = vadd.f32 %v4399_v44, %v2853_v22 }
0x13db   :  { %v4210_v25 = vpop.f32.mrf.mxu1  ;;  %v2784_v32 = vpop.f32.mrf.mxu0 }
0x13fa   :  { %v2923_v36 = vpop.f32.mrf.mxu0  ;;  %v2994_v41 = vpop.f32.mrf.mxu1 }
0x13fb   :  { %v2998_v45 = vadd.f32 %v2923_v36, %v2782_v27  ;;  %v3015_v30 = vadd.f32 %v4398_v54, %v2994_v41 }
0x13fc   :  { %v2925_v50 = vpop.f32.mrf.mxu0  ;;  %v4245_v55 = vpop.f32.mrf.mxu1 }
0x13fd   :  { %v2999_v8 = vadd.f32 %v4396_v61, %v2998_v45  ;;  %v3006_v0 = vadd.f32 %v2925_v50, %v2784_v32 }
0x13ff   :  { %v3148_v13 = vmul.f32 -1.442695, %v2999_v8  ;;  %v3007_v17 = vadd.f32 %v4397_v60, %v3006_v0 }
0x1401   :  { %4377 = vpow2.f32 %v3148_v13  ;;  %v3149_v18 = vmul.f32 -1.442695, %v3007_v17 }
0x1403   :  { %4379 = vpow2.f32 %v3149_v18 }
0x140e   :  { %v4378_v47 = vpop.eup %4377 }
0x140f   :  { %v3003_v35 = vadd.f32 1.0, %v4378_v47 }
0x1410   :  { %v4380_v43 = vpop.eup %4379 }
0x1411   :  { %4381 = vrcp.f32 %v3003_v35  ;;  %v3011_v56 = vadd.f32 1.0, %v4380_v43 }
0x1413   :  { %4383 = vrcp.f32 %v3011_v56 }
0x141e   :  { %v4382_v42 = vpop.eup %4381 }
0x141f   :  { %v3016_v26 = vmul.f32 %v4382_v42, %v3015_v30 }
0x1420   :  { %v4384_v57 = vpop.eup %4383 }
0x1421   :  { %v3017_v58 = vadd.f32 %v3016_v26, %v3014_v62  ;;  %v3019_v38 = vsub.f32 1.0, %v4384_v57  ;;  %v3021_v9 = vmul.f32 %v4384_v57, %v6034_v33 }
0x1423   :  { %4385 = vtanh.f32 %v3017_v58 }
0x1430   :  { %v4386_v49 = vpop.eup %4385 }
0x1431   :  { %v3020_v16 = vmul.f32 %v4386_v49, %v3019_v38 }
0x1433   :  { %v3022_v6 = vadd.f32 %v3021_v9, %v3020_v16 }
0x1435   :  { %4279 = vmatmul.mubr.f32.vlgmr.msra.gmra.mxu0 %v3022_v6 }
0x14f5   :  { %v3089_v7 = vpop.f32.mrf.mxu0 }
0x14f6   :  { %v3090_v21 = vadd.f32 %v4400_v12, %v3089_v7 }
0x14f7   :  { %v4280_v29 = vpop.f32.mrf.mxu0 }
0x14f8   :  { %v3094_v37 = vmin.f32 %v3090_v21, 0.0  ;;  %v3093_v59 = vmax.f32 %v3090_v21, 0.0 }
0x14fa   :  { %v3095_v24 = vmul.f32 %v3094_v37, %v6547_v23 }
0x14fc   :  { %v3096_v28 = vadd.f32 %v3095_v24, %v3093_v59 }
0x14fe   :  { %v3097_v40 = vsel %vm726_vm1, %v3096_v28, -inf }
0x14ff   :  { %3098 = vmax.xlane.f32.xlu0 %v3097_v40 }
0x1588   :  { %v3099_v5 = vpop.xlane.xlu0 %3098 }
0x1589   :  { %v3100_v20 = vsub.f32 %v3096_v28, %v3099_v5 }
0x158b   :  { %v3101_v33 = vmul.f32 1.442695, %v3100_v20 }
0x158d   :  { %4387 = vpow2.f32 %v3101_v33 }
0x159a   :  { %v4388_v3 = vpop.eup %4387 }
0x159b   :  { %v3103_v14 = vmul.f32 %v4388_v3, %v5132_v39 }
0x159d   :  { %v3104_v31 = vsel %vm726_vm1, %v3103_v14, 0.0 }
0x159e   :  { %3105 = vadd.xlane.f32.xlu1 %v3104_v31 }
0x1627   :  { %v3106_v48 = vpop.xlane.xlu1 %3105 }
0x1628   :  { %4389 = vrcp.f32 %v3106_v48 }
0x1635   :  { %v4390_v4 = vpop.eup %4389 }
0x1636   :  { %v3108_v23 = vmul.f32 %v4390_v4, %v3103_v14 }
0x1638   :  { %3110 = vst [vmem:[#allocation12 + $0x1c] sm:$0xf] %v3108_v23 }
0x1639   :  { %4512 = shalt.err (!%p4509_p1)
}
0x163a   :  { %3122 = dma.vmem_to_hbm [thread:$0]  %s3117_s9, 512, %s6214_s11, [#allocation5], %s4536_s0, %s4536_s0, %s4537_s21  }
0x163b   :  { %4527 = dma.done.wait [#allocation5], 512  }
0x163c   :  { %4528 = vsyncadd [#allocation5], 4294966784 }
0x163d   :  { %3126 = vsyncpa [#allocation4], 1 }
0x163e   :  { %3127 = vsyncpa [#allocation7], 1 }
0x163f   :  { %3128 = vsyncpa [#allocation10], 1 }
0x1640   :  { %3129 = vsyncpa [#allocation5], 1 }

</bundles_post_ra>
